<compile_context>
chip_gen: v5e
topology: v5e:2x2
jax: 0.10.0
libtpu: 0.0.40
codegen_flags: <defaults>
</compile_context>

<pallas_src>
import functools

import jax
import jax.numpy as jnp
from jax import lax
from jax.experimental import pallas as pl
from jax.experimental.pallas import tpu as pltpu

BN_EPS = 1e-3            # matches nn.BatchNorm2d(eps=0.001)
PMAX = 2                 # padding ring big enough for the 5x5 conv
CPAD = 16                # channel padding (bf16 sublane packing unit)
LANE = 128
TM_MAX = 512             # lane tile (multiple of 128)
ACT_DTYPE = jnp.bfloat16 # MXU operand dtype for activations / weights
NEG_LARGE = -1e30        # stands in for -inf in the max-pool (keeps math finite)


def _round_up(x, m):
    return ((x + m - 1) // m) * m


# ------------------------------ Pallas kernels ------------------------------

def _stage1_kernel(x_ref, row_ref, col_ref, w1_ref, b1_ref, w4_ref, b4_ref,
                   ob1_ref, or2_ref, or3_ref, ob4_ref, *,
                   halo, tm, wp, pmax, img_h, img_w, cb1, cr2, cr3):
    """Fused: branch1 1x1 + branch2-reduce 1x1 + branch3-reduce 1x1 +
    branch4 (3x3 maxpool + 1x1). All consume the same x tile once."""
    x = x_ref[0]                               # [cin_p, tm_in]  (bf16)
    row = row_ref[...]                         # [1, tm] int32 (padded-frame row)
    col = col_ref[...]                         # [1, tm] int32 (padded-frame col)
    validf = ((row >= pmax) & (row < pmax + img_h) &
              (col >= pmax) & (col < pmax + img_w)).astype(jnp.float32)

    # ---- three 1x1 convs as one tall matmul (BN scale folded into weights) --
    xc = x[:, halo:halo + tm]                  # center window  [cin_p, tm]
    y = jnp.dot(w1_ref[...], xc, preferred_element_type=jnp.float32)
    y = jnp.maximum(y + b1_ref[...], 0.0) * validf   # zero out pad positions
    ob1_ref[...] = y[:cb1]
    or2_ref[...] = y[cb1:cb1 + cr2]
    or3_ref[...] = y[cb1 + cr2:cb1 + cr2 + cr3]

    # ---- branch4: 3x3 max-pool (stride 1, pad 1, -inf padding) + 1x1 -------
    neg = jnp.asarray(NEG_LARGE, x.dtype)
    pooled = None
    for di in (-1, 0, 1):
        for dj in (-1, 0, 1):
            s = di * wp + dj
            tap = x[:, halo + s: halo + s + tm]
            outside = ((row + di < pmax) | (row + di >= pmax + img_h) |
                       (col + dj < pmax) | (col + dj >= pmax + img_w))
            tap = jnp.where(outside, neg, tap)
            pooled = tap if pooled is None else jnp.maximum(pooled, tap)
    y4 = jnp.dot(w4_ref[...], pooled, preferred_element_type=jnp.float32)
    ob4_ref[...] = jnp.maximum(y4 + b4_ref[...], 0.0) * validf


def _conv_kxk_kernel(x_ref, row_ref, col_ref, w_ref, b_ref, o_ref, *,
                     k, halo, tm, wp, pmax, img_h, img_w):
    """KxK conv (+folded BN, ReLU) as ONE MXU contraction over K*K*Cin."""
    x = x_ref[0]                               # [cin_p, tm_in]
    row = row_ref[...]
    col = col_ref[...]
    validf = ((row >= pmax) & (row < pmax + img_h) &
              (col >= pmax) & (col < pmax + img_w)).astype(jnp.float32)
    pk = (k - 1) // 2
    taps = []
    for a in range(k):
        for b in range(k):
            s = (a - pk) * wp + (b - pk)
            taps.append(x[:, halo + s: halo + s + tm])
    xk = jnp.concatenate(taps, axis=0)         # [k*k*cin_p, tm]
    y = jnp.dot(w_ref[...], xk, preferred_element_type=jnp.float32)
    o_ref[...] = jnp.maximum(y + b_ref[...], 0.0) * validf


# ------------------------------ call wrappers -------------------------------

def _compiler_params():
    return pltpu.CompilerParams(
        dimension_semantics=("parallel",),          # shard tiles on v7x megacore
        vmem_limit_bytes=32 * 1024 * 1024)


def _const_spec(a):
    return pl.BlockSpec(a.shape, lambda i: (0,) * a.ndim)


def _stage1_call(x_tiles, row, col, prep, g):
    nt, cin_p, tm_in = x_tiles.shape
    tm, m_pad = g["tm"], g["m_pad"]
    cb1, cr2, cr3, cb4 = prep["cb1"], prep["cr2"], prep["cr3"], prep["cb4"]
    kernel = functools.partial(
        _stage1_kernel, halo=g["halo"], tm=tm, wp=g["wp"], pmax=PMAX,
        img_h=g["img_h"], img_w=g["img_w"], cb1=cb1, cr2=cr2, cr3=cr3)
    out_shape = tuple(jax.ShapeDtypeStruct((c, m_pad), jnp.float32)
                      for c in (cb1, cr2, cr3, cb4))
    out_specs = tuple(pl.BlockSpec((c, tm), lambda i: (0, i))
                      for c in (cb1, cr2, cr3, cb4))
    return pl.pallas_call(
        kernel,
        out_shape=out_shape,
        grid=(nt,),
        in_specs=[
            pl.BlockSpec((1, cin_p, tm_in), lambda i: (i, 0, 0)),
            pl.BlockSpec((1, tm), lambda i: (0, i)),
            pl.BlockSpec((1, tm), lambda i: (0, i)),
            _const_spec(prep["w1x1"]), _const_spec(prep["b1x1"]),
            _const_spec(prep["w4"]), _const_spec(prep["b4"]),
        ],
        out_specs=out_specs,
        compiler_params=_compiler_params(),
    )(x_tiles, row, col, prep["w1x1"], prep["b1x1"], prep["w4"], prep["b4"])


def _conv_kxk_call(x_tiles, row, col, wmat, bias, k, g):
    nt, cin_p, tm_in = x_tiles.shape
    tm, m_pad = g["tm"], g["m_pad"]
    cout_p = wmat.shape[0]
    kernel = functools.partial(
        _conv_kxk_kernel, k=k, halo=g["halo"], tm=tm, wp=g["wp"], pmax=PMAX,
        img_h=g["img_h"], img_w=g["img_w"])
    return pl.pallas_call(
        kernel,
        out_shape=jax.ShapeDtypeStruct((cout_p, m_pad), jnp.float32),
        grid=(nt,),
        in_specs=[
            pl.BlockSpec((1, cin_p, tm_in), lambda i: (i, 0, 0)),
            pl.BlockSpec((1, tm), lambda i: (0, i)),
            pl.BlockSpec((1, tm), lambda i: (0, i)),
            _const_spec(wmat), _const_spec(bias),
        ],
        out_specs=pl.BlockSpec((cout_p, tm), lambda i: (0, i)),
        compiler_params=_compiler_params(),
    )(x_tiles, row, col, wmat, bias)


# ------------------------------ geometry / glue ------------------------------

def _geometry(n, h, w):
    hp, wp = h + 2 * PMAX, w + 2 * PMAX
    mp = n * hp * wp
    tm = min(TM_MAX, _round_up(mp, LANE))
    m_pad = _round_up(mp, tm)
    return dict(hp=hp, wp=wp, mp=mp, tm=tm, m_pad=m_pad, nt=m_pad // tm,
                halo=PMAX * wp + PMAX, img_h=h, img_w=w)


def _row_col(g):
    pos = jnp.arange(g["m_pad"], dtype=jnp.int32)
    inside = pos < g["mp"]
    row = jnp.where(inside, (pos // g["wp"]) % g["hp"], -10_000)
    col = jnp.where(inside, pos % g["wp"], -10_000)
    return row.reshape(1, -1), col.reshape(1, -1)


def _overlapped_tiles(x_cm, g, dtype):
    """[C, M_pad] -> [NT, C, TM + 2*HALO] overlapped tiles (only ~2*HALO/TM
    HBM duplication; all in-kernel tap slices become static)."""
    x_ext = jnp.pad(x_cm, ((0, 0), (g["halo"], g["halo"]))).astype(dtype)
    tm, halo, nt = g["tm"], g["halo"], g["nt"]
    tiles = [x_ext[:, i * tm: i * tm + tm + 2 * halo] for i in range(nt)]
    return jnp.stack(tiles, axis=0)


# ------------------------------- parameters ---------------------------------

def _make_basic_conv(key, cin, cout, k):
    kw_, kg, kb, km, kv = jax.random.split(key, 5)
    w = jax.random.normal(kw_, (cout, cin, k, k), jnp.float32) * 0.1
    gamma = jax.random.uniform(kg, (cout,), jnp.float32, 0.5, 1.5)
    beta = jax.random.normal(kb, (cout,), jnp.float32) * 0.1
    mean = jax.random.normal(km, (cout,), jnp.float32) * 0.1
    var = jax.random.uniform(kv, (cout,), jnp.float32, 0.5, 1.5)
    return dict(w=w, gamma=gamma, beta=beta, mean=mean, var=var)


def init_inception_params(key, in_channel, ch1x1, ch3x3red, ch3x3,
                          ch5x5red, ch5x5, pool_proj):
    ks = jax.random.split(key, 6)
    return dict(
        b1=_make_basic_conv(ks[0], in_channel, ch1x1, 1),
        b2a=_make_basic_conv(ks[1], in_channel, ch3x3red, 1),
        b2b=_make_basic_conv(ks[2], ch3x3red, ch3x3, 3),
        b3a=_make_basic_conv(ks[3], in_channel, ch5x5red, 1),
        b3b=_make_basic_conv(ks[4], ch5x5red, ch5x5, 5),
        b4=_make_basic_conv(ks[5], in_channel, pool_proj, 1),
        dims=dict(in_channel=in_channel, ch1x1=ch1x1, ch3x3red=ch3x3red,
                  ch3x3=ch3x3, ch5x5red=ch5x5red, ch5x5=ch5x5,
                  pool_proj=pool_proj),
    )


def _fold_bn(p):
    scale = p["gamma"] / jnp.sqrt(p["var"] + BN_EPS)
    w = p["w"] * scale[:, None, None, None]          # fold BN scale into conv
    bias = p["beta"] - p["mean"] * scale
    return w, bias


def _pack_w(w_oihw, cin_p, cout_p, dtype):
    cout, cin, k, _ = w_oihw.shape
    wt = jnp.transpose(w_oihw, (0, 2, 3, 1))         # [Cout, K, K, Cin]
    wt = jnp.pad(wt, ((0, cout_p - cout), (0, 0), (0, 0), (0, cin_p - cin)))
    return wt.reshape(cout_p, k * k * cin_p).astype(dtype)


def _pack_b(bias, cout_p):
    return jnp.pad(bias, (0, cout_p - bias.shape[0])).reshape(cout_p, 1).astype(
        jnp.float32)


def prepare_inception(raw, act_dtype=ACT_DTYPE):
    d = raw["dims"]
    cin_p = _round_up(d["in_channel"], CPAD)
    cb1 = _round_up(d["ch1x1"], CPAD)
    cr2 = _round_up(d["ch3x3red"], CPAD)
    cr3 = _round_up(d["ch5x5red"], CPAD)
    cb4 = _round_up(d["pool_proj"], CPAD)
    c3 = _round_up(d["ch3x3"], CPAD)
    c5 = _round_up(d["ch5x5"], CPAD)

    w1, bias1 = _fold_bn(raw["b1"])
    w2a, bias2a = _fold_bn(raw["b2a"])
    w3a, bias3a = _fold_bn(raw["b3a"])
    w2b, bias2b = _fold_bn(raw["b2b"])
    w3b, bias3b = _fold_bn(raw["b3b"])
    w4, bias4 = _fold_bn(raw["b4"])

    return dict(
        dims=d, cin_p=cin_p, cb1=cb1, cr2=cr2, cr3=cr3, cb4=cb4,
        # the three 1x1 convs reading x are fused into one tall matmul
        w1x1=jnp.concatenate([_pack_w(w1, cin_p, cb1, act_dtype),
                              _pack_w(w2a, cin_p, cr2, act_dtype),
                              _pack_w(w3a, cin_p, cr3, act_dtype)], axis=0),
        b1x1=jnp.concatenate([_pack_b(bias1, cb1), _pack_b(bias2a, cr2),
                              _pack_b(bias3a, cr3)], axis=0),
        w4=_pack_w(w4, cin_p, cb4, act_dtype), b4=_pack_b(bias4, cb4),
        w2b=_pack_w(w2b, cr2, c3, act_dtype), b2b=_pack_b(bias2b, c3),
        w3b=_pack_w(w3b, cr3, c5, act_dtype), b3b=_pack_b(bias3b, c5),
    )


# --------------------------------- forward ----------------------------------

def inception_forward(x, prep):
    n, cin, h, w = x.shape
    d = prep["dims"]
    g = _geometry(n, h, w)
    row, col = _row_col(g)

    # x -> padded [cin_p, M_pad] (channels on sublanes, padded spatial on lanes)
    cin_p = prep["cin_p"]
    xp = jnp.pad(x, ((0, 0), (0, cin_p - cin), (PMAX, PMAX), (PMAX, PMAX)))
    x_cm = xp.transpose(1, 0, 2, 3).reshape(cin_p, g["mp"])
    x_cm = jnp.pad(x_cm, ((0, 0), (0, g["m_pad"] - g["mp"])))
    x_tiles = _overlapped_tiles(x_cm, g, ACT_DTYPE)

    # stage 1: everything that reads x (b1, b2-reduce, b3-reduce, pool+1x1)
    b1, r2, r3, b4 = _stage1_call(x_tiles, row, col, prep, g)

    # stage 2: 3x3 and 5x5 convs consume the [C, M] intermediates directly
    b2 = _conv_kxk_call(_overlapped_tiles(r2, g, ACT_DTYPE), row, col,
                        prep["w2b"], prep["b2b"], 3, g)
    b3 = _conv_kxk_call(_overlapped_tiles(r3, g, ACT_DTYPE), row, col,
                        prep["w3b"], prep["b3b"], 5, g)

    # torch.cat(dim=1) + back to NCHW only at the module boundary
    out_cm = jnp.concatenate([b1[:d["ch1x1"]], b2[:d["ch3x3"]],
                              b3[:d["ch5x5"]], b4[:d["pool_proj"]]], axis=0)
    ctot = out_cm.shape[0]
    out = out_cm[:, :g["mp"]].reshape(ctot, n, g["hp"], g["wp"])
    out = out[:, :, PMAX:PMAX + h, PMAX:PMAX + w]
    return out.transpose(1, 0, 2, 3)


# ------------------------------- pure-JAX ref --------------------------------

def _ref_basic(x, p, pad):
    w, bias = _fold_bn(p)
    y = lax.conv_general_dilated(
        x, w, window_strides=(1, 1),
        padding=((pad, pad), (pad, pad)),
        dimension_numbers=("NCHW", "OIHW", "NCHW"))
    y = y + bias.reshape(1, -1, 1, 1)
    return jnp.maximum(y, 0.0)


def _ref_maxpool3x3(x):
    return lax.reduce_window(x, -jnp.inf, lax.max, (1, 1, 3, 3), (1, 1, 1, 1),
                             ((0, 0), (0, 0), (1, 1), (1, 1)))


def _ref_inception(x, raw):
    b1 = _ref_basic(x, raw["b1"], 0)
    b2 = _ref_basic(_ref_basic(x, raw["b2a"], 0), raw["b2b"], 1)
    b3 = _ref_basic(_ref_basic(x, raw["b3a"], 0), raw["b3b"], 2)
    b4 = _ref_basic(_ref_maxpool3x3(x), raw["b4"], 0)
    return jnp.concatenate([b1, b2, b3, b4], axis=1)


# ----------------------------------- main ------------------------------------

if __name__ == "__main__":
    key = jax.random.PRNGKey(0)
    kx, kp = jax.random.split(key)

    N, Cin, H, W = 2, 4, 16, 16                      # input NCHW, like PyTorch
    ch1x1, ch3x3red, ch3x3, ch5x5red, ch5x5, pool_proj = 8, 4, 8, 4, 8, 8

    x = jax.random.normal(kx, (N, Cin, H, W), jnp.float32)
    raw = init_inception_params(kp, Cin, ch1x1, ch3x3red, ch3x3,
                                ch5x5red, ch5x5, pool_proj)
    prep = prepare_inception(raw)

    fwd = jax.jit(lambda xx: inception_forward(xx, prep))
    out = jax.block_until_ready(fwd(x))
    ref = jax.block_until_ready(_ref_inception(x, raw))

    assert out.shape == (N, ch1x1 + ch3x3 + ch5x5 + pool_proj, H, W), out.shape
    max_err = float(jnp.max(jnp.abs(out - ref)))
    # bf16 MXU operands -> slightly looser tolerance than the pure-f32 ref.
    assert jnp.allclose(out, ref, atol=3e-2, rtol=3e-2), max_err
    print("KERNEL_OK")
</pallas_src>

<mosaic_0001>
module attributes {stable_mosaic.version = 11 : i64} {
  func.func @_stage1_kernel(%arg0: i32, %arg1: memref<1x16x596xbf16, #tpu.memory_space<vmem>>, %arg2: memref<1x512xi32, #tpu.memory_space<vmem>>, %arg3: memref<1x512xi32, #tpu.memory_space<vmem>>, %arg4: memref<48x16xbf16, #tpu.memory_space<vmem>>, %arg5: memref<48x1xf32, #tpu.memory_space<vmem>>, %arg6: memref<16x16xbf16, #tpu.memory_space<vmem>>, %arg7: memref<16x1xf32, #tpu.memory_space<vmem>>, %arg8: memref<16x512xf32, #tpu.memory_space<vmem>>, %arg9: memref<16x512xf32, #tpu.memory_space<vmem>>, %arg10: memref<16x512xf32, #tpu.memory_space<vmem>>, %arg11: memref<16x512xf32, #tpu.memory_space<vmem>>) attributes {dimension_semantics = [#tpu.dimension_semantics<parallel>], iteration_bounds = array<i64: 2>, scalar_prefetch = 0 : i64, scratch_operands = 0 : i64, tpu.core_type = #tpu.core_type<tc>, window_params = [{transform_indices = @transform_0, window_bounds = array<i64: 1, 16, 596>}, {transform_indices = @transform_1, window_bounds = array<i64: 1, 512>}, {transform_indices = @transform_2, window_bounds = array<i64: 1, 512>}, {pipeline_mode = #tpu.pipeline_mode<synchronous>, transform_indices = @transform_3, window_bounds = array<i64: 48, 16>}, {pipeline_mode = #tpu.pipeline_mode<synchronous>, transform_indices = @transform_4, window_bounds = array<i64: 48, 1>}, {pipeline_mode = #tpu.pipeline_mode<synchronous>, transform_indices = @transform_5, window_bounds = array<i64: 16, 16>}, {pipeline_mode = #tpu.pipeline_mode<synchronous>, transform_indices = @transform_6, window_bounds = array<i64: 16, 1>}, {transform_indices = @transform_7, window_bounds = array<i64: 16, 512>}, {transform_indices = @transform_8, window_bounds = array<i64: 16, 512>}, {transform_indices = @transform_9, window_bounds = array<i64: 16, 512>}, {transform_indices = @transform_10, window_bounds = array<i64: 16, 512>}]} {
    %c0 = arith.constant 0 : index
    %c0_0 = arith.constant 0 : index
    %c0_1 = arith.constant 0 : index
    %0 = vector.load %arg1[%c0, %c0_0, %c0_1] : memref<1x16x596xbf16, #tpu.memory_space<vmem>>, vector<1x16x596xbf16>
    %1 = vector.shape_cast %0 : vector<1x16x596xbf16> to vector<16x596xbf16>
    %c0_2 = arith.constant 0 : index
    %c0_3 = arith.constant 0 : index
    %2 = vector.load %arg2[%c0_2, %c0_3] : memref<1x512xi32, #tpu.memory_space<vmem>>, vector<1x512xi32>
    %c0_4 = arith.constant 0 : index
    %c0_5 = arith.constant 0 : index
    %3 = vector.load %arg3[%c0_4, %c0_5] : memref<1x512xi32, #tpu.memory_space<vmem>>, vector<1x512xi32>
    %c2_i32 = arith.constant 2 : i32
    %4 = vector.broadcast %c2_i32 : i32 to vector<1x512xi32>
    %5 = arith.cmpi sge, %2, %4 : vector<1x512xi32>
    %c18_i32 = arith.constant 18 : i32
    %6 = vector.broadcast %c18_i32 : i32 to vector<1x512xi32>
    %7 = arith.cmpi slt, %2, %6 : vector<1x512xi32>
    %8 = arith.andi %5, %7 : vector<1x512xi1>
    %c2_i32_6 = arith.constant 2 : i32
    %9 = vector.broadcast %c2_i32_6 : i32 to vector<1x512xi32>
    %10 = arith.cmpi sge, %3, %9 : vector<1x512xi32>
    %11 = arith.andi %8, %10 : vector<1x512xi1>
    %c18_i32_7 = arith.constant 18 : i32
    %12 = vector.broadcast %c18_i32_7 : i32 to vector<1x512xi32>
    %13 = arith.cmpi slt, %3, %12 : vector<1x512xi32>
    %14 = arith.andi %11, %13 : vector<1x512xi1>
    %15 = arith.extui %14 : vector<1x512xi1> to vector<1x512xi32>
    %16 = arith.sitofp %15 : vector<1x512xi32> to vector<1x512xf32>
    %17 = vector.extract_strided_slice %1 {offsets = [0, 42], sizes = [16, 512], strides = [1, 1]} : vector<16x596xbf16> to vector<16x512xbf16>
    %c0_8 = arith.constant 0 : index
    %c0_9 = arith.constant 0 : index
    %18 = vector.load %arg4[%c0_8, %c0_9] : memref<48x16xbf16, #tpu.memory_space<vmem>>, vector<48x16xbf16>
    %cst = arith.constant dense<0.000000e+00> : vector<48x512xf32>
    %19 = tpu.matmul %18, %17, %cst {dimension_numbers = #tpu.dot_dimension_numbers<[1], [0], [0], [1], [0, 0, 1, 1], [], []>} : vector<48x16xbf16>, vector<16x512xbf16>, vector<48x512xf32> -> vector<48x512xf32>
    %c0_10 = arith.constant 0 : index
    %c0_11 = arith.constant 0 : index
    %20 = vector.load %arg5[%c0_10, %c0_11] : memref<48x1xf32, #tpu.memory_space<vmem>>, vector<48x1xf32>
    %21 = vector.broadcast %20 : vector<48x1xf32> to vector<48x512xf32>
    %22 = arith.addf %19, %21 : vector<48x512xf32>
    %cst_12 = arith.constant 0.000000e+00 : f32
    %23 = vector.broadcast %cst_12 : f32 to vector<48x512xf32>
    %24 = arith.maximumf %22, %23 : vector<48x512xf32>
    %25 = vector.broadcast %16 : vector<1x512xf32> to vector<48x512xf32>
    %26 = arith.mulf %24, %25 : vector<48x512xf32>
    %27 = vector.extract_strided_slice %26 {offsets = [0, 0], sizes = [16, 512], strides = [1, 1]} : vector<48x512xf32> to vector<16x512xf32>
    %c0_13 = arith.constant 0 : index
    %c0_14 = arith.constant 0 : index
    %28 = vector.load %arg8[%c0_13, %c0_14] : memref<16x512xf32, #tpu.memory_space<vmem>>, vector<16x512xf32>
    tpu.vector_store %arg8[%c0_13, %c0_14], %27 {strides = array<i32>} : memref<16x512xf32, #tpu.memory_space<vmem>>, vector<16x512xf32>,
    %29 = vector.extract_strided_slice %26 {offsets = [16, 0], sizes = [16, 512], strides = [1, 1]} : vector<48x512xf32> to vector<16x512xf32>
    %c0_15 = arith.constant 0 : index
    %c0_16 = arith.constant 0 : index
    %30 = vector.load %arg9[%c0_15, %c0_16] : memref<16x512xf32, #tpu.memory_space<vmem>>, vector<16x512xf32>
    tpu.vector_store %arg9[%c0_15, %c0_16], %29 {strides = array<i32>} : memref<16x512xf32, #tpu.memory_space<vmem>>, vector<16x512xf32>,
    %31 = vector.extract_strided_slice %26 {offsets = [32, 0], sizes = [16, 512], strides = [1, 1]} : vector<48x512xf32> to vector<16x512xf32>
    %c0_17 = arith.constant 0 : index
    %c0_18 = arith.constant 0 : index
    %32 = vector.load %arg10[%c0_17, %c0_18] : memref<16x512xf32, #tpu.memory_space<vmem>>, vector<16x512xf32>
    tpu.vector_store %arg10[%c0_17, %c0_18], %31 {strides = array<i32>} : memref<16x512xf32, #tpu.memory_space<vmem>>, vector<16x512xf32>,
    %33 = vector.extract_strided_slice %1 {offsets = [0, 21], sizes = [16, 512], strides = [1, 1]} : vector<16x596xbf16> to vector<16x512xbf16>
    %c-1_i32 = arith.constant -1 : i32
    %34 = vector.broadcast %c-1_i32 : i32 to vector<1x512xi32>
    %35 = arith.addi %2, %34 : vector<1x512xi32>
    %c2_i32_19 = arith.constant 2 : i32
    %36 = vector.broadcast %c2_i32_19 : i32 to vector<1x512xi32>
    %37 = arith.cmpi slt, %35, %36 : vector<1x512xi32>
    %c-1_i32_20 = arith.constant -1 : i32
    %38 = vector.broadcast %c-1_i32_20 : i32 to vector<1x512xi32>
    %39 = arith.addi %2, %38 : vector<1x512xi32>
    %c18_i32_21 = arith.constant 18 : i32
    %40 = vector.broadcast %c18_i32_21 : i32 to vector<1x512xi32>
    %41 = arith.cmpi sge, %39, %40 : vector<1x512xi32>
    %42 = arith.ori %37, %41 : vector<1x512xi1>
    %c-1_i32_22 = arith.constant -1 : i32
    %43 = vector.broadcast %c-1_i32_22 : i32 to vector<1x512xi32>
    %44 = arith.addi %3, %43 : vector<1x512xi32>
    %c2_i32_23 = arith.constant 2 : i32
    %45 = vector.broadcast %c2_i32_23 : i32 to vector<1x512xi32>
    %46 = arith.cmpi slt, %44, %45 : vector<1x512xi32>
    %47 = arith.ori %42, %46 : vector<1x512xi1>
    %c-1_i32_24 = arith.constant -1 : i32
    %48 = vector.broadcast %c-1_i32_24 : i32 to vector<1x512xi32>
    %49 = arith.addi %3, %48 : vector<1x512xi32>
    %c18_i32_25 = arith.constant 18 : i32
    %50 = vector.broadcast %c18_i32_25 : i32 to vector<1x512xi32>
    %51 = arith.cmpi sge, %49, %50 : vector<1x512xi32>
    %52 = arith.ori %47, %51 : vector<1x512xi1>
    %cst_26 = arith.constant -1.000260e+30 : bf16
    %53 = vector.shape_cast %52 : vector<1x512xi1> to vector<1x512xi1>
    %54 = vector.broadcast %53 : vector<1x512xi1> to vector<16x512xi1>
    %55 = vector.broadcast %cst_26 : bf16 to vector<16x512xbf16>
    %56 = arith.select %54, %55, %33 : vector<16x512xi1>, vector<16x512xbf16>
    %57 = vector.extract_strided_slice %1 {offsets = [0, 22], sizes = [16, 512], strides = [1, 1]} : vector<16x596xbf16> to vector<16x512xbf16>
    %c-1_i32_27 = arith.constant -1 : i32
    %58 = vector.broadcast %c-1_i32_27 : i32 to vector<1x512xi32>
    %59 = arith.addi %2, %58 : vector<1x512xi32>
    %c2_i32_28 = arith.constant 2 : i32
    %60 = vector.broadcast %c2_i32_28 : i32 to vector<1x512xi32>
    %61 = arith.cmpi slt, %59, %60 : vector<1x512xi32>
    %c-1_i32_29 = arith.constant -1 : i32
    %62 = vector.broadcast %c-1_i32_29 : i32 to vector<1x512xi32>
    %63 = arith.addi %2, %62 : vector<1x512xi32>
    %c18_i32_30 = arith.constant 18 : i32
    %64 = vector.broadcast %c18_i32_30 : i32 to vector<1x512xi32>
    %65 = arith.cmpi sge, %63, %64 : vector<1x512xi32>
    %66 = arith.ori %61, %65 : vector<1x512xi1>
    %c0_i32 = arith.constant 0 : i32
    %67 = vector.broadcast %c0_i32 : i32 to vector<1x512xi32>
    %68 = arith.addi %3, %67 : vector<1x512xi32>
    %c2_i32_31 = arith.constant 2 : i32
    %69 = vector.broadcast %c2_i32_31 : i32 to vector<1x512xi32>
    %70 = arith.cmpi slt, %68, %69 : vector<1x512xi32>
    %71 = arith.ori %66, %70 : vector<1x512xi1>
    %c0_i32_32 = arith.constant 0 : i32
    %72 = vector.broadcast %c0_i32_32 : i32 to vector<1x512xi32>
    %73 = arith.addi %3, %72 : vector<1x512xi32>
    %c18_i32_33 = arith.constant 18 : i32
    %74 = vector.broadcast %c18_i32_33 : i32 to vector<1x512xi32>
    %75 = arith.cmpi sge, %73, %74 : vector<1x512xi32>
    %76 = arith.ori %71, %75 : vector<1x512xi1>
    %cst_34 = arith.constant -1.000260e+30 : bf16
    %77 = vector.shape_cast %76 : vector<1x512xi1> to vector<1x512xi1>
    %78 = vector.broadcast %77 : vector<1x512xi1> to vector<16x512xi1>
    %79 = vector.broadcast %cst_34 : bf16 to vector<16x512xbf16>
    %80 = arith.select %78, %79, %57 : vector<16x512xi1>, vector<16x512xbf16>
    %81 = arith.maximumf %56, %80 : vector<16x512xbf16>
    %82 = vector.extract_strided_slice %1 {offsets = [0, 23], sizes = [16, 512], strides = [1, 1]} : vector<16x596xbf16> to vector<16x512xbf16>
    %c-1_i32_35 = arith.constant -1 : i32
    %83 = vector.broadcast %c-1_i32_35 : i32 to vector<1x512xi32>
    %84 = arith.addi %2, %83 : vector<1x512xi32>
    %c2_i32_36 = arith.constant 2 : i32
    %85 = vector.broadcast %c2_i32_36 : i32 to vector<1x512xi32>
    %86 = arith.cmpi slt, %84, %85 : vector<1x512xi32>
    %c-1_i32_37 = arith.constant -1 : i32
    %87 = vector.broadcast %c-1_i32_37 : i32 to vector<1x512xi32>
    %88 = arith.addi %2, %87 : vector<1x512xi32>
    %c18_i32_38 = arith.constant 18 : i32
    %89 = vector.broadcast %c18_i32_38 : i32 to vector<1x512xi32>
    %90 = arith.cmpi sge, %88, %89 : vector<1x512xi32>
    %91 = arith.ori %86, %90 : vector<1x512xi1>
    %c1_i32 = arith.constant 1 : i32
    %92 = vector.broadcast %c1_i32 : i32 to vector<1x512xi32>
    %93 = arith.addi %3, %92 : vector<1x512xi32>
    %c2_i32_39 = arith.constant 2 : i32
    %94 = vector.broadcast %c2_i32_39 : i32 to vector<1x512xi32>
    %95 = arith.cmpi slt, %93, %94 : vector<1x512xi32>
    %96 = arith.ori %91, %95 : vector<1x512xi1>
    %c1_i32_40 = arith.constant 1 : i32
    %97 = vector.broadcast %c1_i32_40 : i32 to vector<1x512xi32>
    %98 = arith.addi %3, %97 : vector<1x512xi32>
    %c18_i32_41 = arith.constant 18 : i32
    %99 = vector.broadcast %c18_i32_41 : i32 to vector<1x512xi32>
    %100 = arith.cmpi sge, %98, %99 : vector<1x512xi32>
    %101 = arith.ori %96, %100 : vector<1x512xi1>
    %cst_42 = arith.constant -1.000260e+30 : bf16
    %102 = vector.shape_cast %101 : vector<1x512xi1> to vector<1x512xi1>
    %103 = vector.broadcast %102 : vector<1x512xi1> to vector<16x512xi1>
    %104 = vector.broadcast %cst_42 : bf16 to vector<16x512xbf16>
    %105 = arith.select %103, %104, %82 : vector<16x512xi1>, vector<16x512xbf16>
    %106 = arith.maximumf %81, %105 : vector<16x512xbf16>
    %107 = vector.extract_strided_slice %1 {offsets = [0, 41], sizes = [16, 512], strides = [1, 1]} : vector<16x596xbf16> to vector<16x512xbf16>
    %c0_i32_43 = arith.constant 0 : i32
    %108 = vector.broadcast %c0_i32_43 : i32 to vector<1x512xi32>
    %109 = arith.addi %2, %108 : vector<1x512xi32>
    %c2_i32_44 = arith.constant 2 : i32
    %110 = vector.broadcast %c2_i32_44 : i32 to vector<1x512xi32>
    %111 = arith.cmpi slt, %109, %110 : vector<1x512xi32>
    %c0_i32_45 = arith.constant 0 : i32
    %112 = vector.broadcast %c0_i32_45 : i32 to vector<1x512xi32>
    %113 = arith.addi %2, %112 : vector<1x512xi32>
    %c18_i32_46 = arith.constant 18 : i32
    %114 = vector.broadcast %c18_i32_46 : i32 to vector<1x512xi32>
    %115 = arith.cmpi sge, %113, %114 : vector<1x512xi32>
    %116 = arith.ori %111, %115 : vector<1x512xi1>
    %c-1_i32_47 = arith.constant -1 : i32
    %117 = vector.broadcast %c-1_i32_47 : i32 to vector<1x512xi32>
    %118 = arith.addi %3, %117 : vector<1x512xi32>
    %c2_i32_48 = arith.constant 2 : i32
    %119 = vector.broadcast %c2_i32_48 : i32 to vector<1x512xi32>
    %120 = arith.cmpi slt, %118, %119 : vector<1x512xi32>
    %121 = arith.ori %116, %120 : vector<1x512xi1>
    %c-1_i32_49 = arith.constant -1 : i32
    %122 = vector.broadcast %c-1_i32_49 : i32 to vector<1x512xi32>
    %123 = arith.addi %3, %122 : vector<1x512xi32>
    %c18_i32_50 = arith.constant 18 : i32
    %124 = vector.broadcast %c18_i32_50 : i32 to vector<1x512xi32>
    %125 = arith.cmpi sge, %123, %124 : vector<1x512xi32>
    %126 = arith.ori %121, %125 : vector<1x512xi1>
    %cst_51 = arith.constant -1.000260e+30 : bf16
    %127 = vector.shape_cast %126 : vector<1x512xi1> to vector<1x512xi1>
    %128 = vector.broadcast %127 : vector<1x512xi1> to vector<16x512xi1>
    %129 = vector.broadcast %cst_51 : bf16 to vector<16x512xbf16>
    %130 = arith.select %128, %129, %107 : vector<16x512xi1>, vector<16x512xbf16>
    %131 = arith.maximumf %106, %130 : vector<16x512xbf16>
    %132 = vector.extract_strided_slice %1 {offsets = [0, 42], sizes = [16, 512], strides = [1, 1]} : vector<16x596xbf16> to vector<16x512xbf16>
    %c0_i32_52 = arith.constant 0 : i32
    %133 = vector.broadcast %c0_i32_52 : i32 to vector<1x512xi32>
    %134 = arith.addi %2, %133 : vector<1x512xi32>
    %c2_i32_53 = arith.constant 2 : i32
    %135 = vector.broadcast %c2_i32_53 : i32 to vector<1x512xi32>
    %136 = arith.cmpi slt, %134, %135 : vector<1x512xi32>
    %c0_i32_54 = arith.constant 0 : i32
    %137 = vector.broadcast %c0_i32_54 : i32 to vector<1x512xi32>
    %138 = arith.addi %2, %137 : vector<1x512xi32>
    %c18_i32_55 = arith.constant 18 : i32
    %139 = vector.broadcast %c18_i32_55 : i32 to vector<1x512xi32>
    %140 = arith.cmpi sge, %138, %139 : vector<1x512xi32>
    %141 = arith.ori %136, %140 : vector<1x512xi1>
    %c0_i32_56 = arith.constant 0 : i32
    %142 = vector.broadcast %c0_i32_56 : i32 to vector<1x512xi32>
    %143 = arith.addi %3, %142 : vector<1x512xi32>
    %c2_i32_57 = arith.constant 2 : i32
    %144 = vector.broadcast %c2_i32_57 : i32 to vector<1x512xi32>
    %145 = arith.cmpi slt, %143, %144 : vector<1x512xi32>
    %146 = arith.ori %141, %145 : vector<1x512xi1>
    %c0_i32_58 = arith.constant 0 : i32
    %147 = vector.broadcast %c0_i32_58 : i32 to vector<1x512xi32>
    %148 = arith.addi %3, %147 : vector<1x512xi32>
    %c18_i32_59 = arith.constant 18 : i32
    %149 = vector.broadcast %c18_i32_59 : i32 to vector<1x512xi32>
    %150 = arith.cmpi sge, %148, %149 : vector<1x512xi32>
    %151 = arith.ori %146, %150 : vector<1x512xi1>
    %cst_60 = arith.constant -1.000260e+30 : bf16
    %152 = vector.shape_cast %151 : vector<1x512xi1> to vector<1x512xi1>
    %153 = vector.broadcast %152 : vector<1x512xi1> to vector<16x512xi1>
    %154 = vector.broadcast %cst_60 : bf16 to vector<16x512xbf16>
    %155 = arith.select %153, %154, %132 : vector<16x512xi1>, vector<16x512xbf16>
    %156 = arith.maximumf %131, %155 : vector<16x512xbf16>
    %157 = vector.extract_strided_slice %1 {offsets = [0, 43], sizes = [16, 512], strides = [1, 1]} : vector<16x596xbf16> to vector<16x512xbf16>
    %c0_i32_61 = arith.constant 0 : i32
    %158 = vector.broadcast %c0_i32_61 : i32 to vector<1x512xi32>
    %159 = arith.addi %2, %158 : vector<1x512xi32>
    %c2_i32_62 = arith.constant 2 : i32
    %160 = vector.broadcast %c2_i32_62 : i32 to vector<1x512xi32>
    %161 = arith.cmpi slt, %159, %160 : vector<1x512xi32>
    %c0_i32_63 = arith.constant 0 : i32
    %162 = vector.broadcast %c0_i32_63 : i32 to vector<1x512xi32>
    %163 = arith.addi %2, %162 : vector<1x512xi32>
    %c18_i32_64 = arith.constant 18 : i32
    %164 = vector.broadcast %c18_i32_64 : i32 to vector<1x512xi32>
    %165 = arith.cmpi sge, %163, %164 : vector<1x512xi32>
    %166 = arith.ori %161, %165 : vector<1x512xi1>
    %c1_i32_65 = arith.constant 1 : i32
    %167 = vector.broadcast %c1_i32_65 : i32 to vector<1x512xi32>
    %168 = arith.addi %3, %167 : vector<1x512xi32>
    %c2_i32_66 = arith.constant 2 : i32
    %169 = vector.broadcast %c2_i32_66 : i32 to vector<1x512xi32>
    %170 = arith.cmpi slt, %168, %169 : vector<1x512xi32>
    %171 = arith.ori %166, %170 : vector<1x512xi1>
    %c1_i32_67 = arith.constant 1 : i32
    %172 = vector.broadcast %c1_i32_67 : i32 to vector<1x512xi32>
    %173 = arith.addi %3, %172 : vector<1x512xi32>
    %c18_i32_68 = arith.constant 18 : i32
    %174 = vector.broadcast %c18_i32_68 : i32 to vector<1x512xi32>
    %175 = arith.cmpi sge, %173, %174 : vector<1x512xi32>
    %176 = arith.ori %171, %175 : vector<1x512xi1>
    %cst_69 = arith.constant -1.000260e+30 : bf16
    %177 = vector.shape_cast %176 : vector<1x512xi1> to vector<1x512xi1>
    %178 = vector.broadcast %177 : vector<1x512xi1> to vector<16x512xi1>
    %179 = vector.broadcast %cst_69 : bf16 to vector<16x512xbf16>
    %180 = arith.select %178, %179, %157 : vector<16x512xi1>, vector<16x512xbf16>
    %181 = arith.maximumf %156, %180 : vector<16x512xbf16>
    %182 = vector.extract_strided_slice %1 {offsets = [0, 61], sizes = [16, 512], strides = [1, 1]} : vector<16x596xbf16> to vector<16x512xbf16>
    %c1_i32_70 = arith.constant 1 : i32
    %183 = vector.broadcast %c1_i32_70 : i32 to vector<1x512xi32>
    %184 = arith.addi %2, %183 : vector<1x512xi32>
    %c2_i32_71 = arith.constant 2 : i32
    %185 = vector.broadcast %c2_i32_71 : i32 to vector<1x512xi32>
    %186 = arith.cmpi slt, %184, %185 : vector<1x512xi32>
    %c1_i32_72 = arith.constant 1 : i32
    %187 = vector.broadcast %c1_i32_72 : i32 to vector<1x512xi32>
    %188 = arith.addi %2, %187 : vector<1x512xi32>
    %c18_i32_73 = arith.constant 18 : i32
    %189 = vector.broadcast %c18_i32_73 : i32 to vector<1x512xi32>
    %190 = arith.cmpi sge, %188, %189 : vector<1x512xi32>
    %191 = arith.ori %186, %190 : vector<1x512xi1>
    %c-1_i32_74 = arith.constant -1 : i32
    %192 = vector.broadcast %c-1_i32_74 : i32 to vector<1x512xi32>
    %193 = arith.addi %3, %192 : vector<1x512xi32>
    %c2_i32_75 = arith.constant 2 : i32
    %194 = vector.broadcast %c2_i32_75 : i32 to vector<1x512xi32>
    %195 = arith.cmpi slt, %193, %194 : vector<1x512xi32>
    %196 = arith.ori %191, %195 : vector<1x512xi1>
    %c-1_i32_76 = arith.constant -1 : i32
    %197 = vector.broadcast %c-1_i32_76 : i32 to vector<1x512xi32>
    %198 = arith.addi %3, %197 : vector<1x512xi32>
    %c18_i32_77 = arith.constant 18 : i32
    %199 = vector.broadcast %c18_i32_77 : i32 to vector<1x512xi32>
    %200 = arith.cmpi sge, %198, %199 : vector<1x512xi32>
    %201 = arith.ori %196, %200 : vector<1x512xi1>
    %cst_78 = arith.constant -1.000260e+30 : bf16
    %202 = vector.shape_cast %201 : vector<1x512xi1> to vector<1x512xi1>
    %203 = vector.broadcast %202 : vector<1x512xi1> to vector<16x512xi1>
    %204 = vector.broadcast %cst_78 : bf16 to vector<16x512xbf16>
    %205 = arith.select %203, %204, %182 : vector<16x512xi1>, vector<16x512xbf16>
    %206 = arith.maximumf %181, %205 : vector<16x512xbf16>
    %207 = vector.extract_strided_slice %1 {offsets = [0, 62], sizes = [16, 512], strides = [1, 1]} : vector<16x596xbf16> to vector<16x512xbf16>
    %c1_i32_79 = arith.constant 1 : i32
    %208 = vector.broadcast %c1_i32_79 : i32 to vector<1x512xi32>
    %209 = arith.addi %2, %208 : vector<1x512xi32>
    %c2_i32_80 = arith.constant 2 : i32
    %210 = vector.broadcast %c2_i32_80 : i32 to vector<1x512xi32>
    %211 = arith.cmpi slt, %209, %210 : vector<1x512xi32>
    %c1_i32_81 = arith.constant 1 : i32
    %212 = vector.broadcast %c1_i32_81 : i32 to vector<1x512xi32>
    %213 = arith.addi %2, %212 : vector<1x512xi32>
    %c18_i32_82 = arith.constant 18 : i32
    %214 = vector.broadcast %c18_i32_82 : i32 to vector<1x512xi32>
    %215 = arith.cmpi sge, %213, %214 : vector<1x512xi32>
    %216 = arith.ori %211, %215 : vector<1x512xi1>
    %c0_i32_83 = arith.constant 0 : i32
    %217 = vector.broadcast %c0_i32_83 : i32 to vector<1x512xi32>
    %218 = arith.addi %3, %217 : vector<1x512xi32>
    %c2_i32_84 = arith.constant 2 : i32
    %219 = vector.broadcast %c2_i32_84 : i32 to vector<1x512xi32>
    %220 = arith.cmpi slt, %218, %219 : vector<1x512xi32>
    %221 = arith.ori %216, %220 : vector<1x512xi1>
    %c0_i32_85 = arith.constant 0 : i32
    %222 = vector.broadcast %c0_i32_85 : i32 to vector<1x512xi32>
    %223 = arith.addi %3, %222 : vector<1x512xi32>
    %c18_i32_86 = arith.constant 18 : i32
    %224 = vector.broadcast %c18_i32_86 : i32 to vector<1x512xi32>
    %225 = arith.cmpi sge, %223, %224 : vector<1x512xi32>
    %226 = arith.ori %221, %225 : vector<1x512xi1>
    %cst_87 = arith.constant -1.000260e+30 : bf16
    %227 = vector.shape_cast %226 : vector<1x512xi1> to vector<1x512xi1>
    %228 = vector.broadcast %227 : vector<1x512xi1> to vector<16x512xi1>
    %229 = vector.broadcast %cst_87 : bf16 to vector<16x512xbf16>
    %230 = arith.select %228, %229, %207 : vector<16x512xi1>, vector<16x512xbf16>
    %231 = arith.maximumf %206, %230 : vector<16x512xbf16>
    %232 = vector.extract_strided_slice %1 {offsets = [0, 63], sizes = [16, 512], strides = [1, 1]} : vector<16x596xbf16> to vector<16x512xbf16>
    %c1_i32_88 = arith.constant 1 : i32
    %233 = vector.broadcast %c1_i32_88 : i32 to vector<1x512xi32>
    %234 = arith.addi %2, %233 : vector<1x512xi32>
    %c2_i32_89 = arith.constant 2 : i32
    %235 = vector.broadcast %c2_i32_89 : i32 to vector<1x512xi32>
    %236 = arith.cmpi slt, %234, %235 : vector<1x512xi32>
    %c1_i32_90 = arith.constant 1 : i32
    %237 = vector.broadcast %c1_i32_90 : i32 to vector<1x512xi32>
    %238 = arith.addi %2, %237 : vector<1x512xi32>
    %c18_i32_91 = arith.constant 18 : i32
    %239 = vector.broadcast %c18_i32_91 : i32 to vector<1x512xi32>
    %240 = arith.cmpi sge, %238, %239 : vector<1x512xi32>
    %241 = arith.ori %236, %240 : vector<1x512xi1>
    %c1_i32_92 = arith.constant 1 : i32
    %242 = vector.broadcast %c1_i32_92 : i32 to vector<1x512xi32>
    %243 = arith.addi %3, %242 : vector<1x512xi32>
    %c2_i32_93 = arith.constant 2 : i32
    %244 = vector.broadcast %c2_i32_93 : i32 to vector<1x512xi32>
    %245 = arith.cmpi slt, %243, %244 : vector<1x512xi32>
    %246 = arith.ori %241, %245 : vector<1x512xi1>
    %c1_i32_94 = arith.constant 1 : i32
    %247 = vector.broadcast %c1_i32_94 : i32 to vector<1x512xi32>
    %248 = arith.addi %3, %247 : vector<1x512xi32>
    %c18_i32_95 = arith.constant 18 : i32
    %249 = vector.broadcast %c18_i32_95 : i32 to vector<1x512xi32>
    %250 = arith.cmpi sge, %248, %249 : vector<1x512xi32>
    %251 = arith.ori %246, %250 : vector<1x512xi1>
    %cst_96 = arith.constant -1.000260e+30 : bf16
    %252 = vector.shape_cast %251 : vector<1x512xi1> to vector<1x512xi1>
    %253 = vector.broadcast %252 : vector<1x512xi1> to vector<16x512xi1>
    %254 = vector.broadcast %cst_96 : bf16 to vector<16x512xbf16>
    %255 = arith.select %253, %254, %232 : vector<16x512xi1>, vector<16x512xbf16>
    %256 = arith.maximumf %231, %255 : vector<16x512xbf16>
    %c0_97 = arith.constant 0 : index
    %c0_98 = arith.constant 0 : index
    %257 = vector.load %arg6[%c0_97, %c0_98] : memref<16x16xbf16, #tpu.memory_space<vmem>>, vector<16x16xbf16>
    %cst_99 = arith.constant dense<0.000000e+00> : vector<16x512xf32>
    %258 = tpu.matmul %257, %256, %cst_99 {dimension_numbers = #tpu.dot_dimension_numbers<[1], [0], [0], [1], [0, 0, 1, 1], [], []>} : vector<16x16xbf16>, vector<16x512xbf16>, vector<16x512xf32> -> vector<16x512xf32>
    %c0_100 = arith.constant 0 : index
    %c0_101 = arith.constant 0 : index
    %259 = vector.load %arg7[%c0_100, %c0_101] : memref<16x1xf32, #tpu.memory_space<vmem>>, vector<16x1xf32>
    %260 = vector.broadcast %259 : vector<16x1xf32> to vector<16x512xf32>
    %261 = arith.addf %258, %260 : vector<16x512xf32>
    %cst_102 = arith.constant 0.000000e+00 : f32
    %262 = vector.broadcast %cst_102 : f32 to vector<16x512xf32>
    %263 = arith.maximumf %261, %262 : vector<16x512xf32>
    %264 = vector.broadcast %16 : vector<1x512xf32> to vector<16x512xf32>
    %265 = arith.mulf %263, %264 : vector<16x512xf32>
    %c0_103 = arith.constant 0 : index
    %c0_104 = arith.constant 0 : index
    %266 = vector.load %arg11[%c0_103, %c0_104] : memref<16x512xf32, #tpu.memory_space<vmem>>, vector<16x512xf32>
    tpu.vector_store %arg11[%c0_103, %c0_104], %265 {strides = array<i32>} : memref<16x512xf32, #tpu.memory_space<vmem>>, vector<16x512xf32>,
    return
  }
  func.func @transform_0(%arg0: i32) -> (i32, i32, i32) {
    %c0_i32 = arith.constant 0 : i32
    %c0_i32_0 = arith.constant 0 : i32
    %c0_i32_1 = arith.constant 0 : i32
    return %arg0, %c0_i32, %c0_i32_0 : i32, i32, i32
  }
  func.func @transform_1(%arg0: i32) -> (i32, i32) {
    %c0_i32 = arith.constant 0 : i32
    %c0_i32_0 = arith.constant 0 : i32
    return %c0_i32, %arg0 : i32, i32
  }
  func.func @transform_2(%arg0: i32) -> (i32, i32) {
    %c0_i32 = arith.constant 0 : i32
    %c0_i32_0 = arith.constant 0 : i32
    return %c0_i32, %arg0 : i32, i32
  }
  func.func @transform_3(%arg0: i32) -> (i32, i32) {
    %c0_i32 = arith.constant 0 : i32
    %c0_i32_0 = arith.constant 0 : i32
    %c0_i32_1 = arith.constant 0 : i32
    return %c0_i32, %c0_i32_0 : i32, i32
  }
  func.func @transform_4(%arg0: i32) -> (i32, i32) {
    %c0_i32 = arith.constant 0 : i32
    %c0_i32_0 = arith.constant 0 : i32
    %c0_i32_1 = arith.constant 0 : i32
    return %c0_i32, %c0_i32_0 : i32, i32
  }
  func.func @transform_5(%arg0: i32) -> (i32, i32) {
    %c0_i32 = arith.constant 0 : i32
    %c0_i32_0 = arith.constant 0 : i32
    %c0_i32_1 = arith.constant 0 : i32
    return %c0_i32, %c0_i32_0 : i32, i32
  }
  func.func @transform_6(%arg0: i32) -> (i32, i32) {
    %c0_i32 = arith.constant 0 : i32
    %c0_i32_0 = arith.constant 0 : i32
    %c0_i32_1 = arith.constant 0 : i32
    return %c0_i32, %c0_i32_0 : i32, i32
  }
  func.func @transform_7(%arg0: i32) -> (i32, i32) {
    %c0_i32 = arith.constant 0 : i32
    %c0_i32_0 = arith.constant 0 : i32
    return %c0_i32, %arg0 : i32, i32
  }
  func.func @transform_8(%arg0: i32) -> (i32, i32) {
    %c0_i32 = arith.constant 0 : i32
    %c0_i32_0 = arith.constant 0 : i32
    return %c0_i32, %arg0 : i32, i32
  }
  func.func @transform_9(%arg0: i32) -> (i32, i32) {
    %c0_i32 = arith.constant 0 : i32
    %c0_i32_0 = arith.constant 0 : i32
    return %c0_i32, %arg0 : i32, i32
  }
  func.func @transform_10(%arg0: i32) -> (i32, i32) {
    %c0_i32 = arith.constant 0 : i32
    %c0_i32_0 = arith.constant 0 : i32
    return %c0_i32, %arg0 : i32, i32
  }
}

module attributes {stable_mosaic.version = 11 : i64} {
  func.func @_conv_kxk_kernel(%arg0: i32, %arg1: memref<1x16x596xbf16, #tpu.memory_space<vmem>>, %arg2: memref<1x512xi32, #tpu.memory_space<vmem>>, %arg3: memref<1x512xi32, #tpu.memory_space<vmem>>, %arg4: memref<16x144xbf16, #tpu.memory_space<vmem>>, %arg5: memref<16x1xf32, #tpu.memory_space<vmem>>, %arg6: memref<16x512xf32, #tpu.memory_space<vmem>>) attributes {dimension_semantics = [#tpu.dimension_semantics<parallel>], iteration_bounds = array<i64: 2>, scalar_prefetch = 0 : i64, scratch_operands = 0 : i64, tpu.core_type = #tpu.core_type<tc>, window_params = [{transform_indices = @transform_0, window_bounds = array<i64: 1, 16, 596>}, {transform_indices = @transform_1, window_bounds = array<i64: 1, 512>}, {transform_indices = @transform_2, window_bounds = array<i64: 1, 512>}, {pipeline_mode = #tpu.pipeline_mode<synchronous>, transform_indices = @transform_3, window_bounds = array<i64: 16, 144>}, {pipeline_mode = #tpu.pipeline_mode<synchronous>, transform_indices = @transform_4, window_bounds = array<i64: 16, 1>}, {transform_indices = @transform_5, window_bounds = array<i64: 16, 512>}]} {
    %c0 = arith.constant 0 : index
    %c0_0 = arith.constant 0 : index
    %c0_1 = arith.constant 0 : index
    %0 = vector.load %arg1[%c0, %c0_0, %c0_1] : memref<1x16x596xbf16, #tpu.memory_space<vmem>>, vector<1x16x596xbf16>
    %1 = vector.shape_cast %0 : vector<1x16x596xbf16> to vector<16x596xbf16>
    %c0_2 = arith.constant 0 : index
    %c0_3 = arith.constant 0 : index
    %2 = vector.load %arg2[%c0_2, %c0_3] : memref<1x512xi32, #tpu.memory_space<vmem>>, vector<1x512xi32>
    %c0_4 = arith.constant 0 : index
    %c0_5 = arith.constant 0 : index
    %3 = vector.load %arg3[%c0_4, %c0_5] : memref<1x512xi32, #tpu.memory_space<vmem>>, vector<1x512xi32>
    %c2_i32 = arith.constant 2 : i32
    %4 = vector.broadcast %c2_i32 : i32 to vector<1x512xi32>
    %5 = arith.cmpi sge, %2, %4 : vector<1x512xi32>
    %c18_i32 = arith.constant 18 : i32
    %6 = vector.broadcast %c18_i32 : i32 to vector<1x512xi32>
    %7 = arith.cmpi slt, %2, %6 : vector<1x512xi32>
    %8 = arith.andi %5, %7 : vector<1x512xi1>
    %c2_i32_6 = arith.constant 2 : i32
    %9 = vector.broadcast %c2_i32_6 : i32 to vector<1x512xi32>
    %10 = arith.cmpi sge, %3, %9 : vector<1x512xi32>
    %11 = arith.andi %8, %10 : vector<1x512xi1>
    %c18_i32_7 = arith.constant 18 : i32
    %12 = vector.broadcast %c18_i32_7 : i32 to vector<1x512xi32>
    %13 = arith.cmpi slt, %3, %12 : vector<1x512xi32>
    %14 = arith.andi %11, %13 : vector<1x512xi1>
    %15 = arith.extui %14 : vector<1x512xi1> to vector<1x512xi32>
    %16 = arith.sitofp %15 : vector<1x512xi32> to vector<1x512xf32>
    %17 = vector.extract_strided_slice %1 {offsets = [0, 21], sizes = [16, 512], strides = [1, 1]} : vector<16x596xbf16> to vector<16x512xbf16>
    %18 = vector.extract_strided_slice %1 {offsets = [0, 22], sizes = [16, 512], strides = [1, 1]} : vector<16x596xbf16> to vector<16x512xbf16>
    %19 = vector.extract_strided_slice %1 {offsets = [0, 23], sizes = [16, 512], strides = [1, 1]} : vector<16x596xbf16> to vector<16x512xbf16>
    %20 = vector.extract_strided_slice %1 {offsets = [0, 41], sizes = [16, 512], strides = [1, 1]} : vector<16x596xbf16> to vector<16x512xbf16>
    %21 = vector.extract_strided_slice %1 {offsets = [0, 42], sizes = [16, 512], strides = [1, 1]} : vector<16x596xbf16> to vector<16x512xbf16>
    %22 = vector.extract_strided_slice %1 {offsets = [0, 43], sizes = [16, 512], strides = [1, 1]} : vector<16x596xbf16> to vector<16x512xbf16>
    %23 = vector.extract_strided_slice %1 {offsets = [0, 61], sizes = [16, 512], strides = [1, 1]} : vector<16x596xbf16> to vector<16x512xbf16>
    %24 = vector.extract_strided_slice %1 {offsets = [0, 62], sizes = [16, 512], strides = [1, 1]} : vector<16x596xbf16> to vector<16x512xbf16>
    %25 = vector.extract_strided_slice %1 {offsets = [0, 63], sizes = [16, 512], strides = [1, 1]} : vector<16x596xbf16> to vector<16x512xbf16>
    %26 = tpu.concatenate %17, %18, %19, %20, %21, %22, %23, %24, %25 in 0 : vector<16x512xbf16>, vector<16x512xbf16>, vector<16x512xbf16>, vector<16x512xbf16>, vector<16x512xbf16>, vector<16x512xbf16>, vector<16x512xbf16>, vector<16x512xbf16>, vector<16x512xbf16> -> vector<144x512xbf16>
    %c0_8 = arith.constant 0 : index
    %c0_9 = arith.constant 0 : index
    %27 = vector.load %arg4[%c0_8, %c0_9] : memref<16x144xbf16, #tpu.memory_space<vmem>>, vector<16x144xbf16>
    %cst = arith.constant dense<0.000000e+00> : vector<16x512xf32>
    %28 = tpu.matmul %27, %26, %cst {dimension_numbers = #tpu.dot_dimension_numbers<[1], [0], [0], [1], [0, 0, 1, 1], [], []>} : vector<16x144xbf16>, vector<144x512xbf16>, vector<16x512xf32> -> vector<16x512xf32>
    %c0_10 = arith.constant 0 : index
    %c0_11 = arith.constant 0 : index
    %29 = vector.load %arg5[%c0_10, %c0_11] : memref<16x1xf32, #tpu.memory_space<vmem>>, vector<16x1xf32>
    %30 = vector.broadcast %29 : vector<16x1xf32> to vector<16x512xf32>
    %31 = arith.addf %28, %30 : vector<16x512xf32>
    %cst_12 = arith.constant 0.000000e+00 : f32
    %32 = vector.broadcast %cst_12 : f32 to vector<16x512xf32>
    %33 = arith.maximumf %31, %32 : vector<16x512xf32>
    %34 = vector.broadcast %16 : vector<1x512xf32> to vector<16x512xf32>
    %35 = arith.mulf %33, %34 : vector<16x512xf32>
    %c0_13 = arith.constant 0 : index
    %c0_14 = arith.constant 0 : index
    %36 = vector.load %arg6[%c0_13, %c0_14] : memref<16x512xf32, #tpu.memory_space<vmem>>, vector<16x512xf32>
    tpu.vector_store %arg6[%c0_13, %c0_14], %35 {strides = array<i32>} : memref<16x512xf32, #tpu.memory_space<vmem>>, vector<16x512xf32>,
    return
  }
  func.func @transform_0(%arg0: i32) -> (i32, i32, i32) {
    %c0_i32 = arith.constant 0 : i32
    %c0_i32_0 = arith.constant 0 : i32
    %c0_i32_1 = arith.constant 0 : i32
    return %arg0, %c0_i32, %c0_i32_0 : i32, i32, i32
  }
  func.func @transform_1(%arg0: i32) -> (i32, i32) {
    %c0_i32 = arith.constant 0 : i32
    %c0_i32_0 = arith.constant 0 : i32
    return %c0_i32, %arg0 : i32, i32
  }
  func.func @transform_2(%arg0: i32) -> (i32, i32) {
    %c0_i32 = arith.constant 0 : i32
    %c0_i32_0 = arith.constant 0 : i32
    return %c0_i32, %arg0 : i32, i32
  }
  func.func @transform_3(%arg0: i32) -> (i32, i32) {
    %c0_i32 = arith.constant 0 : i32
    %c0_i32_0 = arith.constant 0 : i32
    %c0_i32_1 = arith.constant 0 : i32
    return %c0_i32, %c0_i32_0 : i32, i32
  }
  func.func @transform_4(%arg0: i32) -> (i32, i32) {
    %c0_i32 = arith.constant 0 : i32
    %c0_i32_0 = arith.constant 0 : i32
    %c0_i32_1 = arith.constant 0 : i32
    return %c0_i32, %c0_i32_0 : i32, i32
  }
  func.func @transform_5(%arg0: i32) -> (i32, i32) {
    %c0_i32 = arith.constant 0 : i32
    %c0_i32_0 = arith.constant 0 : i32
    return %c0_i32, %arg0 : i32, i32
  }
}

module attributes {stable_mosaic.version = 11 : i64} {
  func.func @_conv_kxk_kernel(%arg0: i32, %arg1: memref<1x16x596xbf16, #tpu.memory_space<vmem>>, %arg2: memref<1x512xi32, #tpu.memory_space<vmem>>, %arg3: memref<1x512xi32, #tpu.memory_space<vmem>>, %arg4: memref<16x400xbf16, #tpu.memory_space<vmem>>, %arg5: memref<16x1xf32, #tpu.memory_space<vmem>>, %arg6: memref<16x512xf32, #tpu.memory_space<vmem>>) attributes {dimension_semantics = [#tpu.dimension_semantics<parallel>], iteration_bounds = array<i64: 2>, scalar_prefetch = 0 : i64, scratch_operands = 0 : i64, tpu.core_type = #tpu.core_type<tc>, window_params = [{transform_indices = @transform_0, window_bounds = array<i64: 1, 16, 596>}, {transform_indices = @transform_1, window_bounds = array<i64: 1, 512>}, {transform_indices = @transform_2, window_bounds = array<i64: 1, 512>}, {pipeline_mode = #tpu.pipeline_mode<synchronous>, transform_indices = @transform_3, window_bounds = array<i64: 16, 400>}, {pipeline_mode = #tpu.pipeline_mode<synchronous>, transform_indices = @transform_4, window_bounds = array<i64: 16, 1>}, {transform_indices = @transform_5, window_bounds = array<i64: 16, 512>}]} {
    %c0 = arith.constant 0 : index
    %c0_0 = arith.constant 0 : index
    %c0_1 = arith.constant 0 : index
    %0 = vector.load %arg1[%c0, %c0_0, %c0_1] : memref<1x16x596xbf16, #tpu.memory_space<vmem>>, vector<1x16x596xbf16>
    %1 = vector.shape_cast %0 : vector<1x16x596xbf16> to vector<16x596xbf16>
    %c0_2 = arith.constant 0 : index
    %c0_3 = arith.constant 0 : index
    %2 = vector.load %arg2[%c0_2, %c0_3] : memref<1x512xi32, #tpu.memory_space<vmem>>, vector<1x512xi32>
    %c0_4 = arith.constant 0 : index
    %c0_5 = arith.constant 0 : index
    %3 = vector.load %arg3[%c0_4, %c0_5] : memref<1x512xi32, #tpu.memory_space<vmem>>, vector<1x512xi32>
    %c2_i32 = arith.constant 2 : i32
    %4 = vector.broadcast %c2_i32 : i32 to vector<1x512xi32>
    %5 = arith.cmpi sge, %2, %4 : vector<1x512xi32>
    %c18_i32 = arith.constant 18 : i32
    %6 = vector.broadcast %c18_i32 : i32 to vector<1x512xi32>
    %7 = arith.cmpi slt, %2, %6 : vector<1x512xi32>
    %8 = arith.andi %5, %7 : vector<1x512xi1>
    %c2_i32_6 = arith.constant 2 : i32
    %9 = vector.broadcast %c2_i32_6 : i32 to vector<1x512xi32>
    %10 = arith.cmpi sge, %3, %9 : vector<1x512xi32>
    %11 = arith.andi %8, %10 : vector<1x512xi1>
    %c18_i32_7 = arith.constant 18 : i32
    %12 = vector.broadcast %c18_i32_7 : i32 to vector<1x512xi32>
    %13 = arith.cmpi slt, %3, %12 : vector<1x512xi32>
    %14 = arith.andi %11, %13 : vector<1x512xi1>
    %15 = arith.extui %14 : vector<1x512xi1> to vector<1x512xi32>
    %16 = arith.sitofp %15 : vector<1x512xi32> to vector<1x512xf32>
    %17 = vector.extract_strided_slice %1 {offsets = [0, 0], sizes = [16, 512], strides = [1, 1]} : vector<16x596xbf16> to vector<16x512xbf16>
    %18 = vector.extract_strided_slice %1 {offsets = [0, 1], sizes = [16, 512], strides = [1, 1]} : vector<16x596xbf16> to vector<16x512xbf16>
    %19 = vector.extract_strided_slice %1 {offsets = [0, 2], sizes = [16, 512], strides = [1, 1]} : vector<16x596xbf16> to vector<16x512xbf16>
    %20 = vector.extract_strided_slice %1 {offsets = [0, 3], sizes = [16, 512], strides = [1, 1]} : vector<16x596xbf16> to vector<16x512xbf16>
    %21 = vector.extract_strided_slice %1 {offsets = [0, 4], sizes = [16, 512], strides = [1, 1]} : vector<16x596xbf16> to vector<16x512xbf16>
    %22 = vector.extract_strided_slice %1 {offsets = [0, 20], sizes = [16, 512], strides = [1, 1]} : vector<16x596xbf16> to vector<16x512xbf16>
    %23 = vector.extract_strided_slice %1 {offsets = [0, 21], sizes = [16, 512], strides = [1, 1]} : vector<16x596xbf16> to vector<16x512xbf16>
    %24 = vector.extract_strided_slice %1 {offsets = [0, 22], sizes = [16, 512], strides = [1, 1]} : vector<16x596xbf16> to vector<16x512xbf16>
    %25 = vector.extract_strided_slice %1 {offsets = [0, 23], sizes = [16, 512], strides = [1, 1]} : vector<16x596xbf16> to vector<16x512xbf16>
    %26 = vector.extract_strided_slice %1 {offsets = [0, 24], sizes = [16, 512], strides = [1, 1]} : vector<16x596xbf16> to vector<16x512xbf16>
    %27 = vector.extract_strided_slice %1 {offsets = [0, 40], sizes = [16, 512], strides = [1, 1]} : vector<16x596xbf16> to vector<16x512xbf16>
    %28 = vector.extract_strided_slice %1 {offsets = [0, 41], sizes = [16, 512], strides = [1, 1]} : vector<16x596xbf16> to vector<16x512xbf16>
    %29 = vector.extract_strided_slice %1 {offsets = [0, 42], sizes = [16, 512], strides = [1, 1]} : vector<16x596xbf16> to vector<16x512xbf16>
    %30 = vector.extract_strided_slice %1 {offsets = [0, 43], sizes = [16, 512], strides = [1, 1]} : vector<16x596xbf16> to vector<16x512xbf16>
    %31 = vector.extract_strided_slice %1 {offsets = [0, 44], sizes = [16, 512], strides = [1, 1]} : vector<16x596xbf16> to vector<16x512xbf16>
    %32 = vector.extract_strided_slice %1 {offsets = [0, 60], sizes = [16, 512], strides = [1, 1]} : vector<16x596xbf16> to vector<16x512xbf16>
    %33 = vector.extract_strided_slice %1 {offsets = [0, 61], sizes = [16, 512], strides = [1, 1]} : vector<16x596xbf16> to vector<16x512xbf16>
    %34 = vector.extract_strided_slice %1 {offsets = [0, 62], sizes = [16, 512], strides = [1, 1]} : vector<16x596xbf16> to vector<16x512xbf16>
    %35 = vector.extract_strided_slice %1 {offsets = [0, 63], sizes = [16, 512], strides = [1, 1]} : vector<16x596xbf16> to vector<16x512xbf16>
    %36 = vector.extract_strided_slice %1 {offsets = [0, 64], sizes = [16, 512], strides = [1, 1]} : vector<16x596xbf16> to vector<16x512xbf16>
    %37 = vector.extract_strided_slice %1 {offsets = [0, 80], sizes = [16, 512], strides = [1, 1]} : vector<16x596xbf16> to vector<16x512xbf16>
    %38 = vector.extract_strided_slice %1 {offsets = [0, 81], sizes = [16, 512], strides = [1, 1]} : vector<16x596xbf16> to vector<16x512xbf16>
    %39 = vector.extract_strided_slice %1 {offsets = [0, 82], sizes = [16, 512], strides = [1, 1]} : vector<16x596xbf16> to vector<16x512xbf16>
    %40 = vector.extract_strided_slice %1 {offsets = [0, 83], sizes = [16, 512], strides = [1, 1]} : vector<16x596xbf16> to vector<16x512xbf16>
    %41 = vector.extract_strided_slice %1 {offsets = [0, 84], sizes = [16, 512], strides = [1, 1]} : vector<16x596xbf16> to vector<16x512xbf16>
    %42 = tpu.concatenate %17, %18, %19, %20, %21, %22, %23, %24, %25, %26, %27, %28, %29, %30, %31, %32 in 0 : vector<16x512xbf16>, vector<16x512xbf16>, vector<16x512xbf16>, vector<16x512xbf16>, vector<16x512xbf16>, vector<16x512xbf16>, vector<16x512xbf16>, vector<16x512xbf16>, vector<16x512xbf16>, vector<16x512xbf16>, vector<16x512xbf16>, vector<16x512xbf16>, vector<16x512xbf16>, vector<16x512xbf16>, vector<16x512xbf16>, vector<16x512xbf16> -> vector<256x512xbf16>
    %43 = tpu.concatenate %33, %34, %35, %36, %37, %38, %39, %40, %41 in 0 : vector<16x512xbf16>, vector<16x512xbf16>, vector<16x512xbf16>, vector<16x512xbf16>, vector<16x512xbf16>, vector<16x512xbf16>, vector<16x512xbf16>, vector<16x512xbf16>, vector<16x512xbf16> -> vector<144x512xbf16>
    %44 = tpu.concatenate %42, %43 in 0 : vector<256x512xbf16>, vector<144x512xbf16> -> vector<400x512xbf16>
    %c0_8 = arith.constant 0 : index
    %c0_9 = arith.constant 0 : index
    %45 = vector.load %arg4[%c0_8, %c0_9] : memref<16x400xbf16, #tpu.memory_space<vmem>>, vector<16x400xbf16>
    %cst = arith.constant dense<0.000000e+00> : vector<16x512xf32>
    %46 = tpu.matmul %45, %44, %cst {dimension_numbers = #tpu.dot_dimension_numbers<[1], [0], [0], [1], [0, 0, 1, 1], [], []>} : vector<16x400xbf16>, vector<400x512xbf16>, vector<16x512xf32> -> vector<16x512xf32>
    %c0_10 = arith.constant 0 : index
    %c0_11 = arith.constant 0 : index
    %47 = vector.load %arg5[%c0_10, %c0_11] : memref<16x1xf32, #tpu.memory_space<vmem>>, vector<16x1xf32>
    %48 = vector.broadcast %47 : vector<16x1xf32> to vector<16x512xf32>
    %49 = arith.addf %46, %48 : vector<16x512xf32>
    %cst_12 = arith.constant 0.000000e+00 : f32
    %50 = vector.broadcast %cst_12 : f32 to vector<16x512xf32>
    %51 = arith.maximumf %49, %50 : vector<16x512xf32>
    %52 = vector.broadcast %16 : vector<1x512xf32> to vector<16x512xf32>
    %53 = arith.mulf %51, %52 : vector<16x512xf32>
    %c0_13 = arith.constant 0 : index
    %c0_14 = arith.constant 0 : index
    %54 = vector.load %arg6[%c0_13, %c0_14] : memref<16x512xf32, #tpu.memory_space<vmem>>, vector<16x512xf32>
    tpu.vector_store %arg6[%c0_13, %c0_14], %53 {strides = array<i32>} : memref<16x512xf32, #tpu.memory_space<vmem>>, vector<16x512xf32>,
    return
  }
  func.func @transform_0(%arg0: i32) -> (i32, i32, i32) {
    %c0_i32 = arith.constant 0 : i32
    %c0_i32_0 = arith.constant 0 : i32
    %c0_i32_1 = arith.constant 0 : i32
    return %arg0, %c0_i32, %c0_i32_0 : i32, i32, i32
  }
  func.func @transform_1(%arg0: i32) -> (i32, i32) {
    %c0_i32 = arith.constant 0 : i32
    %c0_i32_0 = arith.constant 0 : i32
    return %c0_i32, %arg0 : i32, i32
  }
  func.func @transform_2(%arg0: i32) -> (i32, i32) {
    %c0_i32 = arith.constant 0 : i32
    %c0_i32_0 = arith.constant 0 : i32
    return %c0_i32, %arg0 : i32, i32
  }
  func.func @transform_3(%arg0: i32) -> (i32, i32) {
    %c0_i32 = arith.constant 0 : i32
    %c0_i32_0 = arith.constant 0 : i32
    %c0_i32_1 = arith.constant 0 : i32
    return %c0_i32, %c0_i32_0 : i32, i32
  }
  func.func @transform_4(%arg0: i32) -> (i32, i32) {
    %c0_i32 = arith.constant 0 : i32
    %c0_i32_0 = arith.constant 0 : i32
    %c0_i32_1 = arith.constant 0 : i32
    return %c0_i32, %c0_i32_0 : i32, i32
  }
  func.func @transform_5(%arg0: i32) -> (i32, i32) {
    %c0_i32 = arith.constant 0 : i32
    %c0_i32_0 = arith.constant 0 : i32
    return %c0_i32, %arg0 : i32, i32
  }
}

</mosaic_0001>

<bundles_post_ra>
// kernel: _lambda_.5
= control target key start
LH: loop header
LB: loop body
LE: loop exit
PB: predicated region body
PF: predicated region fallthrough
CT: control target
= control target key end

     0   :  { %s1353_s18 = smov 0   ;;  %s1355_s19 = smov 0   ;;  %s2098_s0 = inlined_call_operand.vmem [shape: bf16[2,16,596], index: 0, kind: input, shape index: {}]   ;;  %s2099_s1 = inlined_call_operand.vmem [shape: s32[1,1024], index: 1, kind: input, shape index: {}]   ;;  %s2100_s2 = inlined_call_operand.vmem [shape: s32[1,1024], index: 2, kind: input, shape index: {}]   ;;  %s2101_s3 = inlined_call_operand.vmem [shape: bf16[16,400], index: 3, kind: input, shape index: {}]   ;;  %s2102_s4 = inlined_call_operand.vmem [shape: f32[16,1], index: 4, kind: input, shape index: {}]   ;;  %s2103_s5 = inlined_call_operand.vmem [shape: f32[16,1024], index: 5, kind: output, shape index: {}]  }
   0x1   :  { %s1357_s20 = smov 0  }
   0x2 LB: > { %s1366_s21 = sadd.s32 4294967295, %s1302_s20   ;;  %s1368_s22 = sadd.s32 1, %s1302_s20   ;;  %s1302_s20 = sphi %s1357_s20, %s2107_s20   ;;  %s1298_s19 = sphi %s1355_s19, %s2106_s19   ;;  %s1294_s18 = sphi %s1353_s18, %s2105_s18  }
   0x3   : > { %s139_s23 = ssub.s32 %s1302_s20, %s1368_s22  ;;  %s142_s24 = sadd.s32 1, %s1298_s19 }
   0x4   : > { %p140_p0 = scmp.eq.s32.totalorder %s139_s23, 0  ;;  %p152_p1 = scmp.ne.s32.totalorder %s1298_s19, %s1294_s18 }
   0x5   : > { %p153_p2 = scmp.eq.s32.totalorder %s1366_s21, 1  ;;  %p1173_p3 = scmp.ge.s32.totalorder %s1302_s20, 1 }
   0x6   : > { %s1376_s25 = scalar_select %p140_p0, %s1298_s19, %s142_s24  }
   0x7   : > { %p1378_p4 = por %p153_p2, %p152_p1  ;;  %p207_p5 = scmp.lt.s32.totalorder %s1302_s20, 3 }
   0x9   : > { %p208_p6 = pnand %p1173_p3, %p207_p5 }
   0xa   : > { %p242_p7 = scmp.lt.s32.totalorder (!%p208_p6), %s1366_s21, 1  ;;  %s1304_s7 = smov (!%p208_p6), 127  }
   0xb   : > { %211 = sbr.rel (%p208_p6) target bundleno = 698 (0x2ba), region = 40  ;;  %s1305_s8 = smov (!%p208_p6), 126  }
   0xc   : > { %s1306_s9 = smov (!%p208_p6), 125   ;;  %s1307_s10 = smov (!%p208_p6), 124  }
   0xd   : > { %s1308_s11 = smov (!%p208_p6), 108   ;;  %s1309_s12 = smov (!%p208_p6), 107  }
   0xe   : > { %s1310_s13 = smov (!%p208_p6), 106   ;;  %s1311_s14 = smov (!%p208_p6), 109  }
   0xf   : > { %s1312_s15 = smov (!%p208_p6), 105   ;;  %s1313_s16 = smov (!%p208_p6), 68  }
  0x10   : > { %s243_s27 = scalar_select %p242_p7, %s1366_s21, 1  ;;  %vm311_vm0 = vcmask 1039360   ;;  %vm330_vm1 = vcmask 1031168   ;;  %vm349_vm2 = vcmask 1022976   ;;  %vm368_vm3 = vcmask 1014784  }
  0x11   : > { %s1314_s17 = smov 84   ;;  %vm387_vm4 = vcmask 883712   ;;  %s1315_s20 = smov 67   ;;  %vm425_vm5 = vcmask 867328   ;;  %vm406_vm6 = vcmask 875520   ;;  %vm596_vm7 = vcmask 891904  }
  0x12   : > { %s1234_s28 = smul.u32 40, %s243_s27  ;;  %s1316_s23 = smov 86   ;;  %vm444_vm8 = vcmask 859136   ;;  %vm577_vm9 = vcmask 556032   ;;  %vm558_vm10 = vcmask 687104   ;;  %vm691_vm11 = vcmask 547840  }
  0x13   : > { %s1317_s24 = smov 85   ;;  %s1318_s27 = smov 87   ;;  %vm539_vm12 = vcmask 695296   ;;  %vm520_vm13 = vcmask 703488   ;;  %vm501_vm14 = vcmask 711680   ;;  %vm482_vm15 = vcmask 719872  }
  0x14   : > { %s246_s6 = scalar_lea.vmem %s2098_s0, %s1234_s28  ;;  %s1319_s28 = smov 104  }
  0x15   : > { %v1189_v0 = vld [vmem:[%s246_s6 + $0x8] sm:$0xf]  ;;  %v1227_v1 = vld [vmem:[%s246_s6 + $0x18] sm:$0xf0]  ;;  %v1181_v2 = vld [vmem:[%s246_s6] sm:$0xf] }
  0x16   : > { %v1387_v3 = vor.u32 %v1227_v1, %v1189_v0  ;;  %v1226_v4 = vld [vmem:[%s246_s6 + $0x10] sm:$0xf0]  ;;  %v1197_v6 = vld [vmem:[%s246_s6 + $0x10] sm:$0xf]  ;;  %v1228_v7 = vld [vmem:[%s246_s6 + $0x20] sm:$0xf0] }
  0x17   : > { %v1389_v5 = vor.u32 %v1226_v4, %v1181_v2  ;;  %v1225_v8 = vld [vmem:[%s246_s6 + $0xc] sm:$0xf]  ;;  %v1191_v9 = vld [vmem:[%s246_s6 + $0x1c] sm:$0xf0]  ;;  %v1393_v10 = vor.u32 %v1228_v7, %v1197_v6  ;;  %v1224_v11 = vld [vmem:[%s246_s6 + $0x4] sm:$0xf] }
  0x18   : > { %305 = vrot.lane.b32.xlu1 %v1387_v3, %s1304_s7  ;;  %v1183_v12 = vld [vmem:[%s246_s6 + $0x14] sm:$0xf0]  ;;  %v1396_v13 = vor.u32 %v1225_v8, %v1191_v9  ;;  %s1320_s29 = smov 88   ;;  %s1176_s6 = sshll.u32 %s1366_s21, 2 }
  0x19   : > { %301 = vrot.lane.b32.xlu0 %v1389_v5, %s1304_s7  ;;  %309 = vrot.lane.b32.xlu2 %v1393_v10, %s1304_s7  ;;  %v1398_v14 = vor.u32 %v1224_v11, %v1183_v12  ;;  %p248_p8 = scmp.lt.s32.totalorder %s1176_s6, 7 }
  0x1b   : > { %s2109_s6 = smov (!%p248_p8, %s1176_s6), 7 }
  0x20   : > { %307 = vrot.lane.b32.xlu1 %v1396_v13, %s1304_s7 }
  0x21   : > { %303 = vrot.lane.b32.xlu0 %v1398_v14, %s1304_s7  ;;  %320 = vrot.lane.b32.xlu2 %v1389_v5, %s1305_s8 }
  0x28   : > { %324 = vrot.lane.b32.xlu1 %v1387_v3, %s1305_s8 }
  0x29   : > { %322 = vrot.lane.b32.xlu0 %v1398_v14, %s1305_s8  ;;  %326 = vrot.lane.b32.xlu2 %v1396_v13, %s1305_s8 }
  0x30   : > { %339 = vrot.lane.b32.xlu1 %v1389_v5, %s1306_s9 }
  0x31   : > { %328 = vrot.lane.b32.xlu0 %v1393_v10, %s1305_s8  ;;  %341 = vrot.lane.b32.xlu2 %v1398_v14, %s1306_s9 }
  0x38   : > { %345 = vrot.lane.b32.xlu1 %v1396_v13, %s1306_s9 }
  0x39   : > { %343 = vrot.lane.b32.xlu0 %v1387_v3, %s1306_s9  ;;  %347 = vrot.lane.b32.xlu2 %v1393_v10, %s1306_s9  ;;  %s250_s9 = scalar_lea.vmem %s2099_s1, %s2109_s6 }
  0x40   : > { %360 = vrot.lane.b32.xlu1 %v1398_v14, %s1307_s10 }
  0x41   : > { %358 = vrot.lane.b32.xlu0 %v1389_v5, %s1307_s10  ;;  %362 = vrot.lane.b32.xlu2 %v1387_v3, %s1307_s10 }
  0x48   : > { %366 = vrot.lane.b32.xlu1 %v1393_v10, %s1307_s10 }
  0x49   : > { %364 = vrot.lane.b32.xlu0 %v1396_v13, %s1307_s10  ;;  %377 = vrot.lane.b32.xlu2 %v1389_v5, %s1308_s11 }
  0x50   : > { %381 = vrot.lane.b32.xlu1 %v1387_v3, %s1308_s11 }
  0x51   : > { %379 = vrot.lane.b32.xlu0 %v1398_v14, %s1308_s11  ;;  %383 = vrot.lane.b32.xlu2 %v1396_v13, %s1308_s11 }
  0x58   : > { %396 = vrot.lane.b32.xlu1 %v1389_v5, %s1309_s12 }
  0x59   : > { %385 = vrot.lane.b32.xlu0 %v1393_v10, %s1308_s11  ;;  %398 = vrot.lane.b32.xlu2 %v1398_v14, %s1309_s12 }
  0x60   : > { %417 = vrot.lane.b32.xlu1 %v1398_v14, %s1310_s13 }
  0x61   : > { %415 = vrot.lane.b32.xlu0 %v1389_v5, %s1310_s13  ;;  %419 = vrot.lane.b32.xlu2 %v1387_v3, %s1310_s13 }
  0x68   : > { %586 = vrot.lane.b32.xlu1 %v1389_v5, %s1311_s14 }
  0x69   : > { %400 = vrot.lane.b32.xlu0 %v1387_v3, %s1309_s12  ;;  %588 = vrot.lane.b32.xlu2 %v1398_v14, %s1311_s14 }
  0x70   : > { %421 = vrot.lane.b32.xlu1 %v1396_v13, %s1310_s13 }
  0x71   : > { %590 = vrot.lane.b32.xlu0 %v1387_v3, %s1311_s14  ;;  %402 = vrot.lane.b32.xlu2 %v1396_v13, %s1309_s12 }
  0x73   : > { %v1436_v15 = vpop.permute.xlu2 %309 }
  0x78   : > { %436 = vrot.lane.b32.xlu1 %v1398_v14, %s1312_s15 }
  0x79   : > { %434 = vrot.lane.b32.xlu0 %v1389_v5, %s1312_s15  ;;  %438 = vrot.lane.b32.xlu2 %v1387_v3, %s1312_s15 }
  0x7b   : > { %v321_v16 = vpop.permute.xlu2 %320 }
  0x80   : > { %423 = vrot.lane.b32.xlu1 %v1393_v10, %s1310_s13  ;;  %s239_s13 = sand.u32 1, %s1294_s18   ;;  %s1233_s18 = sshll.u32 (%p1378_p4), %s1366_s21, 5 }
  0x81   : > { %592 = vrot.lane.b32.xlu0 %v1396_v13, %s1311_s14  ;;  %440 = vrot.lane.b32.xlu2 %v1396_v13, %s1312_s15 }
  0x83   : > { %v327_v19 = vpop.permute.xlu2 %326 }
  0x88   : > { %404 = vrot.lane.b32.xlu1 %v1393_v10, %s1309_s12  ;;  %s255_s12 = scalar_lea.vmem %s2100_s2, %s2109_s6 }
  0x89   : > { %567 = vrot.lane.b32.xlu0 %v1389_v5, %s1313_s16 }
  0x8a   : > { %v306_v17 = vpop.permute.xlu1 %305 }
  0x8b   : > { %v302_v18 = vpop.permute.xlu0 %301  ;;  %v342_v26 = vpop.permute.xlu2 %341 }
  0x90   : > { %569 = vrot.lane.b32.xlu1 %v1398_v14, %s1313_s16 }
  0x92   : > { %v308_v20 = vpop.permute.xlu1 %307 }
  0x93   : > { %v304_v21 = vpop.permute.xlu0 %303  ;;  %v1454_v22 = vsel %vm311_vm0, %v306_v17, %v308_v20  ;;  %v1457_v23 = vsel %vm311_vm0, %v308_v20, %v1436_v15  ;;  %v1471_v32 = vpop.permute.xlu2 %347 }
  0x94   : > { %v1459_v24 = vsel %vm311_vm0, %v302_v18, %v304_v21  ;;  %v1461_v25 = vsel %vm311_vm0, %v304_v21, %v306_v17  ;;  %vm463_vm0 = vcmask 850944  }
  0x98   : > { %548 = vrot.lane.b32.xlu1 %v1389_v5, %s1314_s17 }
  0x9a   : > { %v325_v27 = vpop.permute.xlu1 %324 }
  0x9b   : > { %v323_v28 = vpop.permute.xlu0 %322  ;;  %v1465_v29 = vsel %vm330_vm1, %v325_v27, %v327_v19  ;;  %v363_v38 = vpop.permute.xlu2 %362 }
  0x9c   : > { %v1467_v30 = vsel %vm330_vm1, %v321_v16, %v323_v28  ;;  %v1469_v31 = vsel %vm330_vm1, %v323_v28, %v325_v27 }
  0xa2   : > { %v340_v33 = vpop.permute.xlu1 %339 }
  0xa3   : > { %v1473_v34 = vpop.permute.xlu0 %328  ;;  %v1476_v35 = vsel %vm349_vm2, %v340_v33, %v342_v26  ;;  %v378_v45 = vpop.permute.xlu2 %377 }
  0xa4   : > { %v1479_v36 = vsel %vm330_vm1, %v327_v19, %v1473_v34  ;;  %vm799_vm1 = vcmask 130048  }
  0xaa   : > { %v346_v37 = vpop.permute.xlu1 %345 }
  0xab   : > { %v344_v39 = vpop.permute.xlu0 %343  ;;  %v1483_v40 = vsel %vm349_vm2, %v346_v37, %v1471_v32  ;;  %v384_v50 = vpop.permute.xlu2 %383 }
  0xac   : > { %v1486_v41 = vsel %vm349_vm2, %v344_v39, %v346_v37  ;;  %v1524_v4 = vsel %vm349_vm2, %v342_v26, %v344_v39 }
  0xb2   : > { %v361_v42 = vpop.permute.xlu1 %360 }
  0xb3   : > { %v359_v43 = vpop.permute.xlu0 %358  ;;  %v1489_v44 = vsel %vm368_vm3, %v361_v42, %v363_v38  ;;  %v399_v55 = vpop.permute.xlu2 %398 }
  0xb4   : > { %v369_v8 = vsel %vm368_vm3, %v359_v43, %v361_v42 }
  0xba   : > { %v367_v46 = vpop.permute.xlu1 %366 }
  0xbb   : > { %v365_v47 = vpop.permute.xlu0 %364  ;;  %v420_v59 = vpop.permute.xlu2 %419 }
  0xbc   : > { %v1492_v48 = vsel %vm368_vm3, %v363_v38, %v365_v47  ;;  %v1495_v49 = vsel %vm368_vm3, %v365_v47, %v367_v46 }
  0xc2   : > { %v382_v51 = vpop.permute.xlu1 %381 }
  0xc3   : > { %v380_v52 = vpop.permute.xlu0 %379  ;;  %v1498_v53 = vsel %vm387_vm4, %v382_v51, %v384_v50  ;;  %v589_v12 = vpop.permute.xlu2 %588 }
  0xc4   : > { %v1501_v54 = vsel %vm387_vm4, %v380_v52, %v382_v51  ;;  %v388_v7 = vsel %vm387_vm4, %v378_v45, %v380_v52 }
  0xc5   : > { %653 = vrot.lane.b32.xlu1 %v1501_v54, %s1315_s20 }
  0xca   : > { %v397_v56 = vpop.permute.xlu1 %396 }
  0xcb   : > { %v1505_v57 = vpop.permute.xlu0 %385  ;;  %v407_v0 = vsel %vm406_vm6, %v397_v56, %v399_v55  ;;  %v403_v20 = vpop.permute.xlu2 %402 }
  0xcc   : > { %v1509_v58 = vsel %vm387_vm4, %v384_v50, %v1505_v57 }
  0xcd   : > { %594 = vrot.lane.b32.xlu1 %v1393_v10, %s1311_s14  ;;  %s1174_s14 = sshll.u32 %s239_s13, 6 }
  0xd2   : > { %v418_v60 = vpop.permute.xlu1 %417 }
  0xd3   : > { %v416_v61 = vpop.permute.xlu0 %415  ;;  %v1514_v62 = vsel %vm425_vm5, %v418_v60, %v420_v59 }
  0xd4   : > { %673 = vrot.lane.b32.xlu0 %v1514_v62, %s1315_s20  ;;  %v426_v63 = vsel %vm425_vm5, %v416_v61, %v418_v60 }
  0xd5   : > { %510 = vrot.lane.b32.xlu1 %v1389_v5, %s1316_s23  ;;  %671 = vrot.lane.b32.xlu2 %v426_v63, %s1315_s20 }
  0xd6   : > { %803 = vmatpush.bf16.msra.mxu0 %v426_v63 }
  0xda   : > { %804 = vmatpush.bf16.msra.mxu0 %v407_v0  ;;  %v587_v1 = vpop.permute.xlu1 %586 }
  0xdb   : > { %v401_v2 = vpop.permute.xlu0 %400  ;;  %v597_v17 = vsel %vm596_vm7, %v587_v1, %v589_v12 }
  0xdc   : > { %v1527_v6 = vsel %vm406_vm6, %v399_v55, %v401_v2  ;;  %v1562_v26 = vsel %vm406_vm6, %v401_v2, %v403_v20 }
  0xdd   : > { %633 = vrot.lane.b32.xlu1 %v1524_v4, %s1315_s20  ;;  %661 = vrot.lane.b32.xlu2 %v407_v0, %s1315_s20 }
  0xde   : > { %805 = vmatpush.bf16.msra.mxu0 %v388_v7  ;;  %663 = vrot.lane.b32.xlu0 %v1527_v6, %s1315_s20 }
  0xe2   : > { %806 = vmatpush.bf16.msra.mxu0 %v369_v8  ;;  %v422_v9 = vpop.permute.xlu1 %421 }
  0xe3   : > { %v591_v16 = vpop.permute.xlu0 %590 }
  0xe4   : > { %v598_v19 = vsel %vm596_vm7, %v589_v12, %v591_v16 }
  0xe5   : > { %621 = vrot.lane.b32.xlu1 %v1467_v30, %s1315_s20  ;;  %550 = vrot.lane.b32.xlu2 %v1398_v14, %s1314_s17 }
  0xe6   : > { %807 = vmatpush.bf16.msra.mxu0 %v1476_v35  ;;  %651 = vrot.lane.b32.xlu0 %v388_v7, %s1315_s20 }
  0xea   : > { %808 = vmatpush.bf16.msra.mxu0 %v1467_v30  ;;  %v437_v11 = vpop.permute.xlu1 %436  ;;  %v1585_v30 = vsel %vm425_vm5, %v420_v59, %v422_v9 }
  0xeb   : > { %v435_v28 = vpop.permute.xlu0 %434 }
  0xec   : > { %v1610_v39 = vsel %vm444_vm8, %v435_v28, %v437_v11 }
  0xed   : > { %442 = vrot.lane.b32.xlu1 %v1393_v10, %s1312_s15  ;;  %529 = vrot.lane.b32.xlu2 %v1389_v5, %s1317_s24  ;;  %s2055_s15 = scalar_lea.vmem [#allocation2], %s1174_s14 }
  0xee   : > { %809 = vmatpush.bf16.msra.mxu0 %v1459_v24  ;;  %531 = vrot.lane.b32.xlu0 %v1398_v14, %s1317_s24 }
  0xf2   : > { %v1551_v18 = vpop.permute.xlu1 %423  ;;  %810 = vmatpush.bf16.msra.mxu0 %v1389_v5 }
  0xf3   : > { %v1595_v33 = vpop.permute.xlu0 %592  ;;  %v1626_v43 = vsel %vm425_vm5, %v422_v9, %v1551_v18 }
  0xf4   : > { %v599_v51 = vsel %vm596_vm7, %v591_v16, %v1595_v33 }
  0xf5   : > { %571 = vrot.lane.b32.xlu1 %v1387_v3, %s1313_s16  ;;  %641 = vrot.lane.b32.xlu2 %v597_v17, %s1315_s20 }
  0xf6   : > { %643 = vrot.lane.b32.xlu0 %v598_v19, %s1315_s20 }
  0xfa   : > { %v1559_v21 = vpop.permute.xlu1 %404 }
  0xfb   : > { %v1570_v27 = vsel %vm406_vm6, %v403_v20, %v1559_v21  ;;  %v568_v37 = vpop.permute.xlu0 %567 }
  0xfd   : > { %512 = vrot.lane.b32.xlu2 %v1398_v14, %s1316_s23  ;;  %665 = vrot.lane.b32.xlu1 %v1562_v26, %s1315_s20 }
  0xfe   : > { %631 = vrot.lane.b32.xlu0 %v1476_v35, %s1315_s20  ;;  %v1597_v35 = vpop.permute.xlu2 %438 }
 0x105   : > { %491 = vrot.lane.b32.xlu2 %v1389_v5, %s1318_s27  ;;  %453 = vrot.lane.b32.xlu1 %v1389_v5, %s1319_s28 }
 0x106   : > { %493 = vrot.lane.b32.xlu0 %v1398_v14, %s1318_s27  ;;  %v1622_v42 = vpop.permute.xlu2 %440 }
 0x107   : > { %v1692_v16 = vsel %vm444_vm8, %v1597_v35, %v1622_v42 }
 0x10d   : > { %623 = vrot.lane.b32.xlu2 %v1469_v31, %s1315_s20  ;;  %601 = vrot.lane.b32.xlu1 %v1389_v5, %s1315_s20 }
 0x10e   : > { %675 = vrot.lane.b32.xlu0 %v1585_v30, %s1315_s20 }
 0x115   : > { %472 = vrot.lane.b32.xlu2 %v1389_v5, %s1320_s29  ;;  %533 = vrot.lane.b32.xlu1 %v1387_v3, %s1317_s24  ;;  %v1605_v5 = vpop.permute.xlu1 %569 }
 0x116   : > { %474 = vrot.lane.b32.xlu0 %v1398_v14, %s1320_s29  ;;  %v578_v38 = vsel %vm577_vm9, %v568_v37, %v1605_v5 }
 0x117   : > { %817 = vmatpush.bf16.msra.mxu1 %v578_v38 }
 0x11d   : > { %611 = vrot.lane.b32.xlu2 %v1459_v24, %s1315_s20  ;;  %514 = vrot.lane.b32.xlu1 %v1387_v3, %s1316_s23  ;;  %v1614_v24 = vsel %vm444_vm8, %v437_v11, %v1597_v35  ;;  %v549_v45 = vpop.permute.xlu1 %548 }
 0x11e   : > { %613 = vrot.lane.b32.xlu0 %v1461_v25, %s1315_s20 }
 0x125   : > { %495 = vrot.lane.b32.xlu1 %v1387_v3, %s1318_s27  ;;  %681 = vrot.lane.b32.xlu2 %v1610_v39, %s1315_s20 }
 0x126   : > { %683 = vrot.lane.b32.xlu0 %v1614_v24, %s1315_s20 }
 0x12d   : > { %677 = vrot.lane.b32.xlu1 %v1626_v43, %s1315_s20  ;;  %455 = vrot.lane.b32.xlu2 %v1398_v14, %s1319_s28 }
 0x12e   : > { %552 = vrot.lane.b32.xlu0 %v1387_v3, %s1314_s17 }
 0x12f   : > { %v672_v46 = vpop.permute.xlu2 %671 }
 0x135   : > { %615 = vrot.lane.b32.xlu1 %v1454_v22, %s1315_s20  ;;  %603 = vrot.lane.b32.xlu2 %v1398_v14, %s1315_s20 }
 0x136   : > { %655 = vrot.lane.b32.xlu0 %v1498_v53, %s1315_s20 }
 0x137   : > { %v1640_v47 = vpop.permute.xlu1 %653  ;;  %v662_v50 = vpop.permute.xlu2 %661 }
 0x13d   : > { %457 = vrot.lane.b32.xlu1 %v1387_v3, %s1319_s28  ;;  %573 = vrot.lane.b32.xlu2 %v1396_v13, %s1313_s16 }
 0x13e   : > { %645 = vrot.lane.b32.xlu0 %v599_v51, %s1315_s20 }
 0x13f   : > { %v595_v52 = vpop.permute.xlu1 %594  ;;  %v1649_v55 = vpop.permute.xlu2 %550 }
 0x140   : > { %v559_v56 = vsel %vm558_vm10, %v549_v45, %v1649_v55 }
 0x141   : > { %818 = vmatpush.bf16.msra.mxu1 %v559_v56 }
 0x145   : > { %657 = vrot.lane.b32.xlu1 %v1509_v58, %s1315_s20  ;;  %554 = vrot.lane.b32.xlu2 %v1396_v13, %s1314_s17 }
 0x146   : > { %635 = vrot.lane.b32.xlu0 %v1486_v41, %s1315_s20  ;;  %v1659_v59 = vpop.permute.xlu0 %673 }
 0x147   : > { %v511_v60 = vpop.permute.xlu1 %510  ;;  %v530_v61 = vpop.permute.xlu2 %529  ;;  %v720_v63 = vsel %vm691_vm11, %v672_v46, %v1659_v59 }
 0x148   : > { %831 = vmatpush.bf16.msra.mxu2 %v720_v63 }
 0x14d   : > { %575 = vrot.lane.b32.xlu1 %v1393_v10, %s1313_s16  ;;  %535 = vrot.lane.b32.xlu2 %v1396_v13, %s1317_s24 }
 0x14e   : > { %625 = vrot.lane.b32.xlu0 %v1465_v29, %s1315_s20 }
 0x14f   : > { %v1669_v0 = vpop.permute.xlu1 %633  ;;  %v642_v1 = vpop.permute.xlu2 %641 }
 0x150   : > { %v1671_v2 = vpop.permute.xlu0 %663 }
 0x151   : > { %v716_v7 = vsel %vm691_vm11, %v662_v50, %v1671_v2 }
 0x152   : > { %832 = vmatpush.bf16.msra.mxu2 %v716_v7 }
 0x155   : > { %459 = vrot.lane.b32.xlu1 %v1396_v13, %s1319_s28  ;;  %476 = vrot.lane.b32.xlu2 %v1387_v3, %s1320_s29 }
 0x156   : > { %516 = vrot.lane.b32.xlu0 %v1396_v13, %s1316_s23 }
 0x157   : > { %v622_v8 = vpop.permute.xlu1 %621  ;;  %v1681_v9 = vpop.permute.xlu2 %512 }
 0x158   : > { %v652_v11 = vpop.permute.xlu0 %651  ;;  %v521_v28 = vsel %vm520_vm13, %v511_v60, %v1681_v9  ;;  %v600_v60 = vsel %vm596_vm7, %v1595_v33, %v595_v52 }
 0x159   : > { %v712_v12 = vsel %vm691_vm11, %v652_v11, %v1640_v47 }
 0x15a   : > { %833 = vmatpush.bf16.msra.mxu2 %v712_v12 }
 0x15d   : > { %659 = vrot.lane.b32.xlu1 %v1505_v57, %s1315_s20  ;;  %667 = vrot.lane.b32.xlu2 %v1570_v27, %s1315_s20 }
 0x15e   : > { %685 = vrot.lane.b32.xlu0 %v1692_v16, %s1315_s20 }
 0x15f   : > { %v1696_v17 = vpop.permute.xlu1 %442  ;;  %v492_v19 = vpop.permute.xlu2 %491 }
 0x160   : > { %v1698_v20 = vpop.permute.xlu0 %531 }
 0x161   : > { %v540_v57 = vsel %vm539_vm12, %v530_v61, %v1698_v20 }
 0x162   : > { %819 = vmatpush.bf16.msra.mxu1 %v540_v57 }
 0x165   : > { %649 = vrot.lane.b32.xlu1 %v595_v52, %s1315_s20  ;;  %497 = vrot.lane.b32.xlu2 %v1396_v13, %s1318_s27 }
 0x166   : > { %605 = vrot.lane.b32.xlu0 %v1387_v3, %s1315_s20  ;;  %820 = vmatpush.bf16.msra.mxu1 %v521_v28 }
 0x167   : > { %v1709_v35 = vpop.permute.xlu1 %571  ;;  %v1711_v37 = vpop.permute.xlu2 %623 }
 0x168   : > { %v1713_v38 = vpop.permute.xlu0 %643  ;;  %v579_v45 = vsel %vm577_vm9, %v1605_v5, %v1709_v35 }
 0x169   : > { %v708_v46 = vsel %vm691_vm11, %v642_v1, %v1713_v38  ;;  %873 = vmatpush.bf16.msrb.mxu0 %v579_v45 }
 0x16a   : > { %834 = vmatpush.bf16.msra.mxu2 %v708_v46 }
 0x16d   : > { %639 = vrot.lane.b32.xlu1 %v1471_v32, %s1315_s20  ;;  %679 = vrot.lane.b32.xlu2 %v1551_v18, %s1315_s20  ;;  %v700_v32 = vsel %vm691_vm11, %v622_v8, %v1711_v37 }
 0x16e   : > { %478 = vrot.lane.b32.xlu0 %v1396_v13, %s1320_s29 }
 0x16f   : > { %v473_v50 = vpop.permute.xlu2 %472  ;;  %v1726_v51 = vpop.permute.xlu1 %665 }
 0x170   : > { %v632_v56 = vpop.permute.xlu0 %631 }
 0x171   : > { %v704_v5 = vsel %vm691_vm11, %v632_v56, %v1669_v0  ;;  %v1788_v56 = vsel %vm444_vm8, %v1622_v42, %v1696_v17  ;;  %v1211_v42 = vld [vmem:[%s2101_s3 + $0x18] sm:$0xf0] }
 0x172   : > { %835 = vmatpush.bf16.msra.mxu2 %v704_v5 }
 0x175   : > { %607 = vrot.lane.b32.xlu1 %v1396_v13, %s1315_s20  ;;  %647 = vrot.lane.b32.xlu2 %v600_v60, %s1315_s20 }
 0x176   : > { %669 = vrot.lane.b32.xlu0 %v1559_v21, %s1315_s20  ;;  %836 = vmatpush.bf16.msra.mxu2 %v700_v32  ;;  %v1231_v32 = vld [vmem:[%s2101_s3 + $0xc] sm:$0xf0] }
 0x177   : > { %v612_v18 = vpop.permute.xlu2 %611  ;;  %v454_v61 = vpop.permute.xlu1 %453 }
 0x178   : > { %v1739_v63 = vpop.permute.xlu0 %493 }
 0x179   : > { %v502_v33 = vsel %vm501_vm14, %v492_v19, %v1739_v63 }
 0x17a   : > { %821 = vmatpush.bf16.msra.mxu1 %v502_v33 }
 0x17d   : > { %619 = vrot.lane.b32.xlu1 %v1436_v15, %s1315_s20  ;;  %556 = vrot.lane.b32.xlu2 %v1393_v10, %s1314_s17 }
 0x17e   : > { %637 = vrot.lane.b32.xlu0 %v1483_v40, %s1315_s20 }
 0x17f   : > { %v602_v21 = vpop.permute.xlu1 %601  ;;  %v682_v52 = vpop.permute.xlu2 %681 }
 0x180   : > { %v1749_v1 = vpop.permute.xlu0 %675 }
 0x181   : > { %v721_v46 = vsel %vm691_vm11, %v1659_v59, %v1749_v1  ;;  %v1230_v59 = vld [vmem:[%s2101_s3 + $0xc] sm:$0xf] }
 0x185   : > { %689 = vrot.lane.b32.xlu1 %v1696_v17, %s1315_s20  ;;  %537 = vrot.lane.b32.xlu2 %v1393_v10, %s1317_s24 }
 0x186   : > { %627 = vrot.lane.b32.xlu0 %v1479_v36, %s1315_s20 }
 0x187   : > { %v1757_v15 = vpop.permute.xlu1 %533  ;;  %v1759_v7 = vpop.permute.xlu2 %455 }
 0x188   : > { %v1761_v8 = vpop.permute.xlu0 %474  ;;  %v464_v12 = vsel %vm463_vm0, %v454_v61, %v1759_v7  ;;  %v1817_v61 = vor.u32 %v1230_v59, %v1211_v42 }
 0x189   : > { %v483_v11 = vsel %vm482_vm15, %v473_v50, %v1761_v8 }
 0x18a   : > { %822 = vmatpush.bf16.msra.mxu1 %v483_v11 }
 0x18d   : > { %518 = vrot.lane.b32.xlu2 %v1393_v10, %s1316_s23 }
 0x18e   : > { %617 = vrot.lane.b32.xlu0 %v1457_v23, %s1315_s20  ;;  %823 = vmatpush.bf16.msra.mxu1 %v464_v12 }
 0x18f   : > { %v1771_v19 = vpop.permute.xlu1 %514  ;;  %v1773_v57 = vpop.permute.xlu2 %603 }
 0x190   : > { %v1775_v28 = vpop.permute.xlu0 %613  ;;  %v692_v50 = vsel %vm691_vm11, %v602_v21, %v1773_v57 }
 0x191   : > { %v696_v45 = vsel %vm691_vm11, %v612_v18, %v1775_v28 }
 0x192   : > { %824 = vmatpush.bf16.msra.mxu1 %v1610_v39  ;;  %837 = vmatpush.bf16.msra.mxu2 %v696_v45  ;;  %v717_v39 = vsel %vm691_vm11, %v1671_v2, %v1726_v51  ;;  %v1201_v2 = vld [vmem:[%s2101_s3] sm:$0xf] }
 0x193   : > { %v1819_v33 = vor.u32 %v1231_v32, %v1201_v2  ;;  %v1321_v32 = vmov 0  }
 0x194   : > { %1279 = vset.pattern.permute.xlu0 %v1321_v32  ;;  %1278 = vset.pattern.permute.xlu2 %v1321_v32 }
 0x195   : > { %687 = vrot.lane.b32.xlu2 %v1788_v56, %s1315_s20  ;;  %811 = vmatmul.bf16.vlgmr.msra.gmra.mxu0 %v1819_v33 }
 0x196   : > { %887 = vmatpush.bf16.msrb.mxu1 %v721_v46  ;;  %499 = vrot.lane.b32.xlu0 %v1393_v10, %s1318_s27 }
 0x197   : > { %838 = vmatpush.bf16.msra.mxu2 %v692_v50  ;;  %v1803_v17 = vpop.permute.xlu1 %495  ;;  %v1805_v5 = vpop.permute.xlu2 %573  ;;  %v1203_v50 = vld [vmem:[%s2101_s3 + $0x10] sm:$0xf0] }
 0x198   : > { %v1807_v60 = vpop.permute.xlu0 %683 }
 0x199   : > { %v724_v18 = vsel %vm691_vm11, %v682_v52, %v1807_v60 }
 0x19a   : > { %888 = vmatpush.bf16.msrb.mxu1 %v717_v39  ;;  %852 = vmatpush.bf16.msra.mxu3 %v724_v18 }
 0x19d   : > { %629 = vrot.lane.b32.xlu2 %v1473_v34, %s1315_s20  ;;  %1215 = vmatmul.msk.bf16.vlgmr.msra.gmra.mxu3 %vm799_vm1, %v1817_v61  ;;  %v541_v34 = vsel %vm539_vm12, %v1698_v20, %v1757_v15 }
 0x19e   : > { %859 = vmatpush.bf16.msrb.mxu3 %v1514_v62  ;;  %480 = vrot.lane.b32.xlu0 %v1393_v10, %s1320_s29 }
 0x19f   : > { %v1830_v21 = vpop.permute.xlu1 %677  ;;  %v1832_v52 = vpop.permute.xlu2 %554 }
 0x1a0   : > { %v1834_v11 = vpop.permute.xlu0 %552 }
 0x1a1   : > { %v560_v62 = vsel %vm558_vm10, %v1649_v55, %v1834_v11 }
 0x1a2   : > { %860 = vmatpush.bf16.msrb.mxu3 %v1527_v6  ;;  %874 = vmatpush.bf16.msrb.mxu0 %v560_v62 }
 0x1a5   : > { %461 = vrot.lane.b32.xlu2 %v1393_v10, %s1319_s28 }
 0x1a6   : > { %861 = vmatpush.bf16.msrb.mxu3 %v1501_v54  ;;  %609 = vrot.lane.b32.xlu0 %v1393_v10, %s1315_s20  ;;  %v522_v54 = vsel %vm520_vm13, %v1681_v9, %v1771_v19  ;;  %v503_v10 = vsel %vm501_vm14, %v1739_v63, %v1803_v17  ;;  %v1232_v9 = vld [vmem:[%s2101_s3 + $0x14] sm:$0xf0]  ;;  %s1069_s20 = scalar_lea.vmem (%p1378_p4), %s2103_s5, %s1233_s18 }
 0x1a7   : > { %875 = vmatpush.bf16.msrb.mxu0 %v541_v34  ;;  %v1848_v6 = vpop.permute.xlu1 %615  ;;  %v1850_v12 = vpop.permute.xlu2 %535 }
 0x1a8   : > { %v656_v55 = vpop.permute.xlu0 %655 }
 0x1a9   : > { %v713_v45 = vsel %vm691_vm11, %v1640_v47, %v656_v55 }
 0x1aa   : > { %862 = vmatpush.bf16.msrb.mxu3 %v1489_v44  ;;  %889 = vmatpush.bf16.msrb.mxu1 %v713_v45 }
 0x1ab   : > { %876 = vmatpush.bf16.msrb.mxu0 %v522_v54 }
 0x1ae   : > { %863 = vmatpush.bf16.msrb.mxu3 %v1524_v4  ;;  %v1209_v4 = vld [vmem:[%s2101_s3 + $0x8] sm:$0xf] }
 0x1af   : > { %877 = vmatpush.bf16.msrb.mxu0 %v503_v10  ;;  %v1862_v44 = vpop.permute.xlu1 %457  ;;  %v1864_v20 = vpop.permute.xlu2 %476  ;;  %v1877_v63 = vor.u32 %v1232_v9, %v1209_v4 }
 0x1b0   : > { %v646_v46 = vpop.permute.xlu0 %645  ;;  %v484_v47 = vsel %vm482_vm15, %v1761_v8, %v1864_v20  ;;  %v1229_v8 = vld [vmem:[%s2101_s3 + $0x4] sm:$0xf] }
 0x1b1   : > { %839 = vmatmul.bf16.vlgmr.msra.gmra.mxu2 %v1877_v63  ;;  %v1890_v39 = vor.u32 %v1229_v8, %v1203_v50 }
 0x1b2   : > { %864 = vmatpush.bf16.msrb.mxu3 %v1469_v31  ;;  %v709_v31 = vsel %vm691_vm11, %v1713_v38, %v646_v46  ;;  %v465_v38 = vsel %vm463_vm0, %v1759_v7, %v1862_v44  ;;  %v722_v7 = vsel %vm691_vm11, %v1749_v1, %v1830_v21 }
 0x1b3   : > { %878 = vmatpush.bf16.msrb.mxu0 %v484_v47  ;;  %890 = vmatpush.bf16.msrb.mxu1 %v709_v31 }
 0x1b4   : > { %825 = vmatmul.bf16.vlgmr.msra.gmra.mxu1 %v1890_v39 }
 0x1b6   : > { %865 = vmatpush.bf16.msrb.mxu3 %v1461_v25 }
 0x1b7   : > { %879 = vmatpush.bf16.msrb.mxu0 %v465_v38  ;;  %v1893_v25 = vpop.permute.xlu1 %657  ;;  %v1895_v59 = vpop.permute.xlu2 %667 }
 0x1b8   : > { %v1899_v42 = vpop.permute.xlu0 %635 }
 0x1b9   : > { %v705_v2 = vsel %vm691_vm11, %v1669_v0, %v1899_v42 }
 0x1ba   : > { %866 = vmatpush.bf16.msrb.mxu3 %v1398_v14  ;;  %891 = vmatpush.bf16.msrb.mxu1 %v705_v2  ;;  %v718_v14 = vsel %vm691_vm11, %v1726_v51, %v1895_v59  ;;  %v697_v51 = vsel %vm691_vm11, %v1775_v28, %v1848_v6 }
 0x1bb   : > { %880 = vmatpush.bf16.msrb.mxu0 %v1614_v24 }
 0x1bd   : > { %867 = vmatmul.bf16.vlgmr.msrb.gmra.mxu3 %v1819_v33 }
 0x1be   : > { %915 = vmatpush.bf16.msra.mxu3 %v1585_v30  ;;  %881 = vmatmul.bf16.vlgmr.msrb.gmra.mxu0 %v1890_v39 }
 0x1bf   : > { %943 = vmatpush.bf16.msra.mxu0 %v722_v7  ;;  %v1914_v30 = vpop.permute.xlu1 %575  ;;  %v1916_v0 = vpop.permute.xlu2 %497 }
 0x1c0   : > { %v1919_v24 = vpop.permute.xlu0 %625 }
 0x1c1   : > { %v701_v1 = vsel %vm691_vm11, %v1711_v37, %v1919_v24  ;;  %v769_v37 = vld [vmem:[%s2102_s4 + $0x8] sm:$0xff] }
 0x1c2   : > { %916 = vmatpush.bf16.msra.mxu3 %v1562_v26  ;;  %892 = vmatpush.bf16.msrb.mxu1 %v701_v1  ;;  %v714_v26 = vsel %vm691_vm11, %v656_v55, %v1893_v25 }
 0x1c3   : > { %944 = vmatpush.bf16.msra.mxu0 %v718_v14  ;;  %777 = vperm.xlu0 %1279, %v769_v37  }
 0x1c6   : > { %917 = vmatpush.bf16.msra.mxu3 %v1498_v53  ;;  %893 = vmatpush.bf16.msrb.mxu1 %v697_v51 }
 0x1c7   : > { %945 = vmatpush.bf16.msra.mxu0 %v714_v26  ;;  %v1930_v53 = vpop.permute.xlu1 %459  ;;  %v680_v18 = vpop.permute.xlu2 %679 }
 0x1c8   : > { %v1936_v62 = vpop.permute.xlu0 %516 }
 0x1ca   : > { %918 = vmatpush.bf16.msra.mxu3 %v1492_v48 }
 0x1ce   : > { %919 = vmatpush.bf16.msra.mxu3 %v1486_v41  ;;  %v580_v41 = vsel %vm577_vm9, %v1709_v35, %v1805_v5 }
 0x1cf   : > { %v1939_v48 = vpop.permute.xlu2 %647  ;;  %v660_v55 = vpop.permute.xlu1 %659 }
 0x1d0   : > { %v686_v28 = vpop.permute.xlu0 %685  ;;  %v710_v34 = vsel %vm691_vm11, %v646_v46, %v1939_v48 }
 0x1d1   : > { %v725_v54 = vsel %vm691_vm11, %v1807_v60, %v686_v28  ;;  %946 = vmatpush.bf16.msra.mxu0 %v710_v34 }
 0x1d2   : > { %920 = vmatpush.bf16.msra.mxu3 %v1465_v29  ;;  %908 = vmatpush.bf16.msrb.mxu2 %v725_v54 }
 0x1d5   : > { %1216 = vmatmul.msk.bf16.vlgmr.msrb.gmra.mxu2 %vm799_vm1, %v1817_v61 }
 0x1d6   : > { %921 = vmatpush.bf16.msra.mxu3 %v1454_v22  ;;  %929 = vmatpush.bf16.msra.mxu2 %v580_v41  ;;  %v561_v22 = vsel %vm558_vm10, %v1834_v11, %v1832_v52  ;;  %v523_v11 = vsel %vm520_vm13, %v1771_v19, %v1936_v62  ;;  %v1322_v41 = vmov 0.0  }
 0x1d7   : > { %v557_v29 = vpop.permute.xlu2 %556  ;;  %v650_v35 = vpop.permute.xlu1 %649 }
 0x1d8   : > { %v1957_v60 = vpop.permute.xlu0 %605 }
 0x1da   : > { %922 = vmatpush.bf16.msra.mxu3 %v1387_v3  ;;  %930 = vmatpush.bf16.msra.mxu2 %v561_v22  ;;  %v693_v3 = vsel %vm691_vm11, %v1773_v57, %v1957_v60 }
 0x1db   : > { %894 = vmatpush.bf16.msrb.mxu1 %v693_v3 }
 0x1dd   : > { %923 = vmatmul.bf16.vlgmr.msra.gmra.mxu3 %v1819_v33 }
 0x1de   : > { %971 = vmatpush.bf16.msrb.mxu3 %v1626_v43  ;;  %v542_v43 = vsel %vm539_vm12, %v1757_v15, %v1850_v12  ;;  %895 = vmatmul.bf16.vlgmr.msrb.gmra.mxu1 %v1877_v63 }
 0x1df   : > { %931 = vmatpush.bf16.msra.mxu2 %v542_v43  ;;  %v538_v57 = vpop.permute.xlu2 %537  ;;  %v640_v15 = vpop.permute.xlu1 %639 }
 0x1e0   : > { %v1974_v45 = vpop.permute.xlu0 %478  ;;  %v543_v31 = vsel %vm539_vm12, %v1850_v12, %v538_v57 }
 0x1e1   : > { %v485_v19 = vsel %vm482_vm15, %v1864_v20, %v1974_v45 }
 0x1e2   : > { %972 = vmatpush.bf16.msrb.mxu3 %v1570_v27  ;;  %v768_v27 = vld [vmem:[%s2102_s4] sm:$0xff] }
 0x1e3   : > { %932 = vmatpush.bf16.msra.mxu2 %v523_v11  ;;  %772 = vperm.xlu2 %1278, %v768_v27  }
 0x1e6   : > { %973 = vmatpush.bf16.msrb.mxu3 %v1509_v58  ;;  %v504_v58 = vsel %vm501_vm14, %v1803_v17, %v1916_v0  ;;  %v723_v17 = vsel %vm691_vm11, %v1830_v21, %v680_v18 }
 0x1e7   : > { %933 = vmatpush.bf16.msra.mxu2 %v504_v58  ;;  %v519_v10 = vpop.permute.xlu2 %518 }
 0x1e8   : > { %v670_v46 = vpop.permute.xlu0 %669 }
 0x1ea   : > { %974 = vmatpush.bf16.msrb.mxu3 %v1495_v49  ;;  %v466_v49 = vsel %vm463_vm0, %v1862_v44, %v1930_v53 }
 0x1eb   : > { %934 = vmatpush.bf16.msra.mxu2 %v485_v19 }
 0x1ee   : > { %975 = vmatpush.bf16.msrb.mxu3 %v1483_v40  ;;  %v608_v40 = vpop.permute.xlu1 %607 }
 0x1ef   : > { %935 = vmatpush.bf16.msra.mxu2 %v466_v49  ;;  %v688_v47 = vpop.permute.xlu2 %687 }
 0x1f0   : > { %v726_v20 = vsel %vm691_vm11, %v686_v28, %v688_v47  ;;  %v638_v4 = vpop.permute.xlu0 %637 }
 0x1f1   : > { %v706_v44 = vsel %vm691_vm11, %v1899_v42, %v638_v4  ;;  %964 = vmatpush.bf16.msra.mxu1 %v726_v20  ;;  %v707_v8 = vsel %vm691_vm11, %v638_v4, %v640_v15  ;;  %v694_v42 = vsel %vm691_vm11, %v1957_v60, %v608_v40 }
 0x1f2   : > { %976 = vmatpush.bf16.msrb.mxu3 %v1479_v36  ;;  %v581_v36 = vsel %vm577_vm9, %v1805_v5, %v1914_v30  ;;  %947 = vmatpush.bf16.msra.mxu0 %v706_v44 }
 0x1f3   : > { %936 = vmatpush.bf16.msra.mxu2 %v1692_v16  ;;  %v562_v16 = vsel %vm558_vm10, %v1832_v52, %v557_v29  ;;  %v711_v52 = vsel %vm691_vm11, %v1939_v48, %v650_v35 }
 0x1f4   : > { %1217 = vmatmul.msk.bf16.vlgmr.msra.gmra.mxu1 %vm799_vm1, %v1817_v61 }
 0x1f5   : > { %985 = vmatpush.bf16.msrb.mxu1 %v581_v36 }
 0x1f6   : > { %977 = vmatpush.bf16.msrb.mxu3 %v1457_v23  ;;  %v719_v23 = vsel %vm691_vm11, %v1895_v59, %v670_v46  ;;  %937 = vmatmul.bf16.vlgmr.msra.gmra.mxu2 %v1890_v39  ;;  %v620_v21 = vpop.permute.xlu1 %619 }
 0x1f7   : > { %999 = vmatpush.bf16.msrb.mxu2 %v723_v17  ;;  %v630_v50 = vpop.permute.xlu2 %629 }
 0x1f8   : > { %v628_v5 = vpop.permute.xlu0 %627 }
 0x1f9   : > { %986 = vmatpush.bf16.msrb.mxu1 %v562_v16  ;;  %v702_v9 = vsel %vm691_vm11, %v1919_v24, %v628_v5  ;;  %v703_v59 = vsel %vm691_vm11, %v628_v5, %v630_v50 }
 0x1fa   : > { %978 = vmatpush.bf16.msrb.mxu3 %v1396_v13  ;;  %v715_v13 = vsel %vm691_vm11, %v1893_v25, %v660_v55  ;;  %948 = vmatpush.bf16.msra.mxu0 %v702_v9 }
 0x1fb   : > { %1000 = vmatpush.bf16.msrb.mxu2 %v719_v23 }
 0x1fd   : > { %979 = vmatmul.bf16.vlgmr.msrb.gmra.mxu3 %v1819_v33  ;;  %987 = vmatpush.bf16.msrb.mxu1 %v543_v31  ;;  %v524_v33 = vsel %vm520_vm13, %v1936_v62, %v519_v10 }
 0x1fe   : > { %v690_v12 = vpop.permute.xlu1 %689 }
 0x1ff   : > { %1001 = vmatpush.bf16.msrb.mxu2 %v715_v13  ;;  %v727_v2 = vsel %vm691_vm11, %v688_v47, %v690_v12  ;;  %v462_v1 = vpop.permute.xlu2 %461 }
 0x200   : > { %v618_v38 = vpop.permute.xlu0 %617  ;;  %v467_v26 = vsel %vm463_vm0, %v1930_v53, %v462_v1  ;;  %v266_v53 = vld [vmem:[%s255_s12] sm:$0xf] }
 0x201   : > { %988 = vmatpush.bf16.msrb.mxu1 %v524_v33  ;;  %v698_v25 = vsel %vm691_vm11, %v1848_v6, %v618_v38  ;;  %v699_v7 = vsel %vm691_vm11, %v618_v38, %v620_v21  ;;  %vm270_vm5 = vcmp.ge.s32.totalorder %v266_v53, 2  ;;  %vm272_vm7 = vcmp.lt.s32.totalorder %v266_v53, 18 }
 0x202   : > { %949 = vmatpush.bf16.msra.mxu0 %v698_v25 }
 0x203   : > { %1002 = vmatpush.bf16.msrb.mxu2 %v711_v52 }
 0x206   : > { %950 = vmatpush.bf16.msra.mxu0 %v694_v42 }
 0x207   : > { %1003 = vmatpush.bf16.msrb.mxu2 %v707_v8 }
 0x208   : > { %v500_v14 = vpop.permute.xlu0 %499 }
 0x209   : > { %951 = vmatmul.bf16.vlgmr.msra.gmra.mxu0 %v1877_v63  ;;  %v505_v6 = vsel %vm501_vm14, %v1916_v0, %v500_v14 }
 0x20a   : > { %1020 = vmatpush.bf16.msrb.mxu0 %v727_v2  ;;  %989 = vmatpush.bf16.msrb.mxu1 %v505_v6 }
 0x20b   : > { %1004 = vmatpush.bf16.msrb.mxu2 %v703_v59 }
 0x20f   : > { %1005 = vmatpush.bf16.msrb.mxu2 %v699_v7 }
 0x210   : > { %v481_v30 = vpop.permute.xlu0 %480 }
 0x211   : > { %v486_v24 = vsel %vm482_vm15, %v1974_v45, %v481_v30 }
 0x212   : > { %990 = vmatpush.bf16.msrb.mxu1 %v486_v24  ;;  %v812_v0 = vpop.f32.mrf.mxu0 }
 0x216   : > { %991 = vmatpush.bf16.msrb.mxu1 %v467_v26 }
 0x218   : > { %v610_v51 = vpop.permute.xlu0 %609 }
 0x219   : > { %v695_v32 = vsel %vm691_vm11, %v608_v40, %v610_v51  ;;  %1218 = vmatmul.msk.bf16.vlgmr.msrb.gmra.mxu0 %vm799_vm1, %v1817_v61  ;;  %v265_v61 = vld [vmem:[%s250_s9] sm:$0xf] }
 0x21a   : > { %992 = vmatpush.bf16.msrb.mxu1 %v1788_v56  ;;  %1006 = vmatpush.bf16.msrb.mxu2 %v695_v32  ;;  %vm267_vm2 = vcmp.ge.s32.totalorder %v265_v61, 2  ;;  %vm268_vm3 = vcmp.lt.s32.totalorder %v265_v61, 18  ;;  %v814_v18 = vpop.f32.mrf.mxu0 }
 0x21b   : > { %vm269_vm4 = vmand %vm267_vm2, %vm268_vm3 }
 0x21c   : > { %vm271_vm6 = vmand %vm269_vm4, %vm270_vm5 }
 0x21d   : > { %993 = vmatmul.bf16.vlgmr.msrb.gmra.mxu1 %v1890_v39  ;;  %1007 = vmatmul.bf16.vlgmr.msrb.gmra.mxu2 %v1877_v63  ;;  %vm273_vm8 = vmand %vm271_vm6, %vm272_vm7 }
 0x21e   : > { %v2052_v22 = vsel %vm273_vm8, 1.0, %v1322_v41 }
 0x21f   : > { %v1036_v11 = vperm.slane %v2052_v22, 0  ;;  %v1037_v23 = vperm.slane %v2052_v22, 1  ;;  %v1038_v24 = vperm.slane %v2052_v22, 2 }
 0x220   : > { %v854_v39 = vpop.f32.mrf.mxu3 }
 0x228   : > { %v856_v3 = vpop.f32.mrf.mxu3 }
 0x231   : > { %v826_v56 = vpop.f32.mrf.mxu1 }
 0x234   : > { %v840_v63 = vpop.f32.mrf.mxu2 }
 0x235   : > { %v2048_v48 = vpop.permute.xlu0 %777 }
 0x236   : > { %v815_v28 = vadd.f32 %v814_v18, %v2048_v48 }
 0x239   : > { %v828_v55 = vpop.f32.mrf.mxu1 }
 0x23a   : > { %v829_v54 = vadd.f32 %v828_v55, %v815_v28 }
 0x23b   : > { %v882_v10 = vpop.f32.mrf.mxu0 }
 0x23c   : > { %v842_v60 = vpop.f32.mrf.mxu2 }
 0x23d   : > { %v2045_v37 = vpop.permute.xlu2 %772  ;;  %v843_v43 = vadd.f32 %v842_v60, %v829_v54  ;;  %v1039_v60 = vperm.slane %v2052_v22, 3 }
 0x23e   : > { %v813_v62 = vadd.f32 %v812_v0, %v2045_v37 }
 0x23f   : > { %v857_v27 = vadd.f32 %v856_v3, %v843_v43 }
 0x240   : > { %v827_v34 = vadd.f32 %v826_v56, %v813_v62  ;;  %v868_v19 = vpop.f32.mrf.mxu3 }
 0x241   : > { %v1031_v45 = vmax.f32 %v857_v27, 0.0  ;;  %v869_v46 = vadd.f32 %v868_v19, %v2045_v37 }
 0x242   : > { %v841_v29 = vadd.f32 %v840_v63, %v827_v34 }
 0x243   : > { %v1048_v15 = vmul.f32 %v1036_v11, %v1031_v45  ;;  %v883_v49 = vadd.f32 %v882_v10, %v869_v46  ;;  %v884_v36 = vpop.f32.mrf.mxu0 }
 0x244   : > { %v855_v35 = vadd.f32 %v854_v39, %v841_v29 }
 0x245   : > { %1056 = vst [vmem:[%s2055_s15 + $0x20] sm:$0xff] %v1048_v15 }
 0x246   : > { %v1027_v57 = vmax.f32 %v855_v35, 0.0 }
 0x248   : > { %v1044_v58 = vmul.f32 %v1036_v11, %v1027_v57  ;;  %v870_v17 = vpop.f32.mrf.mxu3 }
 0x249   : > { %v871_v4 = vadd.f32 %v870_v17, %v2048_v48 }
 0x24a   : > { %1052 = vst [vmem:[%s2055_s15] sm:$0xff] %v1044_v58 }
 0x24b   : > { %v885_v13 = vadd.f32 %v884_v36, %v871_v4 }
 0x258   : > { %v910_v40 = vpop.f32.mrf.mxu2 }
 0x25b   : > { %v896_v47 = vpop.f32.mrf.mxu1 }
 0x25c   : > { %v897_v20 = vadd.f32 %v896_v47, %v883_v49  ;;  %v1090_v49 = vld [vmem:[%s2055_s15 + $0x20] sm:$0xff] (%p1378_p4) }
 0x25d   : > { %1091 = vst [vmem:[%s1069_s20 + $0x40] sm:$0xff] (%p1378_p4), %v1090_v49 }
 0x25e   : > { %v911_v44 = vadd.f32 %v910_v40, %v897_v20 }
 0x260   : > { %v1028_v16 = vmax.f32 %v911_v44, 0.0  ;;  %v912_v31 = vpop.f32.mrf.mxu2  ;;  %v924_v50 = vpop.f32.mrf.mxu3 }
 0x261   : > { %v925_v25 = vadd.f32 %v924_v50, %v2045_v37 }
 0x262   : > { %v1045_v5 = vmul.f32 %v1037_v23, %v1028_v16 }
 0x263   : > { %v898_v21 = vpop.f32.mrf.mxu1 }
 0x264   : > { %1053 = vst [vmem:[%s2055_s15 + $0x8] sm:$0xff] %v1045_v5  ;;  %v899_v9 = vadd.f32 %v898_v21, %v885_v13 }
 0x266   : > { %v913_v52 = vadd.f32 %v912_v31, %v899_v9 }
 0x268   : > { %v1032_v33 = vmax.f32 %v913_v52, 0.0  ;;  %v926_v59 = vpop.f32.mrf.mxu3 }
 0x269   : > { %v927_v14 = vadd.f32 %v926_v59, %v2048_v48 }
 0x26a   : > { %v1049_v8 = vmul.f32 %v1037_v23, %v1032_v33 }
 0x26b   : > { %v1084_v22 = vld [vmem:[%s2055_s15 + $0x8] sm:$0xff] (%p1378_p4) }
 0x26c   : > { %1057 = vst [vmem:[%s2055_s15 + $0x28] sm:$0xff] %v1049_v8 }
 0x26d   : > { %1085 = vst [vmem:[%s1069_s20 + $0x8] sm:$0xff] (%p1378_p4), %v1084_v22 }
 0x271   : > { %v966_v2 = vpop.f32.mrf.mxu1 }
 0x273   : > { %v1092_v17 = vld [vmem:[%s2055_s15 + $0x28] sm:$0xff] (%p1378_p4) }
 0x274   : > { %1093 = vst [vmem:[%s1069_s20 + $0x48] sm:$0xff] (%p1378_p4), %v1092_v17 }
 0x279   : > { %v938_v38 = vpop.f32.mrf.mxu2  ;;  %v968_v61 = vpop.f32.mrf.mxu1 }
 0x27a   : > { %v939_v12 = vadd.f32 %v938_v38, %v925_v25 }
 0x280   : > { %v980_v63 = vpop.f32.mrf.mxu3 }
 0x281   : > { %v940_v6 = vpop.f32.mrf.mxu2  ;;  %v981_v18 = vadd.f32 %v980_v63, %v2045_v37 }
 0x282   : > { %v941_v26 = vadd.f32 %v940_v6, %v927_v14 }
 0x286   : > { %v952_v42 = vpop.f32.mrf.mxu0 }
 0x287   : > { %v953_v7 = vadd.f32 %v952_v42, %v939_v12 }
 0x288   : > { %v982_v41 = vpop.f32.mrf.mxu3 }
 0x289   : > { %v967_v30 = vadd.f32 %v966_v2, %v953_v7  ;;  %v983_v43 = vadd.f32 %v982_v41, %v2048_v48  ;;  %v1082_v48 = vld [vmem:[%s2055_s15] sm:$0xff] (%p1378_p4) }
 0x28a   : > { %1083 = vst [vmem:[%s1069_s20] sm:$0xff] (%p1378_p4), %v1082_v48 }
 0x28b   : > { %v1029_v1 = vmax.f32 %v967_v30, 0.0 }
 0x28d   : > { %v1046_v51 = vmul.f32 %v1038_v24, %v1029_v1 }
 0x28e   : > { %v954_v32 = vpop.f32.mrf.mxu0 }
 0x28f   : > { %1054 = vst [vmem:[%s2055_s15 + $0x10] sm:$0xff] %v1046_v51  ;;  %v955_v0 = vadd.f32 %v954_v32, %v941_v26 }
 0x291   : > { %v969_v53 = vadd.f32 %v968_v61, %v955_v0 }
 0x293   : > { %v1033_v56 = vmax.f32 %v969_v53, 0.0 }
 0x295   : > { %v1050_v39 = vmul.f32 %v1038_v24, %v1033_v56 }
 0x296   : > { %v1022_v34 = vpop.f32.mrf.mxu0  ;;  %v1086_v10 = vld [vmem:[%s2055_s15 + $0x10] sm:$0xff] (%p1378_p4) }
 0x297   : > { %1058 = vst [vmem:[%s2055_s15 + $0x30] sm:$0xff] %v1050_v39 }
 0x298   : > { %1087 = vst [vmem:[%s1069_s20 + $0x10] sm:$0xff] (%p1378_p4), %v1086_v10 }
 0x29a   : > { %v994_v62 = vpop.f32.mrf.mxu1 }
 0x29b   : > { %v995_v28 = vadd.f32 %v994_v62, %v981_v18 }
 0x29e   : > { %v1024_v37 = vpop.f32.mrf.mxu0  ;;  %v1094_v40 = vld [vmem:[%s2055_s15 + $0x30] sm:$0xff] (%p1378_p4) }
 0x29f   : > { %1095 = vst [vmem:[%s1069_s20 + $0x50] sm:$0xff] (%p1378_p4), %v1094_v40 }
 0x2a0   : > { %v1008_v55 = vpop.f32.mrf.mxu2 }
 0x2a1   : > { %v1009_v54 = vadd.f32 %v1008_v55, %v995_v28 }
 0x2a2   : > { %v996_v3 = vpop.f32.mrf.mxu1 }
 0x2a3   : > { %v1023_v29 = vadd.f32 %v1022_v34, %v1009_v54  ;;  %v997_v27 = vadd.f32 %v996_v3, %v983_v43 }
 0x2a5   : > { %v1030_v35 = vmax.f32 %v1023_v29, 0.0 }
 0x2a7   : > { %v1047_v11 = vmul.f32 %v1039_v60, %v1030_v35 }
 0x2a8   : > { %v1010_v57 = vpop.f32.mrf.mxu2 }
 0x2a9   : > { %1055 = vst [vmem:[%s2055_s15 + $0x18] sm:$0xff] %v1047_v11  ;;  %v1011_v45 = vadd.f32 %v1010_v57, %v997_v27 }
 0x2ab   : > { %v1025_v58 = vadd.f32 %v1024_v37, %v1011_v45 }
 0x2ad   : > { %v1034_v15 = vmax.f32 %v1025_v58, 0.0  ;;  %1066 = sbr.rel (!%p1378_p4) target bundleno = 698 (0x2ba), region = 44 }
 0x2af   : > { %v1051_v19 = vmul.f32 %v1039_v60, %v1034_v15 }
 0x2b0   : > { %v1088_v46 = vld [vmem:[%s2055_s15 + $0x18] sm:$0xff] (%p1378_p4) }
 0x2b1   : > { %1059 = vst [vmem:[%s2055_s15 + $0x38] sm:$0xff] %v1051_v19 }
 0x2b2   : > { %1089 = vst [vmem:[%s1069_s20 + $0x18] sm:$0xff] %v1088_v46 }
 0x2b8   : > { %v1096_v47 = vld [vmem:[%s2055_s15 + $0x38] sm:$0xff] }
 0x2b9   : > { %1097 = vst [vmem:[%s1069_s20 + $0x58] sm:$0xff] %v1096_v47 }
 0x2ba PF: > { %p12_p9 = scmp.ge.s32.totalorder %s1368_s22, 4   ;;  %s2105_s18 = smov %s1298_s19 }
 0x2bb   : > { %s2106_s19 = smov %s1376_s25  ;;  %s2107_s20 = smov %s1368_s22 }
 0x2bc   :  { %14 = sbr.rel (!%p12_p9) target bundleno = 2 (0x2), region = 99 }

// kernel: _lambda_.4
= control target key start
LH: loop header
LB: loop body
LE: loop exit
PB: predicated region body
PF: predicated region fallthrough
CT: control target
= control target key end

     0   :  { %s1002_s18 = smov 0   ;;  %s1004_s19 = smov 0   ;;  %s1286_s0 = inlined_call_operand.vmem [shape: bf16[2,16,596], index: 0, kind: input, shape index: {}]   ;;  %s1287_s1 = inlined_call_operand.vmem [shape: s32[1,1024], index: 1, kind: input, shape index: {}]   ;;  %s1288_s2 = inlined_call_operand.vmem [shape: s32[1,1024], index: 2, kind: input, shape index: {}]   ;;  %s1289_s3 = inlined_call_operand.vmem [shape: bf16[16,144], index: 3, kind: input, shape index: {}]   ;;  %s1290_s4 = inlined_call_operand.vmem [shape: f32[16,1], index: 4, kind: input, shape index: {}]   ;;  %s1291_s5 = inlined_call_operand.vmem [shape: f32[16,1024], index: 5, kind: output, shape index: {}]  }
   0x1   :  { %s1006_s20 = smov 0  }
   0x2 LB: > { %s1015_s21 = sadd.s32 4294967295, %s960_s20   ;;  %s1017_s22 = sadd.s32 1, %s960_s20   ;;  %s960_s20 = sphi %s1006_s20, %s1295_s20   ;;  %s956_s19 = sphi %s1004_s19, %s1294_s19   ;;  %s952_s18 = sphi %s1002_s18, %s1293_s18  }
   0x3   : > { %s139_s23 = ssub.s32 %s960_s20, %s1017_s22  ;;  %s142_s24 = sadd.s32 1, %s956_s19 }
   0x4   : > { %p140_p0 = scmp.eq.s32.totalorder %s139_s23, 0  ;;  %p152_p1 = scmp.ne.s32.totalorder %s956_s19, %s952_s18 }
   0x5   : > { %p153_p2 = scmp.eq.s32.totalorder %s1015_s21, 1  ;;  %p850_p3 = scmp.ge.s32.totalorder %s960_s20, 1 }
   0x6   : > { %s1025_s25 = scalar_select %p140_p0, %s956_s19, %s142_s24  }
   0x7   : > { %p1027_p4 = por %p153_p2, %p152_p1  ;;  %p207_p5 = scmp.lt.s32.totalorder %s960_s20, 3 }
   0x9   : > { %p208_p6 = pnand %p850_p3, %p207_p5 }
   0xa   : > { %p242_p7 = scmp.lt.s32.totalorder (!%p208_p6), %s1015_s21, 1  ;;  %s962_s7 = smov (!%p208_p6), 88  }
   0xb   : > { %211 = sbr.rel (%p208_p6) target bundleno = 540 (0x21c), region = 40  ;;  %s963_s8 = smov (!%p208_p6), 87  }
   0xc   : > { %s964_s9 = smov (!%p208_p6), 106   ;;  %s965_s10 = smov (!%p208_p6), 107  }
   0xd   : > { %s966_s11 = smov (!%p208_p6), 108   ;;  %s967_s12 = smov (!%p208_p6), 126  }
   0xe   : > { %s968_s13 = smov (!%p208_p6), 127   ;;  %s969_s14 = smov (!%p208_p6), 86  }
   0xf   : > { %s239_s15 = sand.u32 (!%p208_p6), 1, %s952_s18  }
  0x10   : > { %s243_s27 = scalar_select %p242_p7, %s1015_s21, 1  ;;  %vm382_vm0 = vcmask 719872   ;;  %vm397_vm1 = vcmask 711680   ;;  %vm367_vm2 = vcmask 867328   ;;  %vm352_vm3 = vcmask 875520  }
  0x11   : > { %vm337_vm4 = vcmask 883712   ;;  %vm322_vm5 = vcmask 1031168   ;;  %vm307_vm6 = vcmask 1039360   ;;  %vm412_vm7 = vcmask 703488   ;;  %s851_s16 = sshll.u32 %s239_s15, 6  ;;  %s900_s18 = sshll.u32 (%p1027_p4), %s1015_s21, 5 }
  0x12   : > { %s901_s28 = smul.u32 40, %s243_s27  ;;  %vm588_vm8 = vcmask 130048   ;;  %s1252_s17 = scalar_lea.vmem [#allocation2], %s851_s16 }
  0x13   : > { %s746_s24 = scalar_lea.vmem (%p1027_p4), %s1291_s5, %s900_s18 }
  0x14   : > { %s1036_s6 = scalar_lea.vmem %s1286_s0, %s901_s28 }
  0x15   : > { %v866_v0 = vld [vmem:[%s1036_s6 + $0x8] sm:$0xf]  ;;  %v896_v1 = vld [vmem:[%s1036_s6 + $0x18] sm:$0xf0]  ;;  %v894_v2 = vld [vmem:[%s1036_s6 + $0xc] sm:$0xf] }
  0x16   : > { %v867_v3 = vor.u32 %v896_v1, %v866_v0  ;;  %v868_v4 = vld [vmem:[%s1036_s6 + $0x1c] sm:$0xf0]  ;;  %v893_v5 = vld [vmem:[%s1036_s6 + $0x4] sm:$0xf]  ;;  %v860_v6 = vld [vmem:[%s1036_s6 + $0x14] sm:$0xf0] }
  0x17   : > { %v871_v7 = vor.u32 %v894_v2, %v868_v4  ;;  %v863_v8 = vor.u32 %v893_v5, %v860_v6  ;;  %v858_v9 = vld [vmem:[%s1036_s6] sm:$0xf]  ;;  %v895_v10 = vld [vmem:[%s1036_s6 + $0x10] sm:$0xf0]  ;;  %v874_v12 = vld [vmem:[%s1036_s6 + $0x10] sm:$0xf] }
  0x18   : > { %376 = vrot.lane.b32.xlu2 %v867_v3, %s962_s7  ;;  %v859_v11 = vor.u32 %v895_v10, %v858_v9  ;;  %v897_v13 = vld [vmem:[%s1036_s6 + $0x20] sm:$0xf0] }
  0x19   : > { %393 = vrot.lane.b32.xlu1 %v871_v7, %s963_s8  ;;  %389 = vrot.lane.b32.xlu0 %v863_v8, %s963_s8  ;;  %v875_v14 = vor.u32 %v897_v13, %v874_v12 }
  0x20   : > { %378 = vrot.lane.b32.xlu2 %v871_v7, %s962_s7 }
  0x21   : > { %374 = vrot.lane.b32.xlu1 %v863_v8, %s962_s7  ;;  %391 = vrot.lane.b32.xlu0 %v867_v3, %s963_s8 }
  0x28   : > { %361 = vrot.lane.b32.xlu2 %v867_v3, %s964_s9 }
  0x29   : > { %359 = vrot.lane.b32.xlu1 %v863_v8, %s964_s9  ;;  %387 = vrot.lane.b32.xlu0 %v859_v11, %s963_s8 }
  0x30   : > { %344 = vrot.lane.b32.xlu2 %v863_v8, %s965_s10 }
  0x31   : > { %372 = vrot.lane.b32.xlu1 %v859_v11, %s962_s7  ;;  %363 = vrot.lane.b32.xlu0 %v871_v7, %s964_s9 }
  0x38   : > { %357 = vrot.lane.b32.xlu2 %v859_v11, %s964_s9 }
  0x39   : > { %348 = vrot.lane.b32.xlu1 %v871_v7, %s965_s10  ;;  %346 = vrot.lane.b32.xlu0 %v867_v3, %s965_s10 }
  0x40   : > { %331 = vrot.lane.b32.xlu2 %v867_v3, %s966_s11 }
  0x41   : > { %329 = vrot.lane.b32.xlu1 %v863_v8, %s966_s11  ;;  %395 = vrot.lane.b32.xlu0 %v875_v14, %s963_s8  ;;  %s853_s8 = sshll.u32 %s1015_s21, 2 }
  0x42   : > { %p248_p8 = scmp.lt.s32.totalorder %s853_s8, 7 }
  0x44   : > { %s1297_s8 = smov (!%p248_p8, %s853_s8), 7 }
  0x48   : > { %380 = vrot.lane.b32.xlu2 %v875_v14, %s962_s7 }
  0x49   : > { %342 = vrot.lane.b32.xlu1 %v859_v11, %s965_s10  ;;  %333 = vrot.lane.b32.xlu0 %v871_v7, %s966_s11 }
  0x50   : > { %318 = vrot.lane.b32.xlu2 %v871_v7, %s967_s12 }
  0x51   : > { %316 = vrot.lane.b32.xlu1 %v867_v3, %s967_s12  ;;  %314 = vrot.lane.b32.xlu0 %v863_v8, %s967_s12 }
  0x58   : > { %299 = vrot.lane.b32.xlu2 %v863_v8, %s968_s13 }
  0x59   : > { %365 = vrot.lane.b32.xlu1 %v875_v14, %s964_s9  ;;  %327 = vrot.lane.b32.xlu0 %v859_v11, %s966_s11 }
  0x60   : > { %312 = vrot.lane.b32.xlu2 %v859_v11, %s967_s12 }
  0x61   : > { %303 = vrot.lane.b32.xlu1 %v871_v7, %s968_s13  ;;  %301 = vrot.lane.b32.xlu0 %v867_v3, %s968_s13 }
  0x68   : > { %408 = vrot.lane.b32.xlu2 %v871_v7, %s969_s14 }
  0x69   : > { %406 = vrot.lane.b32.xlu1 %v867_v3, %s969_s14  ;;  %350 = vrot.lane.b32.xlu0 %v875_v14, %s965_s10 }
  0x70   : > { %335 = vrot.lane.b32.xlu2 %v875_v14, %s966_s11  ;;  %s250_s11 = scalar_lea.vmem %s1287_s1, %s1297_s8 }
  0x71   : > { %297 = vrot.lane.b32.xlu1 %v859_v11, %s968_s13  ;;  %410 = vrot.lane.b32.xlu0 %v875_v14, %s969_s14 }
  0x72   : > { %v377_v15 = vpop.permute.xlu2 %376 }
  0x78   : > { %320 = vrot.lane.b32.xlu2 %v875_v14, %s967_s12 }
  0x79   : > { %404 = vrot.lane.b32.xlu1 %v863_v8, %s969_s14  ;;  %402 = vrot.lane.b32.xlu0 %v859_v11, %s969_s14  ;;  %s255_s14 = scalar_lea.vmem %s1288_s2, %s1297_s8 }
  0x7a   : > { %v379_v16 = vpop.permute.xlu2 %378 }
  0x7b   : > { %v385_v31 = vsel %vm382_vm0, %v377_v15, %v379_v16 }
  0x81   : > { %305 = vrot.lane.b32.xlu0 %v875_v14, %s968_s13 }
  0x82   : > { %v362_v17 = vpop.permute.xlu2 %361 }
  0x8a   : > { %v345_v20 = vpop.permute.xlu2 %344 }
  0x8b   : > { %v394_v18 = vpop.permute.xlu1 %393  ;;  %v390_v19 = vpop.permute.xlu0 %389 }
  0x92   : > { %v358_v26 = vpop.permute.xlu2 %357 }
  0x93   : > { %v375_v21 = vpop.permute.xlu1 %374  ;;  %v392_v22 = vpop.permute.xlu0 %391 }
  0x94   : > { %v384_v23 = vsel %vm382_vm0, %v375_v21, %v377_v15  ;;  %v400_v24 = vsel %vm397_vm1, %v392_v22, %v394_v18  ;;  %v399_v25 = vsel %vm397_vm1, %v390_v19, %v392_v22 }
  0x95   : > { %492 = vrot.lane.b32.xlu0 %v384_v23, %s965_s10  ;;  %504 = vrot.lane.b32.xlu2 %v400_v24, %s965_s10 }
  0x96   : > { %502 = vrot.lane.b32.xlu1 %v399_v25, %s965_s10 }
  0x9a   : > { %v332_v32 = vpop.permute.xlu2 %331 }
  0x9b   : > { %v360_v27 = vpop.permute.xlu1 %359  ;;  %v388_v28 = vpop.permute.xlu0 %387 }
  0x9c   : > { %v369_v29 = vsel %vm367_vm2, %v360_v27, %v362_v17  ;;  %v398_v30 = vsel %vm397_vm1, %v388_v28, %v390_v19  ;;  %v368_v40 = vsel %vm367_vm2, %v358_v26, %v360_v27 }
  0x9d   : > { %482 = vrot.lane.b32.xlu0 %v369_v29, %s965_s10  ;;  %500 = vrot.lane.b32.xlu2 %v398_v30, %s965_s10 }
  0x9e   : > { %494 = vrot.lane.b32.xlu1 %v385_v31, %s965_s10 }
  0xa2   : > { %v381_v37 = vpop.permute.xlu2 %380 }
  0xa3   : > { %v373_v33 = vpop.permute.xlu1 %372  ;;  %v364_v34 = vpop.permute.xlu0 %363  ;;  %v386_v50 = vsel %vm382_vm0, %v379_v16, %v381_v37 }
  0xa4   : > { %v383_v35 = vsel %vm382_vm0, %v373_v33, %v375_v21  ;;  %v370_v36 = vsel %vm367_vm2, %v362_v17, %v364_v34 }
  0xa5   : > { %490 = vrot.lane.b32.xlu2 %v383_v35, %s965_s10 }
  0xa6   : > { %484 = vrot.lane.b32.xlu1 %v370_v36, %s965_s10 }
  0xaa   : > { %v1081_v45 = vpop.permute.xlu2 %318 }
  0xab   : > { %v349_v38 = vpop.permute.xlu1 %348  ;;  %v347_v39 = vpop.permute.xlu0 %346 }
  0xac   : > { %v1071_v41 = vsel %vm352_vm3, %v347_v39, %v349_v38  ;;  %v1074_v42 = vsel %vm352_vm3, %v345_v20, %v347_v39 }
  0xad   : > { %480 = vrot.lane.b32.xlu2 %v368_v40, %s965_s10  ;;  %472 = vrot.lane.b32.xlu0 %v1074_v42, %s965_s10 }
  0xae   : > { %474 = vrot.lane.b32.xlu1 %v1071_v41, %s965_s10 }
  0xb2   : > { %v300_v53 = vpop.permute.xlu2 %299 }
  0xb3   : > { %v330_v43 = vpop.permute.xlu1 %329  ;;  %v396_v44 = vpop.permute.xlu0 %395 }
  0xb4   : > { %v339_v46 = vsel %vm337_vm4, %v330_v43, %v332_v32  ;;  %v401_v47 = vsel %vm397_vm1, %v394_v18, %v396_v44 }
  0xb5   : > { %462 = vrot.lane.b32.xlu2 %v339_v46, %s965_s10  ;;  %506 = vrot.lane.b32.xlu0 %v401_v47, %s965_s10 }
  0xb6   : > { %508 = vrot.lane.b32.xlu1 %v396_v44, %s965_s10 }
  0xba   : > { %v313_v58 = vpop.permute.xlu2 %312 }
  0xbb   : > { %v343_v48 = vpop.permute.xlu1 %342  ;;  %v334_v49 = vpop.permute.xlu0 %333 }
  0xbc   : > { %v1090_v51 = vsel %vm352_vm3, %v343_v48, %v345_v20  ;;  %v340_v52 = vsel %vm337_vm4, %v332_v32, %v334_v49 }
  0xbd   : > { %496 = vrot.lane.b32.xlu2 %v386_v50, %s965_s10  ;;  %464 = vrot.lane.b32.xlu0 %v340_v52, %s965_s10 }
  0xbe   : > { %470 = vrot.lane.b32.xlu1 %v1090_v51, %s965_s10 }
  0xc2   : > { %v409_v63 = vpop.permute.xlu2 %408 }
  0xc3   : > { %v317_v54 = vpop.permute.xlu1 %316  ;;  %v315_v55 = vpop.permute.xlu0 %314 }
  0xc4   : > { %v325_v56 = vsel %vm322_vm5, %v317_v54, %v1081_v45  ;;  %v324_v57 = vsel %vm322_vm5, %v315_v55, %v317_v54  ;;  %v323_v2 = vsel %vm322_vm5, %v313_v58, %v315_v55 }
  0xc5   : > { %454 = vrot.lane.b32.xlu2 %v325_v56, %s965_s10  ;;  %498 = vrot.lane.b32.xlu0 %v381_v37, %s965_s10 }
  0xc6   : > { %452 = vrot.lane.b32.xlu1 %v324_v57, %s965_s10 }
  0xca   : > { %v336_v9 = vpop.permute.xlu2 %335 }
  0xcb   : > { %v366_v59 = vpop.permute.xlu1 %365  ;;  %v328_v60 = vpop.permute.xlu0 %327  ;;  %v341_v12 = vsel %vm337_vm4, %v334_v49, %v336_v9 }
  0xcc   : > { %v371_v61 = vsel %vm367_vm2, %v364_v34, %v366_v59  ;;  %v338_v62 = vsel %vm337_vm4, %v328_v60, %v330_v43 }
  0xcd   : > { %488 = vrot.lane.b32.xlu2 %v366_v59, %s965_s10  ;;  %460 = vrot.lane.b32.xlu0 %v338_v62, %s965_s10 }
  0xce   : > { %486 = vrot.lane.b32.xlu1 %v371_v61, %s965_s10 }
  0xd2   : > { %v321_v15 = vpop.permute.xlu2 %320 }
  0xd3   : > { %v304_v0 = vpop.permute.xlu1 %303  ;;  %v302_v1 = vpop.permute.xlu0 %301  ;;  %v326_v22 = vsel %vm322_vm5, %v1081_v45, %v321_v15 }
  0xd4   : > { %v310_v3 = vsel %vm307_vm6, %v302_v1, %v304_v0  ;;  %v309_v4 = vsel %vm307_vm6, %v300_v53, %v302_v1 }
  0xd5   : > { %450 = vrot.lane.b32.xlu2 %v323_v2, %s965_s10  ;;  %442 = vrot.lane.b32.xlu0 %v309_v4, %s965_s10  ;;  %v878_v4 = vld [vmem:[%s1289_s3] sm:$0xf] }
  0xd6   : > { %444 = vrot.lane.b32.xlu1 %v310_v3, %s965_s10 }
  0xdb   : > { %v407_v5 = vpop.permute.xlu1 %406  ;;  %v351_v6 = vpop.permute.xlu0 %350 }
  0xdc   : > { %v415_v7 = vsel %vm412_vm7, %v407_v5, %v409_v63  ;;  %v1116_v8 = vsel %vm352_vm3, %v349_v38, %v351_v6 }
  0xdd   : > { %514 = vrot.lane.b32.xlu2 %v415_v7, %s965_s10  ;;  %476 = vrot.lane.b32.xlu0 %v1116_v8, %s965_s10 }
  0xde   : > { %478 = vrot.lane.b32.xlu1 %v351_v6, %s965_s10 }
  0xe3   : > { %v298_v10 = vpop.permute.xlu1 %297  ;;  %v411_v11 = vpop.permute.xlu0 %410 }
  0xe4   : > { %v308_v13 = vsel %vm307_vm6, %v298_v10, %v300_v53  ;;  %v416_v14 = vsel %vm412_vm7, %v409_v63, %v411_v11 }
  0xe5   : > { %466 = vrot.lane.b32.xlu2 %v341_v12, %s965_s10  ;;  %516 = vrot.lane.b32.xlu0 %v416_v14, %s965_s10  ;;  %v898_v12 = vld [vmem:[%s1289_s3 + $0x4] sm:$0xf] }
  0xe6   : > { %440 = vrot.lane.b32.xlu1 %v308_v13, %s965_s10  ;;  %v880_v13 = vld [vmem:[%s1289_s3 + $0x8] sm:$0xf0] }
  0xeb   : > { %v405_v16 = vpop.permute.xlu1 %404  ;;  %v403_v17 = vpop.permute.xlu0 %402 }
  0xec   : > { %v414_v18 = vsel %vm412_vm7, %v405_v16, %v407_v5  ;;  %v413_v19 = vsel %vm412_vm7, %v403_v17, %v405_v16  ;;  %v899_v5 = vld [vmem:[%s1289_s3 + $0x4] sm:$0xf0]  ;;  %v970_v17 = vmov 0  }
  0xed   : > { %512 = vrot.lane.b32.xlu2 %v414_v18, %s965_s10  ;;  %468 = vrot.lane.b32.xlu0 %v336_v9, %s965_s10  ;;  %v1188_v7 = vor.u32 %v899_v5, %v878_v4 }
  0xee   : > { %510 = vrot.lane.b32.xlu1 %v413_v19, %s965_s10  ;;  %937 = vset.pattern.permute.xlu0 %v970_v17 }
  0xef   : > { %v1133_v20 = vpop.permute.xlu2 %504  ;;  %936 = vset.pattern.permute.xlu2 %v970_v17 }
  0xf3   : > { %v306_v21 = vpop.permute.xlu0 %305 }
  0xf4   : > { %v311_v23 = vsel %vm307_vm6, %v304_v0, %v306_v21 }
  0xf5   : > { %456 = vrot.lane.b32.xlu0 %v326_v22, %s965_s10  ;;  %446 = vrot.lane.b32.xlu2 %v311_v23, %s965_s10 }
  0xf6   : > { %458 = vrot.lane.b32.xlu1 %v321_v15, %s965_s10 }
  0xf7   : > { %v501_v24 = vpop.permute.xlu2 %500 }
  0xfd   : > { %448 = vrot.lane.b32.xlu0 %v306_v21, %s965_s10  ;;  %v420_v21 = vld [vmem:[%s1290_s4 + $0x8] sm:$0xff] }
  0xfe   : > { %518 = vrot.lane.b32.xlu1 %v411_v11, %s965_s10 }
  0xff   : > { %v491_v25 = vpop.permute.xlu2 %490 }
 0x105   : > { %428 = vperm.xlu0 %937, %v420_v21  }
 0x107   : > { %v481_v26 = vpop.permute.xlu2 %480  ;;  %v493_v27 = vpop.permute.xlu0 %492 }
 0x108   : > { %v503_v28 = vpop.permute.xlu1 %502  ;;  %v540_v31 = vsel %vm352_vm3, %v491_v25, %v493_v27 }
 0x109   : > { %v544_v29 = vsel %vm352_vm3, %v501_v24, %v503_v28  ;;  %v545_v30 = vsel %vm352_vm3, %v503_v28, %v1133_v20 }
 0x10a   : > { %592 = vmatpush.bf16.msra.mxu0 %v544_v29  ;;  %620 = vmatpush.bf16.msra.mxu2 %v545_v30 }
 0x10e   : > { %593 = vmatpush.bf16.msra.mxu0 %v540_v31 }
 0x10f   : > { %v463_v32 = vpop.permute.xlu2 %462  ;;  %v483_v33 = vpop.permute.xlu0 %482 }
 0x110   : > { %v495_v34 = vpop.permute.xlu1 %494  ;;  %v536_v35 = vsel %vm352_vm3, %v481_v26, %v483_v33 }
 0x111   : > { %v541_v36 = vsel %vm352_vm3, %v493_v27, %v495_v34 }
 0x112   : > { %594 = vmatpush.bf16.msra.mxu0 %v536_v35  ;;  %621 = vmatpush.bf16.msra.mxu2 %v541_v36 }
 0x117   : > { %v1149_v37 = vpop.permute.xlu2 %496 }
 0x118   : > { %v1151_v38 = vpop.permute.xlu1 %484  ;;  %v1155_v39 = vsel %vm352_vm3, %v495_v34, %v1149_v37 }
 0x119   : > { %v537_v40 = vsel %vm352_vm3, %v483_v33, %v1151_v38 }
 0x11a   : > { %622 = vmatpush.bf16.msra.mxu2 %v537_v40 }
 0x11f   : > { %v1159_v43 = vpop.permute.xlu2 %454  ;;  %v473_v44 = vpop.permute.xlu0 %472 }
 0x120   : > { %v1161_v45 = vpop.permute.xlu1 %474 }
 0x121   : > { %v533_v46 = vsel %vm352_vm3, %v473_v44, %v1161_v45 }
 0x122   : > { %623 = vmatpush.bf16.msra.mxu2 %v533_v46 }
 0x127   : > { %v489_v47 = vpop.permute.xlu2 %488  ;;  %v1165_v48 = vpop.permute.xlu0 %506 }
 0x128   : > { %v509_v49 = vpop.permute.xlu1 %508  ;;  %v546_v27 = vsel %vm352_vm3, %v1133_v20, %v1165_v48 }
 0x129   : > { %v547_v19 = vsel %vm352_vm3, %v1165_v48, %v509_v49  ;;  %v971_v49 = vmov 0.0  }
 0x12f   : > { %v451_v50 = vpop.permute.xlu2 %450  ;;  %v1167_v52 = vpop.permute.xlu0 %464 }
 0x130   : > { %v471_v53 = vpop.permute.xlu1 %470  ;;  %v529_v54 = vsel %vm352_vm3, %v463_v32, %v1167_v52 }
 0x131   : > { %v532_v55 = vsel %vm352_vm3, %v471_v53, %v473_v44  ;;  %624 = vmatpush.bf16.msra.mxu2 %v529_v54 }
 0x132   : > { %595 = vmatpush.bf16.msra.mxu0 %v532_v55 }
 0x137   : > { %v515_v56 = vpop.permute.xlu2 %514  ;;  %v499_v57 = vpop.permute.xlu0 %498 }
 0x138   : > { %v453_v58 = vpop.permute.xlu1 %452  ;;  %v543_v22 = vsel %vm352_vm3, %v1149_v37, %v499_v57 }
 0x139   : > { %v525_v59 = vsel %vm352_vm3, %v453_v58, %v1159_v43  ;;  %v524_v0 = vsel %vm352_vm3, %v451_v50, %v453_v58 }
 0x13a   : > { %625 = vmatpush.bf16.msra.mxu2 %v525_v59 }
 0x13f   : > { %v461_v60 = vpop.permute.xlu0 %460  ;;  %v1175_v63 = vpop.permute.xlu2 %466 }
 0x140   : > { %v487_v61 = vpop.permute.xlu1 %486  ;;  %v528_v62 = vsel %vm352_vm3, %v461_v60, %v463_v32 }
 0x141   : > { %596 = vmatpush.bf16.msra.mxu0 %v528_v62  ;;  %v539_v26 = vsel %vm352_vm3, %v487_v61, %v489_v47  ;;  %v538_v20 = vsel %vm352_vm3, %v1151_v38, %v487_v61  ;;  %v530_v38 = vsel %vm352_vm3, %v1167_v52, %v1175_v63 }
 0x145   : > { %597 = vmatpush.bf16.msra.mxu0 %v524_v0 }
 0x147   : > { %v443_v1 = vpop.permute.xlu0 %442  ;;  %v513_v6 = vpop.permute.xlu2 %512 }
 0x148   : > { %v1178_v2 = vpop.permute.xlu1 %444  ;;  %v549_v9 = vsel %vm352_vm3, %v513_v6, %v515_v56 }
 0x149   : > { %v521_v3 = vsel %vm352_vm3, %v443_v1, %v1178_v2 }
 0x14a   : > { %626 = vmatpush.bf16.msra.mxu2 %v521_v3 }
 0x14e   : > { %627 = vmatpush.bf16.msra.mxu2 %v1074_v42  ;;  %v883_v42 = vor.u32 %v898_v12, %v880_v13 }
 0x14f   : > { %v477_v10 = vpop.permute.xlu0 %476  ;;  %v447_v34 = vpop.permute.xlu2 %446 }
 0x150   : > { %v479_v11 = vpop.permute.xlu1 %478  ;;  %v534_v33 = vsel %vm352_vm3, %v1161_v45, %v477_v10  ;;  %v522_v44 = vsel %vm352_vm3, %v1178_v2, %v447_v34  ;;  %v266_v45 = vld [vmem:[%s255_s14] sm:$0xf] }
 0x151   : > { %628 = vmatmul.bf16.vlgmr.msra.gmra.mxu2 %v1188_v7  ;;  %v535_v28 = vsel %vm352_vm3, %v477_v10, %v479_v11  ;;  %vm270_vm12 = vcmp.ge.s32.totalorder %v266_v45, 2  ;;  %vm272_vm14 = vcmp.lt.s32.totalorder %v266_v45, 18 }
 0x152   : > { %641 = vmatpush.bf16.msrb.mxu2 %v549_v9 }
 0x157   : > { %v517_v14 = vpop.permute.xlu0 %516 }
 0x158   : > { %v441_v15 = vpop.permute.xlu1 %440  ;;  %v550_v16 = vsel %vm352_vm3, %v515_v56, %v517_v14 }
 0x159   : > { %v520_v18 = vsel %vm352_vm3, %v441_v15, %v443_v1  ;;  %669 = vmatpush.bf16.msra.mxu3 %v550_v16 }
 0x15a   : > { %598 = vmatpush.bf16.msra.mxu0 %v520_v18 }
 0x15c   : > { %886 = vmatmul.msk.bf16.vlgmr.msra.gmra.mxu3 %vm588_vm8, %v883_v42 }
 0x15d   : > { %676 = vmatpush.bf16.msrb.mxu3 %v547_v19 }
 0x15e   : > { %599 = vmatpush.bf16.msra.mxu0 %v1090_v51  ;;  %v419_v51 = vld [vmem:[%s1290_s4] sm:$0xff] }
 0x15f   : > { %v469_v23 = vpop.permute.xlu0 %468  ;;  %423 = vperm.xlu2 %936, %v419_v51  }
 0x160   : > { %v511_v24 = vpop.permute.xlu1 %510  ;;  %v531_v31 = vsel %vm352_vm3, %v1175_v63, %v469_v23 }
 0x161   : > { %677 = vmatpush.bf16.msrb.mxu3 %v543_v22  ;;  %v548_v25 = vsel %vm352_vm3, %v511_v24, %v513_v6  ;;  %600 = vmatmul.bf16.vlgmr.msra.gmra.mxu0 %v1188_v7 }
 0x162   : > { %885 = vmatmul.msk.bf16.vlgmr.msrb.gmra.mxu2 %vm588_vm8, %v883_v42  ;;  %613 = vmatpush.bf16.msra.mxu1 %v548_v25 }
 0x165   : > { %678 = vmatpush.bf16.msrb.mxu3 %v539_v26  ;;  %884 = vmatmul.msk.bf16.vlgmr.msra.gmra.mxu1 %vm588_vm8, %v883_v42 }
 0x166   : > { %648 = vmatpush.bf16.msrb.mxu1 %v546_v27 }
 0x167   : > { %v457_v29 = vpop.permute.xlu0 %456 }
 0x168   : > { %v459_v30 = vpop.permute.xlu1 %458  ;;  %v526_v40 = vsel %vm352_vm3, %v1159_v43, %v457_v29 }
 0x169   : > { %679 = vmatpush.bf16.msrb.mxu3 %v535_v28  ;;  %v527_v32 = vsel %vm352_vm3, %v457_v29, %v459_v30 }
 0x16a   : > { %649 = vmatpush.bf16.msrb.mxu1 %v1155_v39 }
 0x16d   : > { %680 = vmatpush.bf16.msrb.mxu3 %v531_v31 }
 0x16e   : > { %650 = vmatpush.bf16.msrb.mxu1 %v538_v20 }
 0x16f   : > { %v449_v35 = vpop.permute.xlu0 %448 }
 0x170   : > { %v519_v36 = vpop.permute.xlu1 %518  ;;  %v523_v37 = vsel %vm352_vm3, %v447_v34, %v449_v35 }
 0x171   : > { %681 = vmatpush.bf16.msrb.mxu3 %v527_v32  ;;  %v551_v39 = vsel %vm352_vm3, %v517_v14, %v519_v36 }
 0x172   : > { %651 = vmatpush.bf16.msrb.mxu1 %v534_v33  ;;  %697 = vmatpush.bf16.msrb.mxu0 %v551_v39 }
 0x175   : > { %682 = vmatpush.bf16.msrb.mxu3 %v523_v37  ;;  %887 = vmatmul.msk.bf16.vlgmr.msrb.gmra.mxu0 %vm588_vm8, %v883_v42 }
 0x176   : > { %652 = vmatpush.bf16.msrb.mxu1 %v530_v38 }
 0x177   : > { %v429_v57 = vpop.permute.xlu0 %428 }
 0x179   : > { %683 = vmatpush.bf16.msrb.mxu3 %v1116_v8  ;;  %v265_v8 = vld [vmem:[%s250_s11] sm:$0xf] }
 0x17a   : > { %653 = vmatpush.bf16.msrb.mxu1 %v526_v40  ;;  %vm267_vm9 = vcmp.ge.s32.totalorder %v265_v8, 2  ;;  %vm268_vm10 = vcmp.lt.s32.totalorder %v265_v8, 18 }
 0x17b   : > { %vm269_vm11 = vmand %vm267_vm9, %vm268_vm10 }
 0x17c   : > { %684 = vmatmul.bf16.vlgmr.msrb.gmra.mxu3 %v1188_v7  ;;  %vm271_vm13 = vmand %vm269_vm11, %vm270_vm12 }
 0x17d   : > { %vm273_vm15 = vmand %vm271_vm13, %vm272_vm14 }
 0x17e   : > { %654 = vmatpush.bf16.msrb.mxu1 %v522_v44  ;;  %v855_v50 = vsel %vm273_vm15, 1.0, %v971_v49 }
 0x17f   : > { %v713_v55 = vperm.slane %v855_v50, 0  ;;  %v714_v60 = vperm.slane %v855_v50, 1  ;;  %v716_v17 = vperm.slane %v855_v50, 3  ;;  %v715_v23 = vperm.slane %v855_v50, 2 }
 0x182   : > { %655 = vmatpush.bf16.msrb.mxu1 %v1071_v41 }
 0x185   : > { %656 = vmatmul.bf16.vlgmr.msrb.gmra.mxu1 %v1188_v7 }
 0x1b9   : > { %v424_v46 = vpop.permute.xlu2 %423 }
 0x1d4   : > { %v629_v43 = vpop.f32.mrf.mxu2 }
 0x1d5   : > { %v630_v52 = vadd.f32 %v629_v43, %v424_v46 }
 0x1dc   : > { %v631_v41 = vpop.f32.mrf.mxu2 }
 0x1dd   : > { %v632_v1 = vadd.f32 %v631_v41, %v429_v57 }
 0x1de   : > { %v601_v47 = vpop.f32.mrf.mxu0 }
 0x1df   : > { %v602_v48 = vadd.f32 %v601_v47, %v424_v46  ;;  %v671_v3 = vpop.f32.mrf.mxu3 }
 0x1e2   : > { %v615_v53 = vpop.f32.mrf.mxu1 }
 0x1e3   : > { %v616_v54 = vadd.f32 %v615_v53, %v602_v48 }
 0x1e5   : > { %v643_v56 = vpop.f32.mrf.mxu2  ;;  %v704_v59 = vmax.f32 %v616_v54, 0.0 }
 0x1e6   : > { %v644_v58 = vadd.f32 %v643_v56, %v630_v52  ;;  %v603_v61 = vpop.f32.mrf.mxu0 }
 0x1e7   : > { %v604_v63 = vadd.f32 %v603_v61, %v429_v57  ;;  %v721_v0 = vmul.f32 %v713_v55, %v704_v59  ;;  %v673_v13 = vpop.f32.mrf.mxu3 }
 0x1e8   : > { %v705_v62 = vmax.f32 %v644_v58, 0.0 }
 0x1e9   : > { %729 = vst [vmem:[%s1252_s17] sm:$0xff] %v721_v0 }
 0x1ea   : > { %v722_v2 = vmul.f32 %v714_v60, %v705_v62  ;;  %v617_v4 = vpop.f32.mrf.mxu1 }
 0x1eb   : > { %v618_v5 = vadd.f32 %v617_v4, %v604_v63 }
 0x1ec   : > { %730 = vst [vmem:[%s1252_s17 + $0x8] sm:$0xff] %v722_v2 }
 0x1ed   : > { %v645_v6 = vpop.f32.mrf.mxu2  ;;  %v708_v7 = vmax.f32 %v618_v5, 0.0 }
 0x1ee   : > { %v646_v9 = vadd.f32 %v645_v6, %v632_v1 }
 0x1ef   : > { %v725_v10 = vmul.f32 %v713_v55, %v708_v7 }
 0x1f0   : > { %v709_v11 = vmax.f32 %v646_v9, 0.0  ;;  %v759_v36 = vld [vmem:[%s1252_s17] sm:$0xff] (%p1027_p4) }
 0x1f1   : > { %733 = vst [vmem:[%s1252_s17 + $0x20] sm:$0xff] %v725_v10 }
 0x1f2   : > { %v726_v12 = vmul.f32 %v714_v60, %v709_v11  ;;  %v699_v14 = vpop.f32.mrf.mxu0  ;;  %760 = vst [vmem:[%s746_s24] sm:$0xff] (%p1027_p4), %v759_v36 }
 0x1f3   : > { %v761_v37 = vld [vmem:[%s1252_s17 + $0x8] sm:$0xff] (%p1027_p4) }
 0x1f4   : > { %734 = vst [vmem:[%s1252_s17 + $0x28] sm:$0xff] %v726_v12 }
 0x1f5   : > { %762 = vst [vmem:[%s746_s24 + $0x8] sm:$0xff] (%p1027_p4), %v761_v37 }
 0x1f8   : > { %v767_v40 = vld [vmem:[%s1252_s17 + $0x20] sm:$0xff] (%p1027_p4) }
 0x1f9   : > { %768 = vst [vmem:[%s746_s24 + $0x40] sm:$0xff] (%p1027_p4), %v767_v40 }
 0x1fa   : > { %v701_v28 = vpop.f32.mrf.mxu0 }
 0x1fb   : > { %v769_v44 = vld [vmem:[%s1252_s17 + $0x28] sm:$0xff] (%p1027_p4) }
 0x1fc   : > { %770 = vst [vmem:[%s746_s24 + $0x48] sm:$0xff] (%p1027_p4), %v769_v44 }
 0x1ff   : > { %v685_v15 = vpop.f32.mrf.mxu3 }
 0x200   : > { %v686_v16 = vadd.f32 %v685_v15, %v424_v46 }
 0x202   : > { %v700_v42 = vadd.f32 %v699_v14, %v686_v16  ;;  %v657_v18 = vpop.f32.mrf.mxu1 }
 0x203   : > { %v658_v19 = vadd.f32 %v657_v18, %v424_v46 }
 0x204   : > { %v707_v21 = vmax.f32 %v700_v42, 0.0 }
 0x205   : > { %v672_v22 = vadd.f32 %v671_v3, %v658_v19 }
 0x206   : > { %v724_v24 = vmul.f32 %v716_v17, %v707_v21 }
 0x207   : > { %v706_v25 = vmax.f32 %v672_v22, 0.0  ;;  %v687_v26 = vpop.f32.mrf.mxu3 }
 0x208   : > { %732 = vst [vmem:[%s1252_s17 + $0x18] sm:$0xff] %v724_v24  ;;  %v688_v27 = vadd.f32 %v687_v26, %v429_v57 }
 0x209   : > { %v723_v51 = vmul.f32 %v715_v23, %v706_v25 }
 0x20a   : > { %v702_v29 = vadd.f32 %v701_v28, %v688_v27  ;;  %v659_v30 = vpop.f32.mrf.mxu1 }
 0x20b   : > { %731 = vst [vmem:[%s1252_s17 + $0x10] sm:$0xff] %v723_v51  ;;  %v660_v31 = vadd.f32 %v659_v30, %v429_v57 }
 0x20c   : > { %v711_v20 = vmax.f32 %v702_v29, 0.0 }
 0x20d   : > { %v674_v32 = vadd.f32 %v673_v13, %v660_v31 }
 0x20e   : > { %v728_v33 = vmul.f32 %v716_v17, %v711_v20 }
 0x20f   : > { %v710_v34 = vmax.f32 %v674_v32, 0.0  ;;  %743 = sbr.rel (!%p1027_p4) target bundleno = 540 (0x21c), region = 44  ;;  %v765_v38 = vld [vmem:[%s1252_s17 + $0x18] sm:$0xff] (%p1027_p4) }
 0x210   : > { %736 = vst [vmem:[%s1252_s17 + $0x38] sm:$0xff] %v728_v33 }
 0x211   : > { %v727_v35 = vmul.f32 %v715_v23, %v710_v34  ;;  %766 = vst [vmem:[%s746_s24 + $0x18] sm:$0xff] (%p1027_p4), %v765_v38 }
 0x212   : > { %v763_v39 = vld [vmem:[%s1252_s17 + $0x10] sm:$0xff] (%p1027_p4) }
 0x213   : > { %735 = vst [vmem:[%s1252_s17 + $0x30] sm:$0xff] %v727_v35 }
 0x214   : > { %764 = vst [vmem:[%s746_s24 + $0x10] sm:$0xff] %v763_v39 }
 0x217   : > { %v773_v43 = vld [vmem:[%s1252_s17 + $0x38] sm:$0xff] }
 0x218   : > { %774 = vst [vmem:[%s746_s24 + $0x58] sm:$0xff] %v773_v43 }
 0x21a   : > { %v771_v8 = vld [vmem:[%s1252_s17 + $0x30] sm:$0xff] }
 0x21b   : > { %772 = vst [vmem:[%s746_s24 + $0x50] sm:$0xff] %v771_v8 }
 0x21c PF: > { %p12_p9 = scmp.ge.s32.totalorder %s1017_s22, 4   ;;  %s1293_s18 = smov %s956_s19 }
 0x21d   : > { %s1294_s19 = smov %s1025_s25  ;;  %s1295_s20 = smov %s1017_s22 }
 0x21e   :  { %14 = sbr.rel (!%p12_p9) target bundleno = 2 (0x2), region = 99 }

// kernel: _lambda_.3
= control target key start
LH: loop header
LB: loop body
LE: loop exit
PB: predicated region body
PF: predicated region fallthrough
CT: control target
= control target key end

     0   :  { %s2771_s13 = smov 0   ;;  %s2773_s14 = smov 0   ;;  %s4464_s0 = inlined_call_operand.vmem [shape: bf16[2,16,596], index: 0, kind: input, shape index: {}]   ;;  %s4465_s1 = inlined_call_operand.vmem [shape: s32[1,1024], index: 1, kind: input, shape index: {}]   ;;  %s4466_s2 = inlined_call_operand.vmem [shape: s32[1,1024], index: 2, kind: input, shape index: {}]   ;;  %s4467_s3 = inlined_call_operand.vmem [shape: bf16[48,16], index: 3, kind: input, shape index: {}]   ;;  %s4468_s4 = inlined_call_operand.vmem [shape: f32[48,1], index: 4, kind: input, shape index: {}]   ;;  %s4469_s5 = inlined_call_operand.vmem [shape: bf16[16,16], index: 5, kind: input, shape index: {}]   ;;  %s4470_s6 = inlined_call_operand.vmem [shape: f32[16,1], index: 6, kind: input, shape index: {}]   ;;  %s4471_s7 = inlined_call_operand.vmem [shape: f32[16,1024], index: 7, kind: output, shape index: {0}]   ;;  %s4472_s8 = inlined_call_operand.vmem [shape: f32[16,1024], index: 8, kind: output, shape index: {1}]   ;;  %s4473_s9 = inlined_call_operand.vmem [shape: f32[16,1024], index: 9, kind: output, shape index: {2}]   ;;  %s4474_s10 = inlined_call_operand.vmem [shape: f32[16,1024], index: 10, kind: output, shape index: {3}]  }
   0x1   :  { %s2775_s15 = smov 0  }
   0x2 LB: > { %s2784_s16 = sadd.s32 4294967295, %s2695_s15   ;;  %s2786_s17 = sadd.s32 1, %s2695_s15   ;;  %s2695_s15 = sphi %s2775_s15, %s4657_s15   ;;  %s2691_s14 = sphi %s2773_s14, %s4656_s14   ;;  %s2687_s13 = sphi %s2771_s13, %s4655_s13  }
   0x3   : > { %s187_s18 = ssub.s32 %s2695_s15, %s2786_s17  ;;  %s190_s19 = sadd.s32 1, %s2691_s14 }
   0x4   : > { %p188_p0 = scmp.eq.s32.totalorder %s187_s18, 0  ;;  %p200_p1 = scmp.ne.s32.totalorder %s2691_s14, %s2687_s13 }
   0x5   : > { %p201_p2 = scmp.eq.s32.totalorder %s2784_s16, 1  ;;  %p2333_p3 = scmp.ge.s32.totalorder %s2695_s15, 1 }
   0x6   : > { %s2794_s20 = scalar_select %p188_p0, %s2691_s14, %s190_s19  }
   0x7   : > { %p2796_p4 = por %p201_p2, %p200_p1  ;;  %p339_p5 = scmp.lt.s32.totalorder %s2695_s15, 3 }
   0x9   : > { %p340_p6 = pnand %p2333_p3, %p339_p5 }
   0xa   : > { %p396_p7 = scmp.lt.s32.totalorder (!%p340_p6), %s2784_s16, 1  ;;  %s2339_s28 = sshll.u32 (!%p340_p6), %s2784_s16, 2 }
   0xb   : > { %343 = sbr.rel (%p340_p6) target bundleno = 706 (0x2c2), region = 48  ;;  %p402_p8 = scmp.lt.s32.totalorder (!%p340_p6), %s2339_s28, 7 }
   0xc   : > { %s2699_s18 = smov (!%p340_p6), 21   ;;  %s2700_s19 = smov (!%p340_p6), 22  }
   0xd   : > { %s2701_s22 = smov (!%p340_p6), 23   ;;  %s2702_s23 = smov (!%p340_p6), 41  }
   0xe   : > { %s2703_s24 = smov (!%p340_p6), 42   ;;  %s2704_s25 = smov (!%p340_p6), 43  }
   0xf   : > { %s2705_s27 = smov (!%p340_p6), 61   ;;  %s2707_s11 = smov (!%p340_p6), 63  }
  0x10   : > { %v444_v0 = vld [vmem:[%s4468_s4 + $0x10] sm:$0xff]  ;;  %v442_v1 = vld [vmem:[%s4468_s4] sm:$0xff]  ;;  %v2697_v2 = vmov 0   ;;  %s397_s29 = scalar_select %p396_p7, %s2784_s16, 1  ;;  %v445_v4 = vld [vmem:[%s4468_s4 + $0x18] sm:$0xff] }
  0x11   : > { %2466 = vset.pattern.permute.xlu1 %v2697_v2  ;;  %2465 = vset.pattern.permute.xlu0 %v2697_v2  ;;  %v446_v3 = vld [vmem:[%s4468_s4 + $0x20] sm:$0xff]  ;;  %s4659_s28 = smov (!%p402_p8, %s2339_s28), 7  ;;  %v443_v5 = vld [vmem:[%s4468_s4 + $0x8] sm:$0xff]  ;;  %v3146_v17 = vunpack.c.h.b16 %v2697_v2  ;;  %s2712_s12 = smov 106  }
  0x12   : > { %460 = vperm.xlu1 %2466, %v444_v0   ;;  %450 = vperm.xlu0 %2465, %v442_v1   ;;  %s2421_s30 = smul.u32 40, %s397_s29  ;;  %s2829_s26 = scalar_lea.vmem %s4465_s1, %s4659_s28  ;;  %v447_v7 = vld [vmem:[%s4468_s4 + $0x28] sm:$0xff] }
  0x13   : > { %2467 = vset.pattern.permute.xlu2 %v2697_v2  ;;  %v2841_v8 = vld [vmem:[%s2829_s26] sm:$0xf]  ;;  %s2706_s29 = smov 62  }
  0x14   : > { %470 = vperm.xlu2 %2467, %v446_v3   ;;  %s2818_s15 = scalar_lea.vmem %s4464_s0, %s2421_s30  ;;  %s2834_s30 = scalar_lea.vmem %s4466_s2, %s4659_s28  ;;  %v720_v11 = vadd.s32 4294967295, %v2841_v8  ;;  %v1473_v3 = vadd.s32 1, %v2841_v8 }
  0x15   : > { %v2356_v6 = vld [vmem:[%s2818_s15] sm:$0xf]  ;;  %v2410_v9 = vld [vmem:[%s2818_s15 + $0x10] sm:$0xf0]  ;;  %v2408_v12 = vld [vmem:[%s2818_s15 + $0x4] sm:$0xf] }
  0x16   : > { %v2845_v10 = vld [vmem:[%s2834_s30] sm:$0xf]  ;;  %v2358_v13 = vld [vmem:[%s2818_s15 + $0x14] sm:$0xf0]  ;;  %vm721_vm0 = vcmp.lt.s32.totalorder %v720_v11, 2  ;;  %vm722_vm1 = vcmp.ge.s32.totalorder %v720_v11, 18  ;;  %v2357_v19 = vor.u32 %v2410_v9, %v2356_v6 }
  0x17   : > { %v2851_v14 = vadd.s32 4294967295, %v2845_v10  ;;  %v2854_v15 = vadd.s32 1, %v2845_v10  ;;  %v2364_v16 = vld [vmem:[%s2818_s15 + $0x8] sm:$0xf]  ;;  %vm2857_vm2 = vmor %vm721_vm0, %vm722_vm1  ;;  %vm780_vm5 = vcmp.lt.s32.totalorder %v2845_v10, 2  ;;  %v2361_v20 = vor.u32 %v2408_v12, %v2358_v13  ;;  %s2698_s28 = smov 86  }
  0x18   : > { %v2411_v18 = vld [vmem:[%s2818_s15 + $0x18] sm:$0xf0]  ;;  %vm782_vm7 = vcmp.ge.s32.totalorder %v2845_v10, 18  ;;  %vm781_vm10 = vmor %vm2857_vm2, %vm780_vm5  ;;  %v2409_v23 = vld [vmem:[%s2818_s15 + $0xc] sm:$0xf]  ;;  %vm1059_vm1 = vcmp.lt.s32.totalorder %v2841_v8, 2 }
  0x19   : > { %vm4476_vm3 = vcmp.lt.s32.totalorder %v2851_v14, 2  ;;  %vm4477_vm4 = vcmp.ge.s32.totalorder %v2851_v14, 18  ;;  %vm4478_vm9 = vcmp.lt.s32.totalorder %v2854_v15, 2  ;;  %v2365_v22 = vor.u32 %v2411_v18, %v2364_v16  ;;  %vm783_vm12 = vmor %vm781_vm10, %vm782_vm7  ;;  %v2366_v26 = vld [vmem:[%s2818_s15 + $0x1c] sm:$0xf0]  ;;  %v2414_v11 = vld [vmem:[%s4467_s3 + $0x8] sm:$0xff] }
  0x1a   : > { %465 = vperm.xlu1 %2466, %v445_v4   ;;  %455 = vperm.xlu0 %2465, %v443_v5   ;;  %vm726_vm6 = vmor %vm2857_vm2, %vm4476_vm3  ;;  %vm4475_vm11 = vcmp.ge.s32.totalorder %v2854_v15, 18  ;;  %v784_v29 = vsel %vm783_vm12, 1, %v2697_v2  ;;  %v2372_v30 = vld [vmem:[%s2818_s15 + $0x10] sm:$0xf]  ;;  %v2412_v31 = vld [vmem:[%s2818_s15 + $0x20] sm:$0xf0]  ;;  %v2369_v36 = vor.u32 %v2409_v23, %v2366_v26 }
  0x1b   : > { %vm728_vm8 = vmor %vm726_vm6, %vm4477_vm4  ;;  %v785_v32 = vperm.slane %v784_v29, 0  ;;  %v786_v33 = vperm.slane %v784_v29, 1  ;;  %v2373_v37 = vor.u32 %v2412_v31, %v2372_v30  ;;  %v787_v44 = vperm.slane %v784_v29, 2 }
  0x1c   : > { %475 = vperm.xlu2 %2467, %v447_v7   ;;  %v729_v21 = vsel %vm728_vm8, 1, %v2697_v2  ;;  %vm921_vm13 = vmor %vm2857_vm2, %vm4478_vm9  ;;  %vm1060_vm2 = vcmp.ge.s32.totalorder %v2841_v8, 18  ;;  %v788_v45 = vperm.slane %v784_v29, 3 }
  0x1d   : > { %v730_v24 = vperm.slane %v729_v21, 0  ;;  %v731_v25 = vperm.slane %v729_v21, 1  ;;  %v732_v27 = vperm.slane %v729_v21, 2  ;;  %v733_v28 = vperm.slane %v729_v21, 3  ;;  %vm923_vm14 = vmor %vm921_vm13, %vm4475_vm11  ;;  %v3154_v21 = vld [vmem:[%s2818_s15 + $0x1c] sm:$0xff] }
  0x1e   : > { %v924_v40 = vsel %vm923_vm14, 1, %v2697_v2  ;;  %vm2918_vm12 = vcmp.eq.s32.totalorder %v785_v32, 1  ;;  %vm2922_vm13 = vcmp.eq.s32.totalorder %v786_v33, 1  ;;  %vm2926_vm11 = vmor %vm1059_vm1, %vm1060_vm2  ;;  %vm2947_vm2 = vcmp.eq.s32.totalorder %v787_v44, 1 }
  0x1f   : > { %vm2895_vm15 = vcmp.eq.s32.totalorder %v730_v24, 1  ;;  %vm2899_vm0 = vcmp.eq.s32.totalorder %v731_v25, 1  ;;  %vm2905_vm6 = vcmp.eq.s32.totalorder %v732_v27, 1  ;;  %vm2909_vm8 = vcmp.eq.s32.totalorder %v733_v28, 1  ;;  %vm1062_vm14 = vmor %vm2926_vm11, %vm4476_vm3 }
  0x20   : > { %vm738_vm10 = vmpackc.low %vm2899_vm0, %vm2895_vm15  ;;  %v925_v47 = vperm.slane %v924_v40, 0  ;;  %v926_v48 = vperm.slane %v924_v40, 1  ;;  %v927_v49 = vperm.slane %v924_v40, 2  ;;  %v928_v50 = vperm.slane %v924_v40, 3 }
  0x21   : > { %vm739_vm15 = vmpackc.low %vm2909_vm8, %vm2905_vm6  ;;  %v740_v46 = vsel %vm738_vm10, 65537, %v2697_v2  ;;  %vm2951_vm10 = vcmp.eq.s32.totalorder %v788_v45, 1 }
  0x22   : > { %514 = vrot.lane.b32.xlu0 %v2357_v19, %s2698_s28  ;;  %516 = vrot.lane.b32.xlu1 %v2361_v20, %s2698_s28  ;;  %vm1063_vm1 = vmor %vm1062_vm14, %vm4477_vm4  ;;  %vm2962_vm4 = vcmp.eq.s32.totalorder %v925_v47, 1  ;;  %vm2966_vm9 = vcmp.eq.s32.totalorder %v926_v48, 1  ;;  %v741_v58 = vsel %vm739_vm15, 65537, %v2697_v2  ;;  %vm4520_vm15 = vcmp.lt.s32.totalorder %v2854_v15, 2 }
  0x23   : > { %vm1199_vm3 = vmor %vm2926_vm11, %vm780_vm5  ;;  %v1064_v53 = vsel %vm1063_vm1, 1, %v2697_v2  ;;  %vm2986_vm1 = vcmp.eq.s32.totalorder %v927_v49, 1 }
  0x24   : > { %518 = vrot.lane.b32.xlu2 %v2365_v22, %s2698_s28  ;;  %vm1200_vm14 = vmor %vm1199_vm3, %vm782_vm7  ;;  %v1065_v56 = vperm.slane %v1064_v53, 0  ;;  %v1066_v57 = vperm.slane %v1064_v53, 1  ;;  %v1067_v4 = vperm.slane %v1064_v53, 2  ;;  %v1068_v5 = vperm.slane %v1064_v53, 3 }
  0x25   : > { %vm794_vm0 = vmpackc.low %vm2951_vm10, %vm2947_vm2  ;;  %vm2990_vm2 = vcmp.eq.s32.totalorder %v928_v50, 1  ;;  %v1201_v62 = vsel %vm1200_vm14, 1, %v2697_v2  ;;  %vm4521_vm14 = vcmp.ge.s32.totalorder %v2854_v15, 18 }
  0x26   : > { %vm4511_vm3 = vmpackc.low %vm2922_vm13, %vm2918_vm12  ;;  %v796_v63 = vsel %vm794_vm0, 65537, %v2697_v2  ;;  %vm3004_vm12 = vcmp.eq.s32.totalorder %v1065_v56, 1  ;;  %vm3008_vm13 = vcmp.eq.s32.totalorder %v1066_v57, 1  ;;  %v1202_v6 = vperm.slane %v1201_v62, 0 }
  0x27   : > { %v795_v59 = vsel %vm4511_vm3, 65537, %v2697_v2  ;;  %vm933_vm6 = vmpackc.low %vm2966_vm9, %vm2962_vm4  ;;  %v1203_v7 = vperm.slane %v1201_v62, 1  ;;  %vm1474_vm3 = vcmp.lt.s32.totalorder %v1473_v3, 2  ;;  %v1204_v13 = vperm.slane %v1201_v62, 2 }
  0x28   : > { %vm934_vm8 = vmpackc.low %vm2990_vm2, %vm2986_vm1  ;;  %v935_v8 = vsel %vm933_vm6, 65537, %v2697_v2  ;;  %vm1475_vm1 = vcmp.ge.s32.totalorder %v1473_v3, 18  ;;  %vm3030_vm2 = vcmp.eq.s32.totalorder %v1067_v4, 1  ;;  %v1205_v16 = vperm.slane %v1201_v62, 3  ;;  %v2413_v62 = vld [vmem:[%s4467_s3] sm:$0xff] }
  0x29   : > { %vm1336_vm0 = vmor %vm2926_vm11, %vm4520_vm15  ;;  %v936_v9 = vsel %vm934_vm8, 65537, %v2697_v2  ;;  %vm3034_vm15 = vcmp.eq.s32.totalorder %v1068_v5, 1  ;;  %vm3042_vm4 = vcmp.eq.s32.totalorder %v1203_v7, 1 }
  0x2a   : > { %520 = vrot.lane.b32.xlu0 %v2369_v36, %s2698_s28  ;;  %522 = vrot.lane.b32.xlu1 %v2373_v37, %s2698_s28  ;;  %vm1073_vm10 = vmpackc.low %vm3008_vm13, %vm3004_vm12  ;;  %vm3038_vm12 = vcmp.eq.s32.totalorder %v1202_v6, 1  ;;  %vm3060_vm13 = vcmp.eq.s32.totalorder %v1204_v13, 1 }
  0x2b   : > { %vm1337_vm11 = vmor %vm1336_vm0, %vm4521_vm14  ;;  %v1075_v19 = vsel %vm1073_vm10, 65537, %v2697_v2  ;;  %vm1209_vm0 = vcmp.eq.s32.totalorder %v1205_v16, 1  ;;  %vm4534_vm10 = vcmp.lt.s32.totalorder %v2851_v14, 2  ;;  %v3143_v16 = vunpack.c.l.b16 %v2697_v2 }
  0x2c   : > { %742 = vrot.lane.b32.xlu2 %v740_v46, %s2699_s18  ;;  %v1338_v20 = vsel %vm1337_vm11, 1, %v2697_v2  ;;  %vm3048_vm9 = vmor %vm1474_vm3, %vm1475_vm1  ;;  %vm4535_vm3 = vcmp.ge.s32.totalorder %v2851_v14, 18 }
  0x2d   : > { %vm1074_vm6 = vmpackc.low %vm3034_vm15, %vm3030_vm2  ;;  %v1339_v23 = vperm.slane %v1338_v20, 0  ;;  %v1340_v24 = vperm.slane %v1338_v20, 1  ;;  %v1341_v25 = vperm.slane %v1338_v20, 2  ;;  %v1342_v26 = vperm.slane %v1338_v20, 3  ;;  %v3151_v20 = vld [vmem:[%s2818_s15 + $0x8] sm:$0xff] }
  0x2e   : > { %vm1210_vm8 = vmpackc.low %vm3042_vm4, %vm3038_vm12  ;;  %v1076_v27 = vsel %vm1074_vm6, 65537, %v2697_v2 }
  0x2f   : > { %vm1477_vm14 = vmor %vm3048_vm9, %vm4534_vm10  ;;  %v1212_v28 = vsel %vm1210_vm8, 65537, %v2697_v2  ;;  %vm1343_vm2 = vcmp.eq.s32.totalorder %v1339_v23, 1  ;;  %vm1344_vm15 = vcmp.eq.s32.totalorder %v1340_v24, 1  ;;  %vm1345_vm12 = vcmp.eq.s32.totalorder %v1341_v25, 1 }
  0x30   : > { %vm1211_vm11 = vmpackc.low %vm1209_vm0, %vm3060_vm13  ;;  %vm1346_vm4 = vcmp.eq.s32.totalorder %v1342_v26, 1 }
  0x31   : > { %vm1478_vm1 = vmor %vm1477_vm14, %vm4535_vm3  ;;  %v1213_v29 = vsel %vm1211_vm11, 65537, %v2697_v2 }
  0x32   : > { %744 = vrot.lane.b32.xlu0 %v741_v58, %s2699_s18  ;;  %797 = vrot.lane.b32.xlu1 %v795_v59, %s2700_s19  ;;  %v1479_v30 = vsel %vm1478_vm1, 1, %v2697_v2  ;;  %vm1347_vm10 = vmpackc.low %vm1344_vm15, %vm1343_vm2  ;;  %vm4537_vm15 = vcmp.ge.s32.totalorder %v2854_v15, 18  ;;  %s2713_s18 = smov 88  }
  0x33   : > { %vm1348_vm13 = vmpackc.low %vm1346_vm4, %vm1345_vm12  ;;  %v1482_v31 = vperm.slane %v1479_v30, 2  ;;  %v1483_v32 = vperm.slane %v1479_v30, 3  ;;  %v1349_v33 = vsel %vm1347_vm10, 65537, %v2697_v2  ;;  %v1480_v43 = vperm.slane %v1479_v30, 0 }
  0x34   : > { %799 = vrot.lane.b32.xlu2 %v796_v63, %s2700_s19  ;;  %v1350_v14 = vsel %vm1348_vm13, 65537, %v2697_v2  ;;  %vm1614_vm14 = vmor %vm3048_vm9, %vm780_vm5  ;;  %vm4536_vm5 = vcmp.lt.s32.totalorder %v2854_v15, 2  ;;  %v1481_v44 = vperm.slane %v1479_v30, 1  ;;  %s2714_s19 = smov 87  }
  0x35   : > { %vm1486_vm6 = vcmp.eq.s32.totalorder %v1482_v31, 1  ;;  %vm1487_vm8 = vcmp.eq.s32.totalorder %v1483_v32, 1  ;;  %vm1615_vm11 = vmor %vm1614_vm14, %vm782_vm7 }
  0x36   : > { %vm1489_vm0 = vmpackc.low %vm1487_vm8, %vm1486_vm6  ;;  %v1616_v35 = vsel %vm1615_vm11, 1, %v2697_v2  ;;  %vm1485_vm14 = vcmp.eq.s32.totalorder %v1481_v44, 1 }
  0x37   : > { %v1491_v34 = vsel %vm1489_vm0, 65537, %v2697_v2  ;;  %v1617_v36 = vperm.slane %v1616_v35, 0  ;;  %v1618_v37 = vperm.slane %v1616_v35, 1  ;;  %vm1751_vm7 = vmor %vm3048_vm9, %vm4536_vm5  ;;  %vm1484_vm9 = vcmp.eq.s32.totalorder %v1480_v43, 1 }
  0x38   : > { %vm1752_vm12 = vmor %vm1751_vm7, %vm4537_vm15  ;;  %v1619_v48 = vperm.slane %v1616_v35, 2  ;;  %v1620_v49 = vperm.slane %v1616_v35, 3  ;;  %vm4479_vm5 = vcmask 703488   ;;  %vm4481_vm7 = vcmask 130048  }
  0x39   : > { %vm1621_vm3 = vcmp.eq.s32.totalorder %v1617_v36, 1  ;;  %vm1622_vm1 = vcmp.eq.s32.totalorder %v1618_v37, 1  ;;  %v1753_v10 = vsel %vm1752_vm12, 1, %v2697_v2  ;;  %vm1488_vm11 = vmpackc.low %vm1485_vm14, %vm1484_vm9  ;;  %vm750_vm15 = vcmask 1043456  }
  0x3a   : > { %937 = vrot.lane.b32.xlu0 %v935_v8, %s2701_s22  ;;  %939 = vrot.lane.b32.xlu1 %v936_v9, %s2701_s22  ;;  %vm1625_vm2 = vmpackc.low %vm1622_vm1, %vm1621_vm3  ;;  %v1754_v39 = vperm.slane %v1753_v10, 0  ;;  %v1755_v40 = vperm.slane %v1753_v10, 1  ;;  %v1756_v41 = vperm.slane %v1753_v10, 2  ;;  %v1757_v42 = vperm.slane %v1753_v10, 3 }
  0x3b   : > { %v1627_v38 = vsel %vm1625_vm2, 65537, %v2697_v2  ;;  %v1490_v46 = vsel %vm1488_vm11, 65537, %v2697_v2  ;;  %vm1623_vm3 = vcmp.eq.s32.totalorder %v1619_v48, 1  ;;  %vm1624_vm1 = vcmp.eq.s32.totalorder %v1620_v49, 1 }
  0x3c   : > { %1077 = vrot.lane.b32.xlu2 %v1075_v19, %s2702_s23  ;;  %vm1758_vm4 = vcmp.eq.s32.totalorder %v1754_v39, 1  ;;  %vm1759_vm10 = vcmp.eq.s32.totalorder %v1755_v40, 1  ;;  %vm1760_vm13 = vcmp.eq.s32.totalorder %v1756_v41, 1  ;;  %vm1761_vm6 = vcmp.eq.s32.totalorder %v1757_v42, 1  ;;  %vm1626_vm2 = vmpackc.low %vm1624_vm1, %vm1623_vm3 }
  0x3d   : > { %vm1762_vm8 = vmpackc.low %vm1759_vm10, %vm1758_vm4  ;;  %v1628_v50 = vsel %vm1626_vm2, 65537, %v2697_v2  ;;  %vm4480_vm12 = vcmask 171008  }
  0x3e   : > { %v1764_v45 = vsel %vm1762_vm8, 65537, %v2697_v2  ;;  %vm1763_vm0 = vmpackc.low %vm1761_vm6, %vm1760_vm13  ;;  %vm1083_vm6 = vcmask 334848   ;;  %vm1220_vm8 = vcmask 343040  }
  0x3f   : > { %v1765_v15 = vsel %vm1763_vm0, 65537, %v2697_v2  ;;  %vm803_vm0 = vcmask 179200  }
  0x42   : > { %1079 = vrot.lane.b32.xlu0 %v1076_v27, %s2702_s23  ;;  %1214 = vrot.lane.b32.xlu1 %v1212_v28, %s2703_s24 }
  0x44   : > { %1216 = vrot.lane.b32.xlu2 %v1213_v29, %s2703_s24 }
  0x4a   : > { %1351 = vrot.lane.b32.xlu0 %v1349_v33, %s2704_s25  ;;  %1353 = vrot.lane.b32.xlu1 %v1350_v14, %s2704_s25  ;;  %s2708_s25 = smov 107  }
  0x4c   : > { %1492 = vrot.lane.b32.xlu2 %v1490_v46, %s2705_s27 }
  0x52   : > { %1494 = vrot.lane.b32.xlu0 %v1491_v34, %s2705_s27  ;;  %1629 = vrot.lane.b32.xlu1 %v1627_v38, %s2706_s29  ;;  %v2415_v38 = vld [vmem:[%s4467_s3 + $0x10] sm:$0xff]  ;;  %s2709_s27 = smov 108  }
  0x54   : > { %1631 = vrot.lane.b32.xlu2 %v1628_v50, %s2706_s29  ;;  %s2710_s29 = smov 127  }
  0x5a   : > { %1766 = vrot.lane.b32.xlu0 %v1764_v45, %s2707_s11  ;;  %1768 = vrot.lane.b32.xlu1 %v1765_v15, %s2707_s11  ;;  %s2711_s11 = smov 126  }
  0x6e   : > { %v3099_v47 = vpop.permute.xlu2 %470 }
  0x76   : > { %v3104_v51 = vpop.permute.xlu2 %475 }
  0x7e   : > { %v519_v52 = vpop.permute.xlu2 %518 }
  0x84   : > { %v3106_v53 = vpop.permute.xlu1 %460  ;;  %v3108_v54 = vpop.permute.xlu0 %450 }
  0x86   : > { %v3114_v57 = vpop.permute.xlu2 %742 }
  0x87   : > { %v746_v8 = vrot.slane %v3114_v57, 4 }
  0x8c   : > { %v3110_v55 = vpop.permute.xlu1 %465  ;;  %v3112_v56 = vpop.permute.xlu0 %455 }
  0x8e   : > { %v3121_v63 = vpop.permute.xlu2 %799 }
  0x8f   : > { %v3172_v29 = vrot.slane %v3121_v63, 4 }
  0x91   : > { %v821_v10 = vunpack.c.l.b16 %v3172_v29  ;;  %v822_v39 = vunpack.c.h.b16 %v3172_v29 }
  0x94   : > { %v515_v58 = vpop.permute.xlu0 %514  ;;  %v517_v59 = vpop.permute.xlu1 %516 }
  0x95   : > { %v525_v60 = vsel %vm4479_vm5, %v515_v58, %v517_v59  ;;  %v526_v61 = vsel %vm4479_vm5, %v517_v59, %v519_v52  ;;  %v3220_v59 = vld [vmem:[%s2818_s15 + $0x14] sm:$0xff] }
  0x96   : > { %550 = vmatpush.bf16.msra.mxu0 %v525_v60  ;;  %574 = vmatpush.bf16.msra.mxu1 %v526_v61  ;;  %v1078_v5 = vpop.permute.xlu2 %1077  ;;  %v3223_v60 = vld [vmem:[%s2818_s15] sm:$0xff] }
  0x97   : > { %v1081_v23 = vrot.slane %v1078_v5, 4 }
  0x99   : > { %2374 = vmatmul.msk.bf16.vlgmr.msra.gmra.mxu0 %vm4481_vm7, %v2413_v62  ;;  %2377 = vmatmul.msk.bf16.vlgmr.msra.gmra.mxu1 %vm4481_vm7, %v2413_v62  ;;  %v1084_v28 = vsel %vm1083_vm6, %v1081_v23, %v1078_v5 }
  0x9a   : > { %v1087_v30 = vunpack.c.l.b16 %v1084_v28  ;;  %v1088_v31 = vunpack.c.h.b16 %v1084_v28 }
  0x9c   : > { %v521_v0 = vpop.permute.xlu0 %520  ;;  %v523_v1 = vpop.permute.xlu1 %522  ;;  %vm3183_vm9 = vcmp.ne.s32.totalorder %v1087_v30, %v3143_v16  ;;  %vm3188_vm14 = vcmp.ne.s32.totalorder %v1088_v31, %v3146_v17 }
  0x9d   : > { %v527_v3 = vsel %vm4479_vm5, %v519_v52, %v521_v0  ;;  %v528_v4 = vsel %vm4479_vm5, %v521_v0, %v523_v1  ;;  %vm1093_vm1 = vmpackc.low %vm3188_vm14, %vm3183_vm9  ;;  %vm4484_vm9 = vcmask 351232  }
  0x9e   : > { %598 = vmatpush.bf16.msra.mxu2 %v527_v3  ;;  %622 = vmatpush.bf16.msra.mxu3 %v528_v4  ;;  %v1217_v22 = vpop.permute.xlu2 %1216 }
  0x9f   : > { %v1219_v27 = vrot.slane %v1217_v22, 4 }
  0xa1   : > { %2380 = vmatmul.msk.bf16.vlgmr.msra.gmra.mxu2 %vm4481_vm7, %v2413_v62  ;;  %2383 = vmatmul.msk.bf16.vlgmr.msra.gmra.mxu3 %vm4481_vm7, %v2413_v62  ;;  %v1238_v32 = vunpack.c.l.b16 %v1219_v27  ;;  %v1239_v35 = vunpack.c.h.b16 %v1219_v27 }
  0xa3   : > { %vm3194_vm11 = vcmp.ne.s32.totalorder %v1238_v32, %v3143_v16  ;;  %vm3209_vm3 = vcmp.ne.s32.totalorder %v1239_v35, %v3146_v17 }
  0xa4   : > { %v745_v6 = vpop.permute.xlu0 %744  ;;  %v3129_v7 = vpop.permute.xlu1 %797 }
  0xa5   : > { %v3132_v9 = vrot.slane %v745_v6, 4  ;;  %v801_v33 = vrot.slane %v3129_v7, 4 }
  0xa7   : > { %v751_v12 = vsel %vm750_vm15, %v746_v8, %v3132_v9  ;;  %v804_v44 = vsel %vm803_vm0, %v801_v33, %v3129_v7 }
  0xa8   : > { %v752_v13 = vsel %vm4480_vm12, %v751_v12, %v745_v6  ;;  %v807_v61 = vunpack.c.l.b16 %v804_v44  ;;  %v808_v6 = vunpack.c.h.b16 %v804_v44 }
  0xa9   : > { %v760_v18 = vunpack.c.l.b16 %v752_v13  ;;  %v761_v19 = vunpack.c.h.b16 %v752_v13  ;;  %2375 = vmatmul.msk.bf16.gmra.mxu0 %vm4481_vm7, %v2414_v11  ;;  %2378 = vmatmul.msk.bf16.gmra.mxu1 %vm4481_vm7, %v2414_v11 }
  0xaa   : > { %vm3292_vm12 = vcmp.ne.s32.totalorder %v808_v6, %v3146_v17  ;;  %v1108_v6 = vsel %vm1093_vm1, 4048220490, %v3223_v60 }
  0xab   : > { %vm764_vm4 = vcmp.ne.s32.totalorder %v760_v18, %v3143_v16  ;;  %vm765_vm10 = vcmp.ne.s32.totalorder %v761_v19, %v3146_v17  ;;  %v1111_v18 = vsel %vm1093_vm1, 4048220490, %v3220_v59 }
  0xac   : > { %vm766_vm13 = vmpackc.low %vm765_vm10, %vm764_vm4  ;;  %v3158_v24 = vpop.permute.xlu0 %937  ;;  %v3160_v2 = vpop.permute.xlu1 %939 }
  0xad   : > { %v3163_v25 = vsel %vm766_vm13, 4048220490, %v3151_v20  ;;  %v3166_v26 = vsel %vm766_vm13, 4048220490, %v3154_v21  ;;  %vm3226_vm13 = vcmp.ne.s32.totalorder %v821_v10, %v3143_v16 }
  0xb1   : > { %2381 = vmatmul.msk.bf16.gmra.mxu2 %vm4481_vm7, %v2414_v11  ;;  %2384 = vmatmul.msk.bf16.gmra.mxu3 %vm4481_vm7, %v2414_v11 }
  0xb4   : > { %v1080_v14 = vpop.permute.xlu0 %1079  ;;  %v1215_v34 = vpop.permute.xlu1 %1214 }
  0xb5   : > { %v3175_v36 = vrot.slane %v1080_v14, 4  ;;  %v1218_v37 = vrot.slane %v1215_v34, 4 }
  0xb7   : > { %v1221_v42 = vsel %vm1220_vm8, %v1218_v37, %v1215_v34  ;;  %v1222_v45 = vsel %vm750_vm15, %v1218_v37, %v1219_v27  ;;  %v1085_v48 = vsel %vm750_vm15, %v1081_v23, %v3175_v36  ;;  %v3269_v27 = vld [vmem:[%s2818_s15 + $0x24] sm:$0xf] }
  0xb8   : > { %v1224_v15 = vunpack.c.l.b16 %v1221_v42  ;;  %v1225_v46 = vunpack.c.h.b16 %v1221_v42  ;;  %v1223_v49 = vsel %vm1220_vm8, %v1222_v45, %v1217_v22  ;;  %vm3231_vm8 = vcmp.ne.s32.totalorder %v822_v39, %v3146_v17 }
  0xb9   : > { %2376 = vmatmul.msk.bf16.gmra.mxu0 %vm4481_vm7, %v2415_v38  ;;  %2379 = vmatmul.msk.bf16.gmra.mxu1 %vm4481_vm7, %v2415_v38  ;;  %v1231_v52 = vunpack.c.l.b16 %v1223_v49  ;;  %v1232_v58 = vunpack.c.h.b16 %v1223_v49  ;;  %v1086_v11 = vsel %vm1083_vm6, %v1085_v48, %v1080_v14  ;;  %v3278_v14 = vld [vmem:[%s2818_s15 + $0x10] sm:$0xf]  ;;  %vm3287_vm6 = vcmp.ne.s32.totalorder %v807_v61, %v3143_v16 }
  0xba   : > { %vm1228_vm2 = vcmp.ne.s32.totalorder %v1224_v15, %v3143_v16  ;;  %vm1229_vm4 = vcmp.ne.s32.totalorder %v1225_v46, %v3146_v17  ;;  %v1094_v34 = vunpack.c.l.b16 %v1086_v11  ;;  %v1095_v35 = vunpack.c.h.b16 %v1086_v11 }
  0xbb   : > { %vm1230_vm10 = vmpackc.low %vm1229_vm4, %vm1228_vm2  ;;  %vm3238_vm5 = vcmp.ne.s32.totalorder %v1231_v52, %v3143_v16  ;;  %vm3243_vm2 = vcmp.ne.s32.totalorder %v1232_v58, %v3146_v17  ;;  %v941_v46 = vrot.slane %v3158_v24, 4  ;;  %v1129_v49 = vunpack.c.l.bf16 %v1111_v18 }
  0xbc   : > { %v1245_v1 = vsel %vm1230_vm10, 4048220490, %v3223_v60  ;;  %v1248_v3 = vsel %vm1230_vm10, 4048220490, %v3220_v59  ;;  %vm1244_vm4 = vmpackc.low %vm3209_vm3, %vm3194_vm11  ;;  %vm4483_vm11 = vcmask 187392   ;;  %v3306_v45 = vpop.permute.xlu0 %1351  ;;  %v1354_v15 = vpop.permute.xlu1 %1353  ;;  %v1101_v11 = vunpack.c.l.b16 %v3175_v36 }
  0xbd   : > { %v1266_v12 = vunpack.c.l.bf16 %v1248_v3  ;;  %v1267_v13 = vunpack.c.h.bf16 %v1248_v3  ;;  %vm1237_vm10 = vmpackc.low %vm3243_vm2, %vm3238_vm5  ;;  %v1261_v19 = vunpack.c.l.bf16 %v1245_v1  ;;  %v1262_v22 = vunpack.c.h.bf16 %v1245_v1 }
  0xbe   : > { %v1246_v23 = vsel %vm1237_vm10, 4048220490, %v3151_v20  ;;  %v1250_v32 = vsel %vm1244_vm4, 4048220490, %v3269_v27  ;;  %v1247_v10 = vsel %vm1244_vm4, 4048220490, %v3278_v14  ;;  %vm4482_vm5 = vmpackc.low %vm3231_vm8, %vm3226_vm13  ;;  %vm3319_vm2 = vcmp.ne.s32.totalorder %v1094_v34, %v3143_v16 }
  0xbf   : > { %v2473_v28 = vpack.i.bf16 %v1267_v13, %v1266_v12  ;;  %v1263_v30 = vunpack.c.l.bf16 %v1246_v23  ;;  %v1264_v31 = vunpack.c.h.bf16 %v1246_v23  ;;  %v2468_v37 = vpack.i.bf16 %v1262_v22, %v1261_v19  ;;  %vm813_vm3 = vmpackc.low %vm3292_vm12, %vm3287_vm6 }
  0xc0   : > { %v1249_v43 = vsel %vm1237_vm10, 4048220490, %v3154_v21  ;;  %v1265_v48 = vunpack.c.l.bf16 %v1247_v10  ;;  %vm3324_vm4 = vcmp.ne.s32.totalorder %v1095_v35, %v3146_v17  ;;  %v944_v1 = vsel %vm4483_vm11, %v941_v46, %v3158_v24 }
  0xc1   : > { %2382 = vmatmul.msk.bf16.gmra.mxu2 %vm4481_vm7, %v2415_v38  ;;  %2385 = vmatmul.msk.bf16.gmra.mxu3 %vm4481_vm7, %v2415_v38  ;;  %v2478_v44 = vpack.i.bf16 %v1264_v31, %v1263_v30  ;;  %v1270_v38 = vunpack.c.l.bf16 %v1250_v32  ;;  %v1269_v58 = vunpack.c.h.bf16 %v1249_v43  ;;  %v1268_v61 = vunpack.c.l.bf16 %v1249_v43  ;;  %vm1100_vm10 = vmpackc.low %vm3324_vm4, %vm3319_vm2 }
  0xc2   : > { %2474 = vrot.lane.b32.xlu0 %v2473_v28, %s2708_s25  ;;  %2469 = vrot.lane.b32.xlu2 %v2468_v37, %s2708_s25  ;;  %v1130_v3 = vunpack.c.h.bf16 %v1111_v18  ;;  %v1355_v4 = vrot.slane %v3306_v45, 4  ;;  %v1356_v5 = vrot.slane %v1354_v15, 4  ;;  %v1102_v12 = vunpack.c.h.b16 %v3175_v36 }
  0xc3   : > { %2479 = vrot.lane.b32.xlu1 %v2478_v44, %s2708_s25  ;;  %v3347_v13 = vsel %vm813_vm3, 4048220490, %v3220_v59  ;;  %v830_v36 = vsel %vm4482_vm5, 4048220490, %v3278_v14  ;;  %v947_v40 = vunpack.c.l.b16 %v944_v1  ;;  %v948_v41 = vunpack.c.h.b16 %v944_v1  ;;  %v3386_v44 = vpop.permute.xlu2 %1492 }
  0xc4   : > { %v2488_v18 = vpack.i.bf16 %v1270_v38, %v1269_v58  ;;  %v2483_v19 = vpack.i.bf16 %v1268_v61, %v1265_v48  ;;  %v2498_v22 = vpack.i.bf16 %v1130_v3, %v1129_v49  ;;  %v1124_v23 = vunpack.c.l.bf16 %v1108_v6 }
  0xc5   : > { %v1359_v28 = vsel %vm750_vm15, %v1355_v4, %v1356_v5  ;;  %v1109_v30 = vsel %vm1100_vm10, 4048220490, %v3151_v20  ;;  %v1125_v31 = vunpack.c.h.bf16 %v1108_v6  ;;  %vm3371_vm14 = vcmp.ne.s32.totalorder %v1101_v11, %v3143_v16 }
  0xc6   : > { %vm3376_vm1 = vcmp.ne.s32.totalorder %v1102_v12, %v3146_v17  ;;  %v805_v35 = vsel %vm750_vm15, %v801_v33, %v3172_v29  ;;  %v848_v37 = vunpack.c.l.bf16 %v830_v36  ;;  %v849_v10 = vunpack.c.l.bf16 %v3347_v13  ;;  %v3440_v36 = vpop.permute.xlu1 %1629 }
  0xc7   : > { %vm3389_vm7 = vcmp.ne.s32.totalorder %v947_v40, %v3143_v16  ;;  %vm3394_vm5 = vcmp.ne.s32.totalorder %v948_v41, %v3146_v17  ;;  %v1360_v7 = vsel %vm4484_vm9, %v1359_v28, %v1354_v15  ;;  %v1126_v29 = vunpack.c.l.bf16 %v1109_v30  ;;  %vm4485_vm11 = vmpackc.low %vm3376_vm1, %vm3371_vm14 }
  0xc8   : > { %v1127_v33 = vunpack.c.h.bf16 %v1109_v30  ;;  %v806_v48 = vsel %vm803_vm0, %v805_v35, %v3121_v63  ;;  %v2493_v49 = vpack.i.bf16 %v1125_v31, %v1124_v23  ;;  %v828_v58 = vsel %vm813_vm3, 4048220490, %v3223_v60  ;;  %vm953_vm9 = vmpackc.low %vm3394_vm5, %vm3389_vm7 }
  0xc9   : > { %v2508_v15 = vpack.i.bf16 %v849_v10, %v848_v37  ;;  %v1368_v61 = vunpack.c.l.b16 %v1360_v7  ;;  %v1369_v1 = vunpack.c.h.b16 %v1360_v7  ;;  %v3421_v63 = vsel %vm1100_vm10, 4048220490, %v3154_v21  ;;  %vm4580_vm4 = vmpackc.low %vm3376_vm1, %vm3371_vm14 }
  0xca   : > { %2489 = vrot.lane.b32.xlu0 %v2488_v18, %s2708_s25  ;;  %2484 = vrot.lane.b32.xlu2 %v2483_v19, %s2708_s25  ;;  %v1375_v42 = vunpack.c.l.b16 %v1356_v5  ;;  %v1376_v39 = vunpack.c.h.b16 %v1356_v5  ;;  %v1110_v3 = vsel %vm4485_vm11, 4048220490, %v3278_v14  ;;  %v814_v6 = vunpack.c.l.b16 %v806_v48 }
  0xcb   : > { %2499 = vrot.lane.b32.xlu1 %v2498_v22, %s2709_s27  ;;  %v2513_v11 = vpack.i.bf16 %v1127_v33, %v1126_v29  ;;  %v968_v50 = vsel %vm953_vm9, 4048220490, %v3223_v60  ;;  %v3436_v52 = vrot.slane %v3160_v2, 4  ;;  %v844_v5 = vunpack.c.l.bf16 %v828_v58  ;;  %v1632_v22 = vpop.permute.xlu2 %1631 }
  0xcc   : > { %v845_v12 = vunpack.c.h.bf16 %v828_v58  ;;  %vm3444_vm12 = vcmp.ne.s32.totalorder %v1368_v61, %v3143_v16  ;;  %vm3449_vm0 = vcmp.ne.s32.totalorder %v1369_v1, %v3146_v17  ;;  %v1128_v18 = vunpack.c.l.bf16 %v1110_v3 }
  0xcd   : > { %v1131_v19 = vunpack.c.l.bf16 %v3421_v63  ;;  %vm3455_vm6 = vcmp.ne.s32.totalorder %v1375_v42, %v3143_v16  ;;  %vm3460_vm3 = vcmp.ne.s32.totalorder %v1376_v39, %v3146_v17  ;;  %v3464_v30 = vrot.slane %v1632_v22, 4  ;;  %vm1374_vm2 = vmpackc.low %vm3449_vm0, %vm3444_vm12 }
  0xce   : > { %v1633_v31 = vrot.slane %v3440_v36, 4  ;;  %v815_v35 = vunpack.c.h.b16 %v806_v48  ;;  %v984_v37 = vunpack.c.l.bf16 %v968_v50  ;;  %v985_v10 = vunpack.c.h.bf16 %v968_v50  ;;  %vm4583_vm7 = vmpackc.low %vm3460_vm3, %vm3455_vm6 }
  0xcf   : > { %v945_v7 = vsel %vm750_vm15, %v941_v46, %v3436_v52  ;;  %vm3480_vm10 = vcmp.ne.s32.totalorder %v814_v6, %v3143_v16  ;;  %v2518_v33 = vpack.i.bf16 %v1131_v19, %v1128_v18  ;;  %v2503_v48 = vpack.i.bf16 %v845_v12, %v844_v5  ;;  %vm4586_vm1 = vmmov %vm4583_vm7 }
  0xd0   : > { %v1637_v24 = vsel %vm750_vm15, %v1633_v31, %v3464_v30  ;;  %v971_v46 = vsel %vm953_vm9, 4048220490, %v3220_v59  ;;  %v2528_v58 = vpack.i.bf16 %v985_v10, %v984_v37  ;;  %vm3501_vm11 = vcmp.ne.s32.totalorder %v815_v35, %v3146_v17 }
  0xd1   : > { %v1386_v43 = vsel %vm1374_vm2, 4048220490, %v3154_v21  ;;  %v1384_v32 = vsel %vm4583_vm7, 4048220490, %v3278_v14  ;;  %vm4584_vm5 = vcmask 187392   ;;  %vm4585_vm9 = vcmask 506880   ;;  %vm820_vm14 = vmpackc.low %vm3501_vm11, %vm3480_vm10 }
  0xd2   : > { %2509 = vrot.lane.b32.xlu2 %v2508_v15, %s2710_s29  ;;  %2494 = vrot.lane.b32.xlu0 %v2493_v49, %s2709_s27  ;;  %v1495_v49 = vpop.permute.xlu0 %1494  ;;  %v1113_v15 = vsel %vm4580_vm4, 4048220490, %v3269_v27  ;;  %v946_v34 = vsel %vm4584_vm5, %v945_v7, %v3160_v2  ;;  %v1638_v38 = vsel %vm4585_vm9, %v1637_v24, %v1632_v22  ;;  %v989_v1 = vunpack.c.l.bf16 %v971_v46  ;;  %v1769_v24 = vpop.permute.xlu1 %1768  ;;  %vm4595_vm5 = vmpackc.low %vm3231_vm8, %vm3226_vm13 }
  0xd3   : > { %2514 = vrot.lane.b32.xlu1 %v2513_v11, %s2709_s27  ;;  %v990_v42 = vunpack.c.h.bf16 %v971_v46  ;;  %v1132_v39 = vunpack.c.h.bf16 %v3421_v63  ;;  %v1133_v3 = vunpack.c.l.bf16 %v1113_v15  ;;  %v1402_v6 = vunpack.c.l.bf16 %v1384_v32 }
  0xd4   : > { %v1405_v11 = vunpack.c.l.bf16 %v1386_v43  ;;  %v1496_v50 = vrot.slane %v3386_v44, 4  ;;  %v3529_v2 = vrot.slane %v1495_v49, 4  ;;  %v954_v5 = vunpack.c.l.b16 %v946_v34 }
  0xd5   : > { %v1646_v12 = vunpack.c.l.b16 %v1638_v38  ;;  %v955_v18 = vunpack.c.h.b16 %v946_v34  ;;  %v1387_v63 = vsel %vm4586_vm1, 4048220490, %v3269_v27  ;;  %v829_v19 = vsel %vm820_vm14, 4048220490, %v3151_v20 }
  0xd6   : > { %v1647_v22 = vunpack.c.h.b16 %v1638_v38  ;;  %v1383_v35 = vsel %vm1374_vm2, 4048220490, %v3151_v20  ;;  %v2533_v28 = vpack.i.bf16 %v990_v42, %v989_v1  ;;  %v2523_v37 = vpack.i.bf16 %v1133_v3, %v1132_v39 }
  0xd7   : > { %v1406_v23 = vunpack.c.h.bf16 %v1386_v43  ;;  %v2543_v7 = vpack.i.bf16 %v1405_v11, %v1402_v6  ;;  %vm1498_vm6 = vcmask 498688   ;;  %v1407_v40 = vunpack.c.l.bf16 %v1387_v63 }
  0xd8   : > { %vm1772_vm12 = vcmask 515072   ;;  %v3558_v41 = vrot.slane %v1769_v24, 4  ;;  %vm3561_vm0 = vcmp.ne.s32.totalorder %v1646_v12, %v3143_v16  ;;  %v1401_v15 = vunpack.c.h.bf16 %v1383_v35 }
  0xd9   : > { %vm3567_vm3 = vcmp.ne.s32.totalorder %v1647_v22, %v3146_v17  ;;  %vm3572_vm2 = vcmp.ne.s32.totalorder %v954_v5, %v3143_v16  ;;  %vm3577_vm4 = vcmp.ne.s32.totalorder %v955_v18, %v3146_v17  ;;  %v846_v42 = vunpack.c.l.bf16 %v829_v19 }
  0xda   : > { %2519 = vrot.lane.b32.xlu2 %v2518_v33, %s2709_s27  ;;  %2504 = vrot.lane.b32.xlu0 %v2503_v48, %s2710_s29  ;;  %v3549_v10 = vpop.permute.xlu0 %1766  ;;  %v1500_v33 = vsel %vm750_vm15, %v1496_v50, %v3529_v2  ;;  %vm1652_vm7 = vmpackc.low %vm3567_vm3, %vm3561_vm0  ;;  %v847_v39 = vunpack.c.h.bf16 %v829_v19  ;;  %v2548_v11 = vpack.i.bf16 %v1407_v40, %v1406_v23  ;;  %v1517_v61 = vunpack.c.h.b16 %v3529_v2 }
  0xdb   : > { %2529 = vrot.lane.b32.xlu1 %v2528_v58, %s2711_s11  ;;  %v1770_v48 = vrot.slane %v3549_v10, 4  ;;  %v1400_v58 = vunpack.c.l.bf16 %v1383_v35  ;;  %v1501_v38 = vsel %vm1498_vm6, %v1500_v33, %v1495_v49  ;;  %v3592_v6 = vsel %vm1652_vm7, 4048220490, %v3151_v20 }
  0xdc   : > { %v832_v49 = vsel %vm820_vm14, 4048220490, %v3154_v21  ;;  %v1509_v63 = vunpack.c.l.b16 %v1501_v38  ;;  %v1510_v19 = vunpack.c.h.b16 %v1501_v38  ;;  %v3605_v22 = vsel %vm1652_vm7, 4048220490, %v3154_v21 }
  0xdd   : > { %v1774_v1 = vsel %vm750_vm15, %v1770_v48, %v3558_v41  ;;  %vm960_vm15 = vmpackc.low %vm3577_vm4, %vm3572_vm2  ;;  %v2538_v18 = vpack.i.bf16 %v1401_v15, %v1400_v58  ;;  %v1516_v35 = vunpack.c.l.b16 %v3529_v2  ;;  %v961_v29 = vunpack.c.l.b16 %v3436_v52 }
  0xde   : > { %v1775_v3 = vsel %vm1772_vm12, %v1774_v1, %v1769_v24  ;;  %v833_v23 = vsel %vm4595_vm5, 4048220490, %v3269_v27  ;;  %v969_v2 = vsel %vm960_vm15, 4048220490, %v3151_v20  ;;  %vm3634_vm13 = vcmp.ne.s32.totalorder %v1509_v63, %v3143_v16 }
  0xdf   : > { %v1783_v5 = vunpack.c.l.b16 %v1775_v3  ;;  %v1784_v12 = vunpack.c.h.b16 %v1775_v3  ;;  %vm3639_vm8 = vcmp.ne.s32.totalorder %v1510_v19, %v3146_v17  ;;  %v850_v33 = vunpack.c.h.bf16 %v3347_v13 }
  0xe0   : > { %v851_v24 = vunpack.c.l.bf16 %v832_v49  ;;  %v852_v40 = vunpack.c.h.bf16 %v832_v49  ;;  %v853_v46 = vunpack.c.l.bf16 %v833_v23  ;;  %vm3646_vm14 = vcmp.ne.s32.totalorder %v1516_v35, %v3143_v16  ;;  %vm1515_vm7 = vmpackc.low %vm3639_vm8, %vm3634_vm13 }
  0xe1   : > { %vm1787_vm11 = vcmp.ne.s32.totalorder %v1783_v5, %v3143_v16  ;;  %vm1788_vm10 = vcmp.ne.s32.totalorder %v1784_v12, %v3146_v17  ;;  %vm3651_vm1 = vcmp.ne.s32.totalorder %v1517_v61, %v3146_v17  ;;  %v986_v43 = vunpack.c.l.bf16 %v969_v2 }
  0xe2   : > { %2534 = vrot.lane.b32.xlu2 %v2533_v28, %s2711_s11  ;;  %2524 = vrot.lane.b32.xlu0 %v2523_v37, %s2709_s27  ;;  %v962_v28 = vunpack.c.h.b16 %v3436_v52  ;;  %v2553_v37 = vpack.i.bf16 %v847_v39, %v846_v42  ;;  %vm1789_vm9 = vmpackc.low %vm1788_vm10, %vm1787_vm11  ;;  %v987_v38 = vunpack.c.h.bf16 %v969_v2  ;;  %vm3656_vm0 = vcmp.ne.s32.totalorder %v961_v29, %v3143_v16 }
  0xe3   : > { %2544 = vrot.lane.b32.xlu1 %v2543_v7, %s2712_s12  ;;  %v3628_v52 = vsel %vm1789_vm9, 4048220490, %v3151_v20  ;;  %v3631_v0 = vsel %vm1789_vm9, 4048220490, %v3154_v21  ;;  %vm1522_vm11 = vmpackc.low %vm3651_vm1, %vm3646_vm14  ;;  %v2558_v13 = vpack.i.bf16 %v851_v24, %v850_v33  ;;  %v2563_v42 = vpack.i.bf16 %v853_v46, %v852_v40 }
  0xe4   : > { %vm966_vm3 = vcmp.ne.s32.totalorder %v962_v28, %v3146_v17  ;;  %v972_v39 = vsel %vm960_vm15, 4048220490, %v3154_v21  ;;  %v2568_v3 = vpack.i.bf16 %v987_v38, %v986_v43  ;;  %v1528_v32 = vsel %vm1522_vm11, 4048220490, %v3269_v27 }
  0xe5   : > { %vm967_vm10 = vmpackc.low %vm966_vm3, %vm3656_vm0  ;;  %vm4606_vm2 = vcmask 351232   ;;  %v991_v5 = vunpack.c.l.bf16 %v972_v39  ;;  %v992_v12 = vunpack.c.h.bf16 %v972_v39  ;;  %v1548_v63 = vunpack.c.l.bf16 %v1528_v32 }
  0xe6   : > { %v970_v34 = vsel %vm967_vm10, 4048220490, %v3278_v14  ;;  %v973_v49 = vsel %vm967_vm10, 4048220490, %v3269_v27  ;;  %v1653_v19 = vunpack.c.l.b16 %v3464_v30  ;;  %v1654_v35 = vunpack.c.h.b16 %v3464_v30 }
  0xe7   : > { %v988_v61 = vunpack.c.l.bf16 %v970_v34  ;;  %v993_v29 = vunpack.c.l.bf16 %v973_v49  ;;  %v1524_v23 = vsel %vm1515_vm7, 4048220490, %v3151_v20  ;;  %v1525_v30 = vsel %vm1522_vm11, 4048220490, %v3278_v14 }
  0xe8   : > { %vm3715_vm4 = vcmp.ne.s32.totalorder %v1653_v19, %v3143_v16  ;;  %vm3720_vm15 = vcmp.ne.s32.totalorder %v1654_v35, %v3146_v17  ;;  %v1541_v62 = vunpack.c.l.bf16 %v1524_v23  ;;  %v1542_v33 = vunpack.c.h.bf16 %v1524_v23 }
  0xe9   : > { %v1543_v46 = vunpack.c.l.bf16 %v1525_v30  ;;  %v1678_v15 = vunpack.c.l.bf16 %v3592_v6  ;;  %v1679_v43 = vunpack.c.h.bf16 %v3592_v6  ;;  %vm1659_vm13 = vmpackc.low %vm3720_vm15, %vm3715_vm4  ;;  %v1790_v1 = vunpack.c.l.b16 %v3558_v41 }
  0xea   : > { %2549 = vrot.lane.b32.xlu2 %v2548_v11, %s2712_s12  ;;  %2539 = vrot.lane.b32.xlu0 %v2538_v18, %s2712_s12  ;;  %v1527_v11 = vsel %vm1515_vm7, 4048220490, %v3154_v21  ;;  %v1358_v21 = vsel %vm4606_vm2, %v1355_v4, %v3306_v45  ;;  %v2573_v45 = vpack.i.bf16 %v991_v5, %v988_v61  ;;  %v2578_v4 = vpack.i.bf16 %v993_v29, %v992_v12 }
  0xeb   : > { %2554 = vrot.lane.b32.xlu1 %v2553_v37, %s2710_s29  ;;  %v1547_v18 = vunpack.c.h.bf16 %v1527_v11  ;;  %v1361_v28 = vunpack.c.l.b16 %v1358_v21  ;;  %v1362_v37 = vunpack.c.h.b16 %v1358_v21  ;;  %v1546_v58 = vunpack.c.l.bf16 %v1527_v11 }
  0xec   : > { %v2583_v38 = vpack.i.bf16 %v1542_v33, %v1541_v62  ;;  %v1662_v39 = vsel %vm1659_vm13, 4048220490, %v3278_v14  ;;  %v1665_v6 = vsel %vm1659_vm13, 4048220490, %v3269_v27  ;;  %v1683_v34 = vunpack.c.l.bf16 %v3605_v22 }
  0xed   : > { %v2593_v2 = vpack.i.bf16 %v1548_v63, %v1547_v18  ;;  %vm3726_vm5 = vcmp.ne.s32.totalorder %v1361_v28, %v3143_v16  ;;  %vm3731_vm9 = vcmp.ne.s32.totalorder %v1362_v37, %v3146_v17  ;;  %v1680_v32 = vunpack.c.l.bf16 %v1662_v39  ;;  %v2669_v37 = vld [vmem:[%s2834_s30] sm:$0xf] }
  0xee   : > { %vm1367_vm8 = vmpackc.low %vm3731_vm9, %vm3726_vm5  ;;  %v1684_v49 = vunpack.c.h.bf16 %v3605_v22  ;;  %v1685_v21 = vunpack.c.l.bf16 %v1665_v6  ;;  %vm3765_vm14 = vcmp.ne.s32.totalorder %v1790_v1, %v3143_v16  ;;  %v2668_v22 = vld [vmem:[%s2829_s26] sm:$0xf]  ;;  %vm430_vm11 = vcmp.ge.s32.totalorder %v2669_v37, 2  ;;  %s375_s26 = sand.u32 1, %s2687_s13  }
  0xef   : > { %v1382_v11 = vsel %vm1367_vm8, 4048220490, %v3223_v60  ;;  %vm427_vm0 = vcmp.ge.s32.totalorder %v2668_v22, 2  ;;  %vm428_vm3 = vcmp.lt.s32.totalorder %v2668_v22, 18  ;;  %v1385_v19 = vsel %vm1367_vm8, 4048220490, %v3220_v59 }
  0xf0   : > { %v2603_v35 = vpack.i.bf16 %v1683_v34, %v1680_v32  ;;  %v2608_v61 = vpack.i.bf16 %v1685_v21, %v1684_v49  ;;  %vm429_vm7 = vmand %vm427_vm0, %vm428_vm3  ;;  %vm4623_vm4 = vcmask 506880   ;;  %v1773_v30 = vsel %vm1772_vm12, %v1770_v48, %v3549_v10  ;;  %s3863_s13 = sshll.u32 %s375_s26, 6 }
  0xf1   : > { %v1404_v7 = vunpack.c.h.bf16 %v1385_v19  ;;  %v1815_v20 = vunpack.c.l.bf16 %v3628_v52  ;;  %v1816_v62 = vunpack.c.h.bf16 %v3628_v52  ;;  %v1820_v24 = vunpack.c.l.bf16 %v3631_v0  ;;  %vm431_vm15 = vmand %vm429_vm7, %vm430_vm11  ;;  %s3889_s30 = scalar_lea.vmem [#allocation2], %s3863_s13  ;;  %s3930_s22 = scalar_lea.vmem [#allocation3], %s3863_s13 }
  0xf2   : > { %2559 = vrot.lane.b32.xlu2 %v2558_v13, %s2710_s29  ;;  %2564 = vrot.lane.b32.xlu0 %v2563_v42, %s2710_s29  ;;  %v1791_v13 = vunpack.c.h.b16 %v3558_v41  ;;  %v2588_v42 = vpack.i.bf16 %v1546_v58, %v1543_v46  ;;  %v1499_v41 = vsel %vm1498_vm6, %v1496_v50, %v3386_v44  ;;  %v1398_v44 = vunpack.c.l.bf16 %v1382_v11 }
  0xf3   : > { %2569 = vrot.lane.b32.xlu1 %v2568_v3, %s2711_s11  ;;  %v2598_v3 = vpack.i.bf16 %v1679_v43, %v1678_v15  ;;  %v1399_v50 = vunpack.c.h.bf16 %v1382_v11  ;;  %v1502_v18 = vunpack.c.l.b16 %v1499_v41  ;;  %v1503_v63 = vunpack.c.h.b16 %v1499_v41 }
  0xf4   : > { %vm3770_vm1 = vcmp.ne.s32.totalorder %v1791_v13, %v3146_v17  ;;  %vm432_vm5 = vcmp.lt.s32.totalorder %v2669_v37, 18  ;;  %v1776_v40 = vunpack.c.l.b16 %v1773_v30  ;;  %v1777_v46 = vunpack.c.h.b16 %v1773_v30 }
  0xf5   : > { %vm1796_vm6 = vmpackc.low %vm3770_vm1, %vm3765_vm14  ;;  %v2613_v29 = vpack.i.bf16 %v1399_v50, %v1398_v44  ;;  %vm3795_vm10 = vcmp.ne.s32.totalorder %v1502_v18, %v3143_v16  ;;  %vm3800_vm2 = vcmp.ne.s32.totalorder %v1503_v63, %v3146_v17  ;;  %v2623_v48 = vpack.i.bf16 %v1816_v62, %v1815_v20 }
  0xf6   : > { %v1799_v28 = vsel %vm1796_vm6, 4048220490, %v3278_v14  ;;  %vm1508_vm9 = vmpackc.low %vm3800_vm2, %vm3795_vm10  ;;  %v1802_v15 = vsel %vm1796_vm6, 4048220490, %v3269_v27  ;;  %vm3841_vm0 = vcmp.ne.s32.totalorder %v1776_v40, %v3143_v16  ;;  %vm3846_vm14 = vcmp.ne.s32.totalorder %v1777_v46, %v3146_v17 }
  0xf7   : > { %v1817_v33 = vunpack.c.l.bf16 %v1799_v28  ;;  %vm433_vm12 = vmand %vm431_vm15, %vm432_vm5  ;;  %v1523_v52 = vsel %vm1508_vm9, 4048220490, %v3223_v60  ;;  %v1526_v43 = vsel %vm1508_vm9, 4048220490, %v3220_v59  ;;  %v1822_v6 = vunpack.c.l.bf16 %v1802_v15 }
  0xf8   : > { %v1539_v11 = vunpack.c.l.bf16 %v1523_v52  ;;  %v1540_v41 = vunpack.c.h.bf16 %v1523_v52  ;;  %v1544_v32 = vunpack.c.l.bf16 %v1526_v43  ;;  %v1545_v34 = vunpack.c.h.bf16 %v1526_v43  ;;  %vm1782_vm6 = vmpackc.low %vm3846_vm14, %vm3841_vm0 }
  0xf9   : > { %v2628_v58 = vpack.i.bf16 %v1820_v24, %v1817_v33  ;;  %v1800_v40 = vsel %vm1782_vm6, 4048220490, %v3220_v59  ;;  %vm1301_vm3 = vcmask 875520   ;;  %vm4632_vm7 = vcmask 171008  }
  0xfa   : > { %2574 = vrot.lane.b32.xlu2 %v2573_v45, %s2711_s11  ;;  %2579 = vrot.lane.b32.xlu0 %v2578_v4, %s2711_s11  ;;  %v1636_v4 = vsel %vm4623_vm4, %v1633_v31, %v3440_v36  ;;  %v2638_v63 = vpack.i.bf16 %v1540_v41, %v1539_v11  ;;  %v1819_v1 = vunpack.c.h.bf16 %v1800_v40  ;;  %vm1024_vm9 = vcmask 1031168  }
  0xfb   : > { %2594 = vrot.lane.b32.xlu1 %v2593_v2, %s2713_s18  ;;  %v1403_v2 = vunpack.c.l.bf16 %v1385_v19  ;;  %v1639_v36 = vunpack.c.l.b16 %v1636_v4  ;;  %v1640_v31 = vunpack.c.h.b16 %v1636_v4  ;;  %vm1579_vm0 = vcmask 719872  }
  0xfc   : > { %vm1716_vm14 = vcmask 711680  }
  0xfd   : > { %v2618_v10 = vpack.i.bf16 %v1404_v7, %v1403_v2  ;;  %vm3829_vm13 = vcmp.ne.s32.totalorder %v1639_v36, %v3143_v16  ;;  %vm3834_vm8 = vcmp.ne.s32.totalorder %v1640_v31, %v3146_v17 }
  0xfe   : > { %vm1645_vm1 = vmpackc.low %vm3834_vm8, %vm3829_vm13  ;;  %vm884_vm13 = vcmask 1039360   ;;  %vm1438_vm8 = vcmask 867328  }
  0xff   : > { %v1660_v50 = vsel %vm1645_vm1, 4048220490, %v3223_v60  ;;  %v1663_v22 = vsel %vm1645_vm1, 4048220490, %v3220_v59  ;;  %vm4641_vm1 = vcmask 703488  }
 0x100   : > { %v1676_v45 = vunpack.c.l.bf16 %v1660_v50  ;;  %v1677_v4 = vunpack.c.h.bf16 %v1660_v50  ;;  %v1681_v2 = vunpack.c.l.bf16 %v1663_v22  ;;  %v1682_v30 = vunpack.c.h.bf16 %v1663_v22 }
 0x102   : > { %2584 = vrot.lane.b32.xlu2 %v2583_v38, %s2713_s18  ;;  %2589 = vrot.lane.b32.xlu0 %v2588_v42, %s2713_s18  ;;  %v2715_v42 = vmov 0.0   ;;  %v2648_v36 = vpack.i.bf16 %v1677_v4, %v1676_v45  ;;  %v2653_v31 = vpack.i.bf16 %v1682_v30, %v1681_v2  ;;  %v1818_v38 = vunpack.c.l.bf16 %v1800_v40 }
 0x103   : > { %2599 = vrot.lane.b32.xlu1 %v2598_v3, %s2714_s19  ;;  %v3851_v39 = vsel %vm433_vm12, 1.0, %v2715_v42  ;;  %v1821_v3 = vunpack.c.h.bf16 %v3631_v0  ;;  %vm1164_vm12 = vcmask 883712  }
 0x104   : > { %v3867_v5 = vperm.slane %v3851_v39, 0  ;;  %v3871_v44 = vperm.slane %v3851_v39, 1  ;;  %v3911_v13 = vperm.slane %v3851_v39, 2 }
 0x105   : > { %v2633_v18 = vpack.i.bf16 %v1822_v6, %v1821_v3  ;;  %v3916_v3 = vperm.slane %v3851_v39, 3 }
 0x10a   : > { %2604 = vrot.lane.b32.xlu2 %v2603_v35, %s2714_s19  ;;  %2609 = vrot.lane.b32.xlu0 %v2608_v61, %s2714_s19  ;;  %v2643_v61 = vpack.i.bf16 %v1545_v34, %v1544_v32 }
 0x10b   : > { %2614 = vrot.lane.b32.xlu1 %v2613_v29, %s2712_s12  ;;  %v1797_v29 = vsel %vm1782_vm6, 4048220490, %v3223_v60  ;;  %vm4642_vm6 = vmmov %vm4641_vm1 }
 0x10c   : > { %v1813_v60 = vunpack.c.l.bf16 %v1797_v29  ;;  %v1814_v7 = vunpack.c.h.bf16 %v1797_v29 }
 0x112   : > { %2619 = vrot.lane.b32.xlu2 %v2618_v10, %s2712_s12  ;;  %2624 = vrot.lane.b32.xlu0 %v2623_v48, %s2698_s28  ;;  %v2658_v48 = vpack.i.bf16 %v1814_v7, %v1813_v60  ;;  %s2417_s12 = sshll.u32 (%p2796_p4), %s2784_s16, 5 }
 0x113   : > { %2629 = vrot.lane.b32.xlu1 %v2628_v58, %s2698_s28  ;;  %s2034_s26 = scalar_lea.vmem (%p2796_p4), %s4471_s7, %s2417_s12 }
 0x116   : > { %v552_v49 = vpop.f32.mrf.mxu0  ;;  %v576_v21 = vpop.f32.mrf.mxu1 }
 0x117   : > { %v553_v0 = vadd.f32 %v552_v49, %v3108_v54  ;;  %v577_v12 = vadd.f32 %v576_v21, %v3108_v54  ;;  %v2663_v21 = vpack.i.bf16 %v1819_v1, %v1818_v38 }
 0x119   : > { %v639_v19 = vmax.f32 %v553_v0, 0.0  ;;  %v640_v35 = vmax.f32 %v577_v12, 0.0 }
 0x11a   : > { %2634 = vrot.lane.b32.xlu2 %v2633_v18, %s2698_s28  ;;  %2639 = vrot.lane.b32.xlu0 %v2638_v63, %s2713_s18 }
 0x11b   : > { %v672_v28 = vmul.f32 %v3867_v5, %v639_v19  ;;  %v673_v37 = vmul.f32 %v3871_v44, %v640_v35  ;;  %2644 = vrot.lane.b32.xlu1 %v2643_v61, %s2713_s18 }
 0x11c   : > { %v3886_v23 = vpop.permute.xlu2 %2469 }
 0x11d   : > { %696 = vst [vmem:[%s3889_s30] sm:$0xff] %v672_v28 }
 0x11e   : > { %697 = vst [vmem:[%s3889_s30 + $0x8] sm:$0xff] %v673_v37  ;;  %v554_v20 = vpop.f32.mrf.mxu0  ;;  %v578_v62 = vpop.f32.mrf.mxu1 }
 0x11f   : > { %v555_v33 = vadd.f32 %v554_v20, %v3112_v56  ;;  %v579_v24 = vadd.f32 %v578_v62, %v3112_v56 }
 0x121   : > { %v643_v46 = vmax.f32 %v555_v33, 0.0  ;;  %v644_v10 = vmax.f32 %v579_v24, 0.0 }
 0x122   : > { %2649 = vrot.lane.b32.xlu2 %v2648_v36, %s2714_s19  ;;  %2654 = vrot.lane.b32.xlu0 %v2653_v31, %s2714_s19 }
 0x123   : > { %v676_v52 = vmul.f32 %v3867_v5, %v643_v46  ;;  %v677_v58 = vmul.f32 %v3871_v44, %v644_v10  ;;  %2659 = vrot.lane.b32.xlu1 %v2658_v48, %s2698_s28  ;;  %v2472_v10 = vunpack.i.h.bf16 %v3886_v23 }
 0x124   : > { %v3906_v15 = vpop.permute.xlu2 %2484  ;;  %v600_v43 = vpop.f32.mrf.mxu2 }
 0x125   : > { %700 = vst [vmem:[%s3889_s30 + $0x20] sm:$0xff] %v676_v52  ;;  %v601_v59 = vadd.f32 %v600_v43, %v3108_v54  ;;  %v624_v27 = vpop.f32.mrf.mxu3  ;;  %v2487_v36 = vunpack.i.h.bf16 %v3906_v15  ;;  %v2486_v38 = vunpack.i.l.bf16 %v3906_v15 }
 0x126   : > { %701 = vst [vmem:[%s3889_s30 + $0x28] sm:$0xff] %v677_v58  ;;  %v625_v42 = vadd.f32 %v624_v27, %v3108_v54  ;;  %v557_v6 = vpop.f32.mrf.mxu0  ;;  %v581_v11 = vpop.f32.mrf.mxu1 }
 0x127   : > { %v641_v41 = vmax.f32 %v601_v59, 0.0  ;;  %v558_v32 = vadd.f32 %v557_v6, %v3106_v53  ;;  %v582_v34 = vadd.f32 %v581_v11, %v3106_v53 }
 0x128   : > { %v642_v49 = vmax.f32 %v625_v42, 0.0 }
 0x129   : > { %v674_v0 = vmul.f32 %v3911_v13, %v641_v41  ;;  %v647_v12 = vmax.f32 %v558_v32, 0.0  ;;  %v648_v50 = vmax.f32 %v582_v34, 0.0  ;;  %v749_v32 = vsel %vm4632_vm7, %v746_v8, %v3114_v57  ;;  %vm4643_vm7 = vmmov %vm4641_vm1 }
 0x12a   : > { %v675_v54 = vmul.f32 %v3916_v3, %v642_v49  ;;  %2664 = vrot.lane.b32.xlu2 %v2663_v21, %s2698_s28  ;;  %s3997_s28 = scalar_lea.vmem [#allocation4], %s3863_s13 }
 0x12b   : > { %698 = vst [vmem:[%s3889_s30 + $0x10] sm:$0xff] %v674_v0  ;;  %v680_v39 = vmul.f32 %v3867_v5, %v647_v12  ;;  %v681_v18 = vmul.f32 %v3871_v44, %v648_v50  ;;  %v753_v12 = vunpack.c.l.b16 %v749_v32 }
 0x12c   : > { %699 = vst [vmem:[%s3889_s30 + $0x18] sm:$0xff] %v675_v54  ;;  %v3927_v63 = vpop.permute.xlu2 %2509  ;;  %v602_v22 = vpop.f32.mrf.mxu2 }
 0x12d   : > { %704 = vst [vmem:[%s3930_s22] sm:$0xff] %v680_v39  ;;  %v603_v19 = vadd.f32 %v602_v22, %v3112_v56  ;;  %v626_v35 = vpop.f32.mrf.mxu3  ;;  %v754_v22 = vunpack.c.h.b16 %v749_v32  ;;  %vm4011_vm11 = vcmp.ne.s32.totalorder %v753_v12, %v3143_v16 }
 0x12e   : > { %705 = vst [vmem:[%s3930_s22 + $0x8] sm:$0xff] %v681_v18  ;;  %v627_v61 = vadd.f32 %v626_v35, %v3112_v56  ;;  %v559_v29 = vpop.f32.mrf.mxu0  ;;  %v583_v28 = vpop.f32.mrf.mxu1 }
 0x12f   : > { %v645_v37 = vmax.f32 %v603_v19, 0.0  ;;  %v560_v45 = vadd.f32 %v559_v29, %v3110_v55  ;;  %v584_v4 = vadd.f32 %v583_v28, %v3110_v55  ;;  %vm4017_vm10 = vcmp.ne.s32.totalorder %v754_v22, %v3146_v17 }
 0x130   : > { %v646_v2 = vmax.f32 %v627_v61, 0.0  ;;  %vm759_vm2 = vmpackc.low %vm4017_vm10, %vm4011_vm11 }
 0x131   : > { %v678_v30 = vmul.f32 %v3911_v13, %v645_v37  ;;  %v651_v60 = vmax.f32 %v560_v45, 0.0  ;;  %v652_v7 = vmax.f32 %v584_v4, 0.0  ;;  %vm4644_vm11 = vmmov %vm4641_vm1 }
 0x132   : > { %v679_v20 = vmul.f32 %v3916_v3, %v646_v2  ;;  %vm4647_vm10 = vmmov %vm4641_vm1 }
 0x133   : > { %702 = vst [vmem:[%s3889_s30 + $0x30] sm:$0xff] %v678_v30  ;;  %v684_v62 = vmul.f32 %v3867_v5, %v651_v60  ;;  %v685_v56 = vmul.f32 %v3871_v44, %v652_v7 }
 0x134   : > { %703 = vst [vmem:[%s3889_s30 + $0x38] sm:$0xff] %v679_v20  ;;  %v3944_v33 = vpop.permute.xlu0 %2474  ;;  %v3946_v24 = vpop.permute.xlu2 %2519 }
 0x135   : > { %708 = vst [vmem:[%s3930_s22 + $0x20] sm:$0xff] %v684_v62  ;;  %v2477_v31 = vunpack.i.h.bf16 %v3944_v33  ;;  %v605_v40 = vpop.f32.mrf.mxu2  ;;  %v629_v46 = vpop.f32.mrf.mxu3  ;;  %v767_v62 = vunpack.c.l.b16 %v3132_v9 }
 0x136   : > { %709 = vst [vmem:[%s3930_s22 + $0x28] sm:$0xff] %v685_v56  ;;  %v606_v48 = vadd.f32 %v605_v40, %v3106_v53  ;;  %v630_v52 = vadd.f32 %v629_v46, %v3106_v53  ;;  %v3955_v58 = vpop.permute.xlu1 %2479  ;;  %v562_v43 = vpop.f32.mrf.mxu0  ;;  %v768_v56 = vunpack.c.h.b16 %v3132_v9 }
 0x137   : > { %v3961_v1 = vsel %vm1301_vm3, %v2477_v31, %v2487_v36  ;;  %v2482_v59 = vunpack.i.h.bf16 %v3955_v58  ;;  %v2481_v27 = vunpack.i.l.bf16 %v3955_v58  ;;  %v586_v42 = vpop.f32.mrf.mxu1  ;;  %v563_v53 = vadd.f32 %v562_v43, %v3099_v47 }
 0x138   : > { %v649_v6 = vmax.f32 %v606_v48, 0.0  ;;  %v650_v11 = vmax.f32 %v630_v52, 0.0  ;;  %v587_v41 = vadd.f32 %v586_v42, %v3099_v47  ;;  %vm4037_vm4 = vcmp.ne.s32.totalorder %v767_v62, %v3143_v16  ;;  %v2670_v16 = vld [vmem:[%s2818_s15] sm:$0xff] }
 0x139   : > { %v3976_v34 = vsel %vm1301_vm3, %v2472_v10, %v2481_v27  ;;  %v3983_v49 = vsel %vm1301_vm3, %v2482_v59, %v2486_v38  ;;  %v655_v57 = vmax.f32 %v563_v53, 0.0  ;;  %vm4042_vm15 = vcmp.ne.s32.totalorder %v768_v56, %v3146_v17 }
 0x13a   : > { %v682_v21 = vmul.f32 %v3911_v13, %v649_v6  ;;  %v683_v0 = vmul.f32 %v3916_v3, %v650_v11  ;;  %v656_v8 = vmax.f32 %v587_v41, 0.0  ;;  %v4059_v17 = vsel %vm759_vm2, 4048220490, %v2670_v16  ;;  %vm773_vm5 = vmpackc.low %vm4042_vm15, %vm4037_vm4 }
 0x13b   : > { %v688_v50 = vmul.f32 %v3867_v5, %v655_v57  ;;  %vm4649_vm4 = vmmov %vm4641_vm1 }
 0x13c   : > { %706 = vst [vmem:[%s3930_s22 + $0x10] sm:$0xff] %v682_v21  ;;  %v689_v54 = vmul.f32 %v3871_v44, %v656_v8  ;;  %v3990_v39 = vpop.permute.xlu0 %2489  ;;  %v3992_v18 = vpop.permute.xlu2 %2534  ;;  %v2671_v8 = vld [vmem:[%s2818_s15 + $0x14] sm:$0xff]  ;;  %vm4650_vm15 = vmmov %vm4641_vm1 }
 0x13d   : > { %707 = vst [vmem:[%s3930_s22 + $0x18] sm:$0xff] %v683_v0  ;;  %v2491_v19 = vunpack.i.l.bf16 %v3990_v39  ;;  %v607_v35 = vpop.f32.mrf.mxu2  ;;  %v631_v61 = vpop.f32.mrf.mxu3  ;;  %v4067_v12 = vsel %vm759_vm2, 4048220490, %v2671_v8  ;;  %v2536_v30 = vunpack.i.l.bf16 %v3992_v18  ;;  %vm4648_vm2 = vmmov %vm4641_vm1 }
 0x13e   : > { %712 = vst [vmem:[%s3997_s28] sm:$0xff] %v688_v50  ;;  %v608_v29 = vadd.f32 %v607_v35, %v3110_v55  ;;  %v632_v28 = vadd.f32 %v631_v61, %v3110_v55  ;;  %v4002_v37 = vpop.permute.xlu1 %2499  ;;  %v564_v45 = vpop.f32.mrf.mxu0  ;;  %v839_v22 = vunpack.c.l.bf16 %v4067_v12 }
 0x13f   : > { %713 = vst [vmem:[%s3997_s28 + $0x8] sm:$0xff] %v689_v54  ;;  %v4008_v4 = vsel %vm1301_vm3, %v2487_v36, %v2491_v19  ;;  %v588_v2 = vpop.f32.mrf.mxu1  ;;  %v565_v55 = vadd.f32 %v564_v45, %v3104_v51  ;;  %v834_v54 = vunpack.c.l.bf16 %v4059_v17  ;;  %v2511_v45 = vunpack.i.l.bf16 %v3927_v63 }
 0x140   : > { %v653_v60 = vmax.f32 %v608_v29, 0.0  ;;  %v654_v7 = vmax.f32 %v632_v28, 0.0  ;;  %v589_v36 = vadd.f32 %v588_v2, %v3104_v51  ;;  %v776_v29 = vsel %vm773_vm5, 4048220490, %v3278_v14 }
 0x141   : > { %v659_v48 = vmax.f32 %v565_v55, 0.0  ;;  %v2512_v28 = vunpack.i.h.bf16 %v3927_v63  ;;  %v2537_v2 = vunpack.i.h.bf16 %v3992_v18  ;;  %v2476_v55 = vunpack.i.l.bf16 %v3944_v33 }
 0x142   : > { %v686_v40 = vmul.f32 %v3911_v13, %v653_v60  ;;  %v687_v46 = vmul.f32 %v3916_v3, %v654_v7  ;;  %v660_v52 = vmax.f32 %v589_v36, 0.0  ;;  %v2501_v18 = vunpack.i.l.bf16 %v4002_v37 }
 0x143   : > { %v692_v43 = vmul.f32 %v3867_v5, %v659_v48 }
 0x144   : > { %710 = vst [vmem:[%s3930_s22 + $0x30] sm:$0xff] %v686_v40  ;;  %v4032_v9 = vpop.permute.xlu2 %2549  ;;  %v4034_v42 = vpop.permute.xlu0 %2494  ;;  %v693_v53 = vmul.f32 %v3871_v44, %v660_v52  ;;  %v2502_v40 = vunpack.i.h.bf16 %v4002_v37 }
 0x145   : > { %711 = vst [vmem:[%s3930_s22 + $0x38] sm:$0xff] %v687_v46  ;;  %v610_v41 = vpop.f32.mrf.mxu2  ;;  %v634_v32 = vpop.f32.mrf.mxu3  ;;  %v2496_v8 = vunpack.i.l.bf16 %v4034_v42 }
 0x146   : > { %716 = vst [vmem:[%s3997_s28 + $0x20] sm:$0xff] %v692_v43  ;;  %v611_v21 = vadd.f32 %v610_v41, %v3099_v47  ;;  %v635_v0 = vadd.f32 %v634_v32, %v3099_v47  ;;  %v4051_v57 = vpop.permute.xlu1 %2514 }
 0x147   : > { %717 = vst [vmem:[%s3997_s28 + $0x28] sm:$0xff] %v693_v53 }
 0x148   : > { %v657_v47 = vmax.f32 %v611_v21, 0.0  ;;  %v658_v50 = vmax.f32 %v635_v0, 0.0  ;;  %v1029_v21 = vsel %vm1024_vm9, %v2536_v30, %v2537_v2  ;;  %v1169_v30 = vsel %vm1164_vm12, %v2501_v18, %v2502_v40 }
 0x14a   : > { %v690_v35 = vmul.f32 %v3911_v13, %v657_v47  ;;  %v691_v61 = vmul.f32 %v3916_v3, %v658_v50 }
 0x14c   : > { %714 = vst [vmem:[%s3997_s28 + $0x10] sm:$0xff] %v690_v35  ;;  %v4089_v60 = vpop.permute.xlu2 %2559  ;;  %v4091_v7 = vpop.permute.xlu0 %2504  ;;  %v840_v35 = vunpack.c.h.bf16 %v4067_v12 }
 0x14d   : > { %715 = vst [vmem:[%s3997_s28 + $0x18] sm:$0xff] %v691_v61  ;;  %v2561_v14 = vunpack.i.l.bf16 %v4089_v60  ;;  %v2507_v20 = vunpack.i.h.bf16 %v4091_v7  ;;  %v2506_v62 = vunpack.i.l.bf16 %v4091_v7  ;;  %v612_v56 = vpop.f32.mrf.mxu2  ;;  %v636_v36 = vpop.f32.mrf.mxu3  ;;  %v2562_v43 = vunpack.i.h.bf16 %v4089_v60 }
 0x14e   : > { %v613_v46 = vadd.f32 %v612_v56, %v3104_v51  ;;  %v637_v48 = vadd.f32 %v636_v36, %v3104_v51  ;;  %v4102_v52 = vpop.permute.xlu1 %2529  ;;  %v2497_v51 = vunpack.i.h.bf16 %v4034_v42  ;;  %v838_v61 = vunpack.c.l.bf16 %v776_v29 }
 0x14f   : > { %v889_v53 = vsel %vm884_vm13, %v2512_v28, %v2561_v14  ;;  %v885_v41 = vsel %vm884_vm13, %v2506_v62, %v2507_v20  ;;  %v2532_v32 = vunpack.i.h.bf16 %v4102_v52  ;;  %v2531_v50 = vunpack.i.l.bf16 %v4102_v52 }
 0x150   : > { %v908_v0 = vmax.f32 %v839_v22, %v889_v53  ;;  %v903_v37 = vmax.f32 %v834_v54, %v885_v41  ;;  %v661_v16 = vmax.f32 %v613_v46, 0.0  ;;  %v662_v47 = vmax.f32 %v637_v48, 0.0 }
 0x151   : > { %v890_v54 = vsel %vm884_vm13, %v2561_v14, %v2562_v43  ;;  %v1025_v56 = vsel %vm1024_vm9, %v2531_v50, %v2532_v32  ;;  %v2471_v36 = vunpack.i.l.bf16 %v3886_v23  ;;  %v907_v12 = vmax.f32 %v838_v61, %v2511_v45 }
 0x152   : > { %v1048_v28 = vmax.f32 %v908_v0, %v1029_v21  ;;  %v694_v62 = vmul.f32 %v3911_v13, %v661_v16  ;;  %v695_v22 = vmul.f32 %v3916_v3, %v662_v47  ;;  %v1043_v29 = vmax.f32 %v903_v37, %v1025_v56 }
 0x153   : > { %v4137_v14 = vsel %vm1301_vm3, %v2476_v55, %v2477_v31  ;;  %v1165_v53 = vsel %vm1164_vm12, %v2496_v8, %v2497_v51  ;;  %v909_v0 = vmax.f32 %v840_v35, %v890_v54  ;;  %v2522_v31 = vunpack.i.h.bf16 %v3946_v24 }
 0x154   : > { %718 = vst [vmem:[%s3997_s28 + $0x30] sm:$0xff] %v694_v62  ;;  %v4128_v46 = vpop.permute.xlu2 %2574  ;;  %v4130_v18 = vpop.permute.xlu0 %2524  ;;  %v4132_v48 = vmax.f32 %v1048_v28, %v1169_v30  ;;  %v4145_v37 = vmax.f32 %v1043_v29, %v1165_v53  ;;  %v2521_v55 = vunpack.i.l.bf16 %v3946_v24  ;;  %v4159_v35 = vsel %vm1301_vm3, %v2471_v36, %v2472_v10 }
 0x155   : > { %719 = vst [vmem:[%s3997_s28 + $0x38] sm:$0xff] %v695_v22  ;;  %v2577_v41 = vunpack.i.h.bf16 %v4128_v46  ;;  %v2576_v21 = vunpack.i.l.bf16 %v4128_v46  ;;  %v1170_v61 = vsel %vm1164_vm12, %v2502_v40, %v2522_v31  ;;  %v836_v29 = vunpack.c.l.bf16 %v3163_v25 }
 0x156   : > { %v4147_v16 = vpop.permute.xlu1 %2544  ;;  %v1320_v30 = vmax.f32 %v4145_v37, %v4159_v35  ;;  %v841_v53 = vunpack.c.l.bf16 %v3166_v26  ;;  %v1304_v42 = vsel %vm1301_vm3, %v2481_v27, %v2482_v59  ;;  %v2526_v60 = vunpack.i.l.bf16 %v4130_v18 }
 0x157   : > { %v1030_v8 = vsel %vm1024_vm9, %v2537_v2, %v2577_v41  ;;  %v1047_v47 = vmax.f32 %v907_v12, %v2576_v21  ;;  %v835_v12 = vunpack.c.h.bf16 %v4059_v17  ;;  %v2516_v17 = vunpack.i.l.bf16 %v4051_v57 }
 0x158   : > { %v1049_v50 = vmax.f32 %v909_v0, %v1030_v8  ;;  %v2492_v59 = vunpack.i.h.bf16 %v3990_v39 }
 0x159   : > { %v1187_v28 = vmax.f32 %v1047_v47, %v2521_v55 }
 0x15a   : > { %v4164_v62 = vmax.f32 %v1049_v50, %v1170_v61  ;;  %v2517_v50 = vunpack.i.h.bf16 %v4051_v57  ;;  %v2672_v61 = vld [vmem:[%s2818_s15 + $0x24] sm:$0xf]  ;;  %v1309_v46 = vsel %vm1301_vm3, %v2491_v19, %v2492_v59 }
 0x15b   : > { %v4170_v2 = vmax.f32 %v1187_v28, %v2486_v38  ;;  %v837_v38 = vunpack.c.h.bf16 %v3163_v25  ;;  %v779_v25 = vsel %vm773_vm5, 4048220490, %v2672_v61  ;;  %vm4651_vm5 = vcmask 130048  }
 0x15c   : > { %v4172_v54 = vpop.permute.xlu0 %2539  ;;  %v4176_v22 = vpop.permute.xlu2 %2584  ;;  %v843_v57 = vunpack.c.l.bf16 %v779_v25  ;;  %v4646_v35 = vmax.f32 %v4164_v62, %v3961_v1 }
 0x15d   : > { %v2542_v39 = vunpack.i.h.bf16 %v4172_v54  ;;  %v2541_v19 = vunpack.i.l.bf16 %v4172_v54 }
 0x15e   : > { %v2555_v10 = vpop.permute.xlu1 %2554 }
 0x15f   : > { %v2557_v40 = vunpack.i.h.bf16 %v2555_v10  ;;  %v2556_v56 = vunpack.i.l.bf16 %v2555_v10 }
 0x161   : > { %v888_v15 = vsel %vm884_vm13, %v2557_v40, %v2511_v45  ;;  %v886_v0 = vsel %vm884_vm13, %v2507_v20, %v2556_v56  ;;  %v887_v8 = vsel %vm884_vm13, %v2556_v56, %v2557_v40  ;;  %v842_v20 = vunpack.c.h.bf16 %v3166_v26 }
 0x162   : > { %v906_v45 = vmax.f32 %v837_v38, %v888_v15  ;;  %v904_v40 = vmax.f32 %v835_v12, %v886_v0  ;;  %v905_v56 = vmax.f32 %v836_v29, %v887_v8  ;;  %v1168_v26 = vsel %vm1164_vm12, %v2517_v50, %v2521_v55 }
 0x164   : > { %v2565_v36 = vpop.permute.xlu0 %2564  ;;  %v4199_v33 = vpop.permute.xlu2 %2604 }
 0x165   : > { %v2567_v28 = vunpack.i.h.bf16 %v2565_v36  ;;  %v2566_v7 = vunpack.i.l.bf16 %v2565_v36  ;;  %v1166_v36 = vsel %vm1164_vm12, %v2497_v51, %v2516_v17  ;;  %v2527_v51 = vunpack.i.h.bf16 %v4130_v18 }
 0x166   : > { %v2570_v47 = vpop.permute.xlu1 %2569 }
 0x167   : > { %v2572_v63 = vunpack.i.h.bf16 %v2570_v47  ;;  %v2571_v10 = vunpack.i.l.bf16 %v2570_v47  ;;  %v891_v15 = vsel %vm884_vm13, %v2562_v43, %v2566_v7  ;;  %v892_v52 = vsel %vm884_vm13, %v2566_v7, %v2567_v28  ;;  %vm4654_vm13 = vmmov %vm4651_vm5 }
 0x168   : > { %v911_v25 = vmax.f32 %v842_v20, %v892_v52 }
 0x169   : > { %v1028_v23 = vsel %vm1024_vm9, %v2572_v63, %v2576_v21  ;;  %v1026_v6 = vsel %vm1024_vm9, %v2532_v32, %v2571_v10  ;;  %v1027_v11 = vsel %vm1024_vm9, %v2571_v10, %v2572_v63  ;;  %v1167_v21 = vsel %vm1164_vm12, %v2516_v17, %v2517_v50 }
 0x16a   : > { %v1046_v61 = vmax.f32 %v906_v45, %v1028_v23  ;;  %v1044_v12 = vmax.f32 %v904_v40, %v1026_v6  ;;  %v1045_v29 = vmax.f32 %v905_v56, %v1027_v11  ;;  %v912_v50 = vmax.f32 %v843_v57, %v2567_v28 }
 0x16b   : > { %v910_v17 = vmax.f32 %v841_v53, %v891_v15  ;;  %v1171_v10 = vsel %vm1164_vm12, %v2522_v31, %v2526_v60  ;;  %v2552_v11 = vunpack.i.h.bf16 %v4032_v9  ;;  %v1441_v15 = vsel %vm1438_vm8, %v2541_v19, %v2542_v39 }
 0x16c   : > { %v4214_v32 = vmax.f32 %v1046_v61, %v1168_v26  ;;  %v2580_v38 = vpop.permute.xlu0 %2579  ;;  %v4222_v55 = vmax.f32 %v1044_v12, %v1166_v36  ;;  %v1185_v23 = vmax.f32 %v1045_v29, %v1167_v21  ;;  %v2551_v61 = vunpack.i.l.bf16 %v4032_v9 }
 0x16d   : > { %v2582_v0 = vunpack.i.h.bf16 %v2580_v38  ;;  %v2581_v43 = vunpack.i.l.bf16 %v2580_v38  ;;  %v2547_v36 = vunpack.i.h.bf16 %v4147_v16  ;;  %v2546_v12 = vunpack.i.l.bf16 %v4147_v16  ;;  %v1889_v16 = vld [vmem:[%s4470_s6] sm:$0xff] }
 0x16e   : > { %v4225_v8 = vpop.permute.xlu1 %2594  ;;  %v1323_v47 = vmax.f32 %v4214_v32, %v3983_v49  ;;  %v1322_v58 = vmax.f32 %v1185_v23, %v1304_v42  ;;  %v1172_v49 = vsel %vm1164_vm12, %v2526_v60, %v2527_v51  ;;  %v1321_v53 = vmax.f32 %v4222_v55, %v3976_v34  ;;  %vm4653_vm12 = vmmov %vm4651_vm5 }
 0x16f   : > { %v1031_v27 = vsel %vm1024_vm9, %v2577_v41, %v2581_v43  ;;  %v1032_v63 = vsel %vm1024_vm9, %v2581_v43, %v2582_v0  ;;  %v1052_v7 = vmax.f32 %v912_v50, %v2582_v0  ;;  %v4243_v41 = vpop.permute.xlu2 %2619  ;;  %v1446_v26 = vsel %vm1438_vm8, %v2551_v61, %v2552_v11  ;;  %vm4652_vm9 = vmmov %vm4651_vm5 }
 0x170   : > { %v1050_v18 = vmax.f32 %v910_v17, %v1031_v27  ;;  %v1051_v45 = vmax.f32 %v911_v25, %v1032_v63  ;;  %v2587_v29 = vunpack.i.h.bf16 %v4176_v22  ;;  %v2586_v9 = vunpack.i.l.bf16 %v4176_v22 }
 0x171   : > { %v1192_v40 = vmax.f32 %v1052_v7, %v2527_v51  ;;  %v2597_v52 = vunpack.i.h.bf16 %v4225_v8  ;;  %v2596_v32 = vunpack.i.l.bf16 %v4225_v8  ;;  %v1461_v42 = vmax.f32 %v4170_v2, %v2546_v12 }
 0x172   : > { %v1190_v28 = vmax.f32 %v1050_v18, %v1171_v10  ;;  %v1191_v20 = vmax.f32 %v1051_v45, %v1172_v49  ;;  %v1459_v0 = vmax.f32 %v1322_v58, %v1441_v15  ;;  %v1582_v8 = vsel %vm1579_vm0, %v2586_v9, %v2587_v29 }
 0x173   : > { %v1329_v24 = vmax.f32 %v1192_v40, %v2492_v59  ;;  %v1442_v27 = vsel %vm1438_vm8, %v2542_v39, %v2546_v12  ;;  %v2607_v2 = vunpack.i.h.bf16 %v4199_v33  ;;  %v2606_v18 = vunpack.i.l.bf16 %v4199_v33 }
 0x174   : > { %v4245_v56 = vpop.permute.xlu0 %2589  ;;  %v1328_v57 = vmax.f32 %v1191_v20, %v1309_v46  ;;  %v1327_v31 = vmax.f32 %v1190_v28, %v4008_v4  ;;  %v1445_v4 = vsel %vm1438_vm8, %v2547_v36, %v2551_v61  ;;  %v1587_v58 = vsel %vm1579_vm0, %v2596_v32, %v2597_v52 }
 0x175   : > { %v2591_v38 = vunpack.i.l.bf16 %v4245_v56  ;;  %v1466_v51 = vmax.f32 %v1329_v24, %v2552_v11  ;;  %v2592_v60 = vunpack.i.h.bf16 %v4245_v56  ;;  %v1460_v45 = vmax.f32 %v1323_v47, %v1442_v27 }
 0x176   : > { %v4248_v6 = vpop.permute.xlu1 %2599  ;;  %v1465_v63 = vmax.f32 %v1328_v57, %v1446_v26  ;;  %v1464_v28 = vmax.f32 %v1327_v31, %v1445_v4  ;;  %v1600_v20 = vmax.f32 %v1459_v0, %v1582_v8 }
 0x177   : > { %v2635_v23 = vpop.permute.xlu2 %2634  ;;  %v2602_v50 = vunpack.i.h.bf16 %v4248_v6  ;;  %v2601_v17 = vunpack.i.l.bf16 %v4248_v6  ;;  %v1583_v7 = vsel %vm1579_vm0, %v2587_v29, %v2591_v38  ;;  %v1586_v49 = vsel %vm1579_vm0, %v2592_v60, %v2596_v32 }
 0x178   : > { %v2637_v10 = vunpack.i.h.bf16 %v2635_v23  ;;  %v1607_v40 = vmax.f32 %v1466_v51, %v2597_v52  ;;  %v1602_v46 = vmax.f32 %v1461_v42, %v2591_v38  ;;  %v1606_v11 = vmax.f32 %v1465_v63, %v1587_v58 }
 0x179   : > { %v1719_v57 = vsel %vm1716_vm14, %v2601_v17, %v2602_v50  ;;  %v2636_v61 = vunpack.i.l.bf16 %v2635_v23  ;;  %v1601_v47 = vmax.f32 %v1460_v45, %v1583_v7  ;;  %v1720_v39 = vsel %vm1716_vm14, %v2602_v50, %v2606_v18 }
 0x17a   : > { %v1737_v15 = vmax.f32 %v1600_v20, %v1719_v57  ;;  %v1739_v23 = vmax.f32 %v1602_v46, %v2606_v18 }
 0x17b   : > { %v1861_v0 = vsel %vm4642_vm6, %v2636_v61, %v2637_v10  ;;  %v1738_v50 = vmax.f32 %v1601_v47, %v1720_v39 }
 0x17c   : > { %v2610_v21 = vpop.permute.xlu0 %2609 }
 0x17d   : > { %v2612_v25 = vunpack.i.h.bf16 %v2610_v21  ;;  %v2611_v59 = vunpack.i.l.bf16 %v2610_v21  ;;  %v1605_v21 = vmax.f32 %v1464_v28, %v1586_v49 }
 0x17e   : > { %v4270_v43 = vpop.permute.xlu1 %2614 }
 0x17f   : > { %v1724_v24 = vsel %vm1716_vm14, %v2611_v59, %v2612_v25  ;;  %v1723_v31 = vsel %vm1716_vm14, %v2607_v2, %v2611_v59  ;;  %v1744_v12 = vmax.f32 %v1607_v40, %v2612_v25  ;;  %v2650_v25 = vpop.permute.xlu2 %2649  ;;  %v2617_v20 = vunpack.i.h.bf16 %v4270_v43 }
 0x180   : > { %v1743_v52 = vmax.f32 %v1606_v11, %v1724_v24  ;;  %v1742_v59 = vmax.f32 %v1605_v21, %v1723_v31  ;;  %v2616_v18 = vunpack.i.l.bf16 %v4270_v43  ;;  %v2621_v11 = vunpack.i.l.bf16 %v4243_v41 }
 0x181   : > { %v1881_v27 = vmax.f32 %v1744_v12, %v2637_v10  ;;  %v2622_v10 = vunpack.i.h.bf16 %v4243_v41  ;;  %v1440_v43 = vsel %vm1438_vm8, %v2617_v20, %v2541_v19 }
 0x182   : > { %v1880_v49 = vmax.f32 %v1743_v52, %v1861_v0  ;;  %v1439_v31 = vsel %vm1438_vm8, %v2616_v18, %v2617_v20  ;;  %v1458_v19 = vmax.f32 %v1321_v53, %v1440_v43 }
 0x183   : > { %v1443_v21 = vsel %vm1438_vm8, %v2621_v11, %v2622_v10  ;;  %v1444_v41 = vsel %vm1438_vm8, %v2622_v10, %v2547_v36  ;;  %v1457_v54 = vmax.f32 %v1320_v30, %v1439_v31  ;;  %v2416_v11 = vld [vmem:[%s4469_s5] sm:$0xff] }
 0x184   : > { %v4290_v26 = vpop.permute.xlu0 %2624  ;;  %v1463_v34 = vmax.f32 %v4646_v35, %v1444_v41 }
 0x185   : > { %v2627_v4 = vunpack.i.h.bf16 %v4290_v26  ;;  %v2626_v29 = vunpack.i.l.bf16 %v4290_v26 }
 0x186   : > { %v4297_v32 = vpop.permute.xlu1 %2629 }
 0x187   : > { %v1856_v38 = vsel %vm4641_vm1, %v2626_v29, %v2627_v4  ;;  %v2632_v42 = vunpack.i.h.bf16 %v4297_v32  ;;  %v2631_v51 = vunpack.i.l.bf16 %v4297_v32  ;;  %v1890_v32 = vld [vmem:[%s4470_s6 + $0x8] sm:$0xff] }
 0x188   : > { %v1874_v8 = vmax.f32 %v1737_v15, %v1856_v38  ;;  %v2652_v38 = vunpack.i.h.bf16 %v2650_v25 }
 0x189   : > { %v1860_v63 = vsel %vm4643_vm7, %v2632_v42, %v2636_v61  ;;  %v1857_v58 = vsel %vm4644_vm11, %v2627_v4, %v2631_v51  ;;  %v1876_v45 = vmax.f32 %v1739_v23, %v2631_v51  ;;  %v2651_v51 = vunpack.i.l.bf16 %v2650_v25  ;;  %v2665_v23 = vpop.permute.xlu2 %2664 }
 0x18a   : > { %v1875_v7 = vmax.f32 %v1738_v50, %v1857_v58  ;;  %v1879_v28 = vmax.f32 %v1742_v59, %v1860_v63  ;;  %v2667_v0 = vunpack.i.h.bf16 %v2665_v23  ;;  %v2666_v50 = vunpack.i.l.bf16 %v2665_v23 }
 0x18b   : > { %v1886_v40 = vpack.c.bf16 %v1881_v27, %v1876_v45  ;;  %v1717_v56 = vsel %vm1716_vm14, %v2651_v51, %v2652_v38 }
 0x18c   : > { %v2640_v46 = vpop.permute.xlu0 %2639  ;;  %v1885_v57 = vpack.c.bf16 %v1880_v49, %v1875_v7  ;;  %v1884_v24 = vpack.c.bf16 %v1879_v28, %v1874_v8  ;;  %v1858_v28 = vsel %vm4647_vm10, %v2666_v50, %v2667_v0  ;;  %v1859_v6 = vsel %vm4648_vm2, %v2667_v0, %v2632_v42 }
 0x18d   : > { %v2642_v47 = vunpack.i.h.bf16 %v2640_v46  ;;  %v2641_v61 = vunpack.i.l.bf16 %v2640_v46  ;;  %1919 = vrot.lane.b32.xlu2 %v1886_v40, %s2708_s25 }
 0x18e   : > { %v2645_v39 = vpop.permute.xlu1 %2644  ;;  %1917 = vrot.lane.b32.xlu1 %v1885_v57, %s2708_s25  ;;  %1915 = vrot.lane.b32.xlu0 %v1884_v24, %s2708_s25 }
 0x18f   : > { %v2647_v12 = vunpack.i.h.bf16 %v2645_v39  ;;  %v2646_v4 = vunpack.i.l.bf16 %v2645_v39  ;;  %v1581_v15 = vsel %vm1579_vm0, %v2642_v47, %v2586_v9  ;;  %v1580_v52 = vsel %vm1579_vm0, %v2641_v61, %v2642_v47 }
 0x190   : > { %v4645_v9 = vmax.f32 %v4132_v48, %v4137_v14  ;;  %v1598_v30 = vmax.f32 %v1457_v54, %v1580_v52  ;;  %v1599_v55 = vmax.f32 %v1458_v19, %v1581_v15 }
 0x191   : > { %v1584_v22 = vsel %vm1579_vm0, %v2646_v4, %v2647_v12  ;;  %v1585_v36 = vsel %vm1579_vm0, %v2647_v12, %v2592_v60  ;;  %v1718_v60 = vsel %vm1716_vm14, %v2652_v38, %v2601_v17 }
 0x192   : > { %v1462_v37 = vmax.f32 %v4645_v9, %v1443_v21  ;;  %v1604_v14 = vmax.f32 %v1463_v34, %v1585_v36  ;;  %v1736_v7 = vmax.f32 %v1599_v55, %v1718_v60  ;;  %v1735_v49 = vmax.f32 %v1598_v30, %v1717_v56 }
 0x194   : > { %v2655_v53 = vpop.permute.xlu0 %2654  ;;  %v1603_v48 = vmax.f32 %v1462_v37, %v1584_v22 }
 0x195   : > { %v2657_v25 = vunpack.i.h.bf16 %v2655_v53  ;;  %v2656_v59 = vunpack.i.l.bf16 %v2655_v53  ;;  %1893 = vperm.xlu2 %2467, %v1889_v16  }
 0x196   : > { %v2660_v8 = vpop.permute.xlu1 %2659 }
 0x197   : > { %v1722_v1 = vsel %vm1716_vm14, %v2657_v25, %v2607_v2  ;;  %v1721_v62 = vsel %vm1716_vm14, %v2656_v59, %v2657_v25  ;;  %v2662_v27 = vunpack.i.h.bf16 %v2660_v8  ;;  %v2661_v63 = vunpack.i.l.bf16 %v2660_v8 }
 0x198   : > { %v1740_v58 = vmax.f32 %v1603_v48, %v1721_v62  ;;  %v1741_v45 = vmax.f32 %v1604_v14, %v1722_v1  ;;  %v2047_v62 = vld [vmem:[%s3889_s30] sm:$0xff] (%p2796_p4) }
 0x199   : > { %v1854_v17 = vsel %vm4649_vm4, %v2661_v63, %v2662_v27  ;;  %v1855_v33 = vsel %vm4650_vm15, %v2662_v27, %v2626_v29  ;;  %v2049_v27 = vld [vmem:[%s3889_s30 + $0x8] sm:$0xff] (%p2796_p4)  ;;  %2048 = vst [vmem:[%s2034_s26] sm:$0xff] (%p2796_p4), %v2047_v62  ;;  %v2055_v63 = vld [vmem:[%s3889_s30 + $0x20] sm:$0xff] (%p2796_p4) }
 0x19a   : > { %v1873_v2 = vmax.f32 %v1736_v7, %v1855_v33  ;;  %v1878_v20 = vmax.f32 %v1741_v45, %v1859_v6  ;;  %v1872_v18 = vmax.f32 %v1735_v49, %v1854_v17  ;;  %v1877_v40 = vmax.f32 %v1740_v58, %v1858_v28  ;;  %2050 = vst [vmem:[%s2034_s26 + $0x8] sm:$0xff] (%p2796_p4), %v2049_v27  ;;  %v2057_v58 = vld [vmem:[%s3889_s30 + $0x28] sm:$0xff] (%p2796_p4)  ;;  %v2059_v45 = vld [vmem:[%s3889_s30 + $0x30] sm:$0xff] (%p2796_p4)  ;;  %v2061_v7 = vld [vmem:[%s3889_s30 + $0x38] sm:$0xff] (%p2796_p4) }
 0x19b   : > { %2056 = vst [vmem:[%s2034_s26 + $0x40] sm:$0xff] (%p2796_p4), %v2055_v63 }
 0x19c   : > { %v1883_v46 = vpack.c.bf16 %v1878_v20, %v1873_v2  ;;  %v1882_v57 = vpack.c.bf16 %v1877_v40, %v1872_v18  ;;  %2058 = vst [vmem:[%s2034_s26 + $0x48] sm:$0xff] (%p2796_p4), %v2057_v58 }
 0x19d   : > { %2060 = vst [vmem:[%s2034_s26 + $0x50] sm:$0xff] (%p2796_p4), %v2059_v45 }
 0x19e   : > { %1913 = vrot.lane.b32.xlu1 %v1883_v46, %s2708_s25  ;;  %1911 = vrot.lane.b32.xlu0 %v1882_v57, %s2708_s25  ;;  %s4382_s25 = scalar_lea.vmem [#allocation5], %s3863_s13  ;;  %2062 = vst [vmem:[%s2034_s26 + $0x58] sm:$0xff] (%p2796_p4), %v2061_v7 }
 0x1a6   : > { %1898 = vperm.xlu0 %2465, %v1890_v32  }
 0x1e7   : > { %v1920_v42 = vpop.permute.xlu2 %1919 }
 0x1ef   : > { %v1894_v43 = vpop.permute.xlu2 %1893 }
 0x200   : > { %v1918_v24 = vpop.permute.xlu1 %1917  ;;  %v1916_v26 = vpop.permute.xlu0 %1915 }
 0x201   : > { %v1924_v29 = vsel %vm1301_vm3, %v1916_v26, %v1918_v24  ;;  %v1925_v10 = vsel %vm1301_vm3, %v1918_v24, %v1920_v42 }
 0x202   : > { %1968 = vmatpush.bf16.msrb.mxu2 %v1924_v29  ;;  %1982 = vmatpush.bf16.msrb.mxu3 %v1925_v10 }
 0x205   : > { %2392 = vmatmul.msk.bf16.vlgmr.msrb.gmra.mxu2 %vm4651_vm5, %v2416_v11  ;;  %2393 = vmatmul.msk.bf16.vlgmr.msrb.gmra.mxu3 %vm4652_vm9, %v2416_v11 }
 0x210   : > { %v1914_v47 = vpop.permute.xlu1 %1913  ;;  %v1912_v61 = vpop.permute.xlu0 %1911 }
 0x211   : > { %v1922_v39 = vsel %vm1301_vm3, %v1912_v61, %v1914_v47  ;;  %v1923_v31 = vsel %vm1301_vm3, %v1914_v47, %v1916_v26 }
 0x212   : > { %1940 = vmatpush.bf16.msrb.mxu0 %v1922_v39  ;;  %1954 = vmatpush.bf16.msrb.mxu1 %v1923_v31 }
 0x215   : > { %2390 = vmatmul.msk.bf16.vlgmr.msrb.gmra.mxu0 %vm4653_vm12, %v2416_v11  ;;  %2391 = vmatmul.msk.bf16.vlgmr.msrb.gmra.mxu1 %vm4654_vm13, %v2416_v11 }
 0x218   : > { %v1899_v54 = vpop.permute.xlu0 %1898 }
 0x288   : > { %v1970_v12 = vpop.f32.mrf.mxu2  ;;  %v1984_v4 = vpop.f32.mrf.mxu3 }
 0x289   : > { %v1971_v21 = vadd.f32 %v1970_v12, %v1894_v43  ;;  %v1985_v41 = vadd.f32 %v1984_v4, %v1894_v43 }
 0x28b   : > { %v1991_v15 = vmax.f32 %v1971_v21, 0.0  ;;  %v1992_v52 = vmax.f32 %v1985_v41, 0.0 }
 0x28d   : > { %v1999_v38 = vmul.f32 %v1991_v15, %v3911_v13  ;;  %v2000_v51 = vmul.f32 %v1992_v52, %v3916_v3 }
 0x28f   : > { %2007 = vst [vmem:[%s4382_s25 + $0x10] sm:$0xff] %v1999_v38 }
 0x290   : > { %2008 = vst [vmem:[%s4382_s25 + $0x18] sm:$0xff] %v2000_v51  ;;  %v1972_v19 = vpop.f32.mrf.mxu2  ;;  %v1986_v23 = vpop.f32.mrf.mxu3 }
 0x291   : > { %v1973_v16 = vadd.f32 %v1972_v19, %v1899_v54  ;;  %v1987_v22 = vadd.f32 %v1986_v23, %v1899_v54 }
 0x292   : > { %v1942_v36 = vpop.f32.mrf.mxu0  ;;  %v1956_v9 = vpop.f32.mrf.mxu1 }
 0x293   : > { %v1995_v37 = vmax.f32 %v1973_v16, 0.0  ;;  %v1996_v35 = vmax.f32 %v1987_v22, 0.0  ;;  %v1943_v34 = vadd.f32 %v1942_v36, %v1894_v43  ;;  %v1957_v30 = vadd.f32 %v1956_v9, %v1894_v43 }
 0x295   : > { %v2003_v55 = vmul.f32 %v1995_v37, %v3911_v13  ;;  %v2004_v53 = vmul.f32 %v1996_v35, %v3916_v3  ;;  %v1989_v0 = vmax.f32 %v1943_v34, 0.0  ;;  %v1990_v50 = vmax.f32 %v1957_v30, 0.0 }
 0x297   : > { %2011 = vst [vmem:[%s4382_s25 + $0x30] sm:$0xff] %v2003_v55  ;;  %v1997_v25 = vmul.f32 %v1989_v0, %v3867_v5  ;;  %v1998_v59 = vmul.f32 %v1990_v50, %v3871_v44 }
 0x298   : > { %2012 = vst [vmem:[%s4382_s25 + $0x38] sm:$0xff] %v2004_v53 }
 0x299   : > { %2005 = vst [vmem:[%s4382_s25] sm:$0xff] %v1997_v25 }
 0x29a   : > { %2006 = vst [vmem:[%s4382_s25 + $0x8] sm:$0xff] %v1998_v59  ;;  %v1944_v56 = vpop.f32.mrf.mxu0  ;;  %v1958_v60 = vpop.f32.mrf.mxu1 }
 0x29b   : > { %v1945_v48 = vadd.f32 %v1944_v56, %v1899_v54  ;;  %v1959_v14 = vadd.f32 %v1958_v60, %v1899_v54 }
 0x29d   : > { %v1993_v8 = vmax.f32 %v1945_v48, 0.0  ;;  %v1994_v13 = vmax.f32 %v1959_v14, 0.0 }
 0x29e   : > { %2031 = sbr.rel (!%p2796_p4) target bundleno = 676 (0x2a4), region = 52 }
 0x29f   : > { %v2001_v3 = vmul.f32 %v1993_v8, %v3867_v5  ;;  %v2002_v1 = vmul.f32 %v1994_v13, %v3871_v44  ;;  %v2051_v5 = vld [vmem:[%s3889_s30 + $0x10] sm:$0xff] (%p2796_p4)  ;;  %v2053_v44 = vld [vmem:[%s3889_s30 + $0x18] sm:$0xff] (%p2796_p4) }
 0x2a0   : > { %2052 = vst [vmem:[%s2034_s26 + $0x10] sm:$0xff] (%p2796_p4), %v2051_v5 }
 0x2a1   : > { %2009 = vst [vmem:[%s4382_s25 + $0x20] sm:$0xff] %v2001_v3 }
 0x2a2   : > { %2010 = vst [vmem:[%s4382_s25 + $0x28] sm:$0xff] %v2002_v1 }
 0x2a3   : > { %2054 = vst [vmem:[%s2034_s26 + $0x18] sm:$0xff] %v2053_v44 }
 0x2a4 PF: > { %2068 = sbr.rel (!%p2796_p4) target bundleno = 686 (0x2ae), region = 75  ;;  %s2418_s13 = sshll.u32 (%p2796_p4), %s2784_s16, 5  ;;  %v2084_v49 = vld [vmem:[%s3930_s22] sm:$0xff] (%p2796_p4)  ;;  %v2086_v28 = vld [vmem:[%s3930_s22 + $0x8] sm:$0xff] (%p2796_p4)  ;;  %v2088_v6 = vld [vmem:[%s3930_s22 + $0x10] sm:$0xff] (%p2796_p4) }
 0x2a5   : > { %s2071_s23 = scalar_lea.vmem (%p2796_p4), %s4472_s8, %s2418_s13  ;;  %v2090_v17 = vld [vmem:[%s3930_s22 + $0x18] sm:$0xff] (%p2796_p4)  ;;  %v2092_v33 = vld [vmem:[%s3930_s22 + $0x20] sm:$0xff] (%p2796_p4)  ;;  %v2094_v2 = vld [vmem:[%s3930_s22 + $0x28] sm:$0xff] (%p2796_p4) }
 0x2a6   : > { %2085 = vst [vmem:[%s2071_s23] sm:$0xff] (%p2796_p4), %v2084_v49  ;;  %v2096_v20 = vld [vmem:[%s3930_s22 + $0x30] sm:$0xff] (%p2796_p4)  ;;  %v2098_v18 = vld [vmem:[%s3930_s22 + $0x38] sm:$0xff] (%p2796_p4) }
 0x2a7   : > { %2087 = vst [vmem:[%s2071_s23 + $0x8] sm:$0xff] (%p2796_p4), %v2086_v28 }
 0x2a8   : > { %2089 = vst [vmem:[%s2071_s23 + $0x10] sm:$0xff] (%p2796_p4), %v2088_v6 }
 0x2a9   : > { %2091 = vst [vmem:[%s2071_s23 + $0x18] sm:$0xff] %v2090_v17 }
 0x2aa   : > { %2093 = vst [vmem:[%s2071_s23 + $0x40] sm:$0xff] %v2092_v33 }
 0x2ab   : > { %2095 = vst [vmem:[%s2071_s23 + $0x48] sm:$0xff] %v2094_v2 }
 0x2ac   : > { %2097 = vst [vmem:[%s2071_s23 + $0x50] sm:$0xff] %v2096_v20 }
 0x2ad   : > { %2099 = vst [vmem:[%s2071_s23 + $0x58] sm:$0xff] %v2098_v18 }
 0x2ae PF: > { %2105 = sbr.rel (!%p2796_p4) target bundleno = 696 (0x2b8), region = 98  ;;  %s2419_s24 = sshll.u32 (%p2796_p4), %s2784_s16, 5  ;;  %v2121_v40 = vld [vmem:[%s3997_s28] sm:$0xff] (%p2796_p4)  ;;  %v2123_v46 = vld [vmem:[%s3997_s28 + $0x8] sm:$0xff] (%p2796_p4)  ;;  %v2125_v57 = vld [vmem:[%s3997_s28 + $0x10] sm:$0xff] (%p2796_p4) }
 0x2af   : > { %s2108_s29 = scalar_lea.vmem (%p2796_p4), %s4473_s9, %s2419_s24  ;;  %v2127_v32 = vld [vmem:[%s3997_s28 + $0x18] sm:$0xff] (%p2796_p4)  ;;  %v2129_v42 = vld [vmem:[%s3997_s28 + $0x20] sm:$0xff] (%p2796_p4)  ;;  %v2131_v24 = vld [vmem:[%s3997_s28 + $0x28] sm:$0xff] (%p2796_p4) }
 0x2b0   : > { %2122 = vst [vmem:[%s2108_s29] sm:$0xff] (%p2796_p4), %v2121_v40  ;;  %v2133_v26 = vld [vmem:[%s3997_s28 + $0x30] sm:$0xff] (%p2796_p4)  ;;  %v2135_v29 = vld [vmem:[%s3997_s28 + $0x38] sm:$0xff] (%p2796_p4) }
 0x2b1   : > { %2124 = vst [vmem:[%s2108_s29 + $0x8] sm:$0xff] (%p2796_p4), %v2123_v46 }
 0x2b2   : > { %2126 = vst [vmem:[%s2108_s29 + $0x10] sm:$0xff] (%p2796_p4), %v2125_v57 }
 0x2b3   : > { %2128 = vst [vmem:[%s2108_s29 + $0x18] sm:$0xff] %v2127_v32 }
 0x2b4   : > { %2130 = vst [vmem:[%s2108_s29 + $0x40] sm:$0xff] %v2129_v42 }
 0x2b5   : > { %2132 = vst [vmem:[%s2108_s29 + $0x48] sm:$0xff] %v2131_v24 }
 0x2b6   : > { %2134 = vst [vmem:[%s2108_s29 + $0x50] sm:$0xff] %v2133_v26 }
 0x2b7   : > { %2136 = vst [vmem:[%s2108_s29 + $0x58] sm:$0xff] %v2135_v29 }
 0x2b8 PF: > { %2142 = sbr.rel (!%p2796_p4) target bundleno = 706 (0x2c2), region = 121  ;;  %s2420_s11 = sshll.u32 (%p2796_p4), %s2784_s16, 5  ;;  %v2158_v10 = vld [vmem:[%s4382_s25] sm:$0xff] (%p2796_p4)  ;;  %v2160_v11 = vld [vmem:[%s4382_s25 + $0x8] sm:$0xff] (%p2796_p4)  ;;  %v2162_v47 = vld [vmem:[%s4382_s25 + $0x10] sm:$0xff] (%p2796_p4) }
 0x2b9   : > { %s2145_s18 = scalar_lea.vmem (%p2796_p4), %s4474_s10, %s2420_s11  ;;  %v2164_v61 = vld [vmem:[%s4382_s25 + $0x18] sm:$0xff] (%p2796_p4)  ;;  %v2166_v39 = vld [vmem:[%s4382_s25 + $0x20] sm:$0xff] (%p2796_p4)  ;;  %v2168_v31 = vld [vmem:[%s4382_s25 + $0x28] sm:$0xff] (%p2796_p4) }
 0x2ba   : > { %2159 = vst [vmem:[%s2145_s18] sm:$0xff] (%p2796_p4), %v2158_v10  ;;  %v2170_v43 = vld [vmem:[%s4382_s25 + $0x30] sm:$0xff] (%p2796_p4)  ;;  %v2172_v12 = vld [vmem:[%s4382_s25 + $0x38] sm:$0xff] (%p2796_p4) }
 0x2bb   : > { %2161 = vst [vmem:[%s2145_s18 + $0x8] sm:$0xff] (%p2796_p4), %v2160_v11 }
 0x2bc   : > { %2163 = vst [vmem:[%s2145_s18 + $0x10] sm:$0xff] (%p2796_p4), %v2162_v47 }
 0x2bd   : > { %2165 = vst [vmem:[%s2145_s18 + $0x18] sm:$0xff] %v2164_v61 }
 0x2be   : > { %2167 = vst [vmem:[%s2145_s18 + $0x40] sm:$0xff] %v2166_v39 }
 0x2bf   : > { %2169 = vst [vmem:[%s2145_s18 + $0x48] sm:$0xff] %v2168_v31 }
 0x2c0   : > { %2171 = vst [vmem:[%s2145_s18 + $0x50] sm:$0xff] %v2170_v43 }
 0x2c1   : > { %2173 = vst [vmem:[%s2145_s18 + $0x58] sm:$0xff] %v2172_v12 }
 0x2c2 PF: > { %p18_p9 = scmp.ge.s32.totalorder %s2786_s17, 4   ;;  %s4655_s13 = smov %s2691_s14 }
 0x2c3   : > { %s4656_s14 = smov %s2794_s20  ;;  %s4657_s15 = smov %s2786_s17 }
 0x2c4   :  { %20 = sbr.rel (!%p18_p9) target bundleno = 2 (0x2), region = 212 }

</bundles_post_ra>
